<compile_context>
chip_gen: v6e
topology: v6e:2x2x1
jax: 0.10.0
libtpu: 0.0.40
codegen_flags: <defaults>
</compile_context>

<pallas_src>
import math
import numpy as np

import jax
import jax.numpy as jnp
from jax.experimental import pallas as pl
from jax.experimental.pallas import tpu as pltpu


def _round_up(x, m):
    return -(-x // m) * m


# ----------------------------------------------------------------------------
# Fused NHiTS kernel (all blocks in one pallas_call)
# ----------------------------------------------------------------------------
def make_fused_kernel(block_meta, naive_level):
    """block_meta[i] = dict(p=<#pooling selection mats>, n_hidden=<#MLP layers>)

    Kernel ref order:
      x,
      [naive_mat]                                   (only if naive_level)
      per block: S_0..S_{p-1}, (W_h, b_h)*n_hidden, W_back, b_back, W_fc, b_fc,
      forecast_out
    """

    def kernel(*refs):
        x_ref = refs[0]
        out_ref = refs[-1]
        wrefs = refs[1:-1]

        x = x_ref[...]                                    # [TB, L]
        tb = x.shape[0]
        hpad = out_ref.shape[-1]

        idx = 0
        if naive_level:
            naive_ref = wrefs[0]
            idx = 1
            # last observation broadcast to the forecast horizon, as one exact matmul
            fcst = jnp.dot(x, naive_ref[...], preferred_element_type=jnp.float32)
        else:
            fcst = jnp.zeros((tb, hpad), jnp.float32)

        resid = x
        n_total = len(block_meta)
        for bi, meta in enumerate(block_meta):
            p = meta["p"]
            nh = meta["n_hidden"]
            sel_refs = wrefs[idx: idx + p]
            idx += p
            hid_refs = wrefs[idx: idx + 2 * nh]
            idx += 2 * nh
            wb_ref, bb_ref, wf_ref, bf_ref = wrefs[idx: idx + 4]
            idx += 4

            # MaxPool1d(kernel=stride=p, ceil_mode=True):
            # elementwise max over p selection matmuls (exact).
            pooled = jnp.dot(resid, sel_refs[0][...],
                             preferred_element_type=jnp.float32)
            for k in range(1, p):
                pooled = jnp.maximum(
                    pooled,
                    jnp.dot(resid, sel_refs[k][...],
                            preferred_element_type=jnp.float32))

            # MLP: (Linear + ReLU) * n_hidden
            h = pooled
            for li in range(nh):
                w = hid_refs[2 * li][...]
                b = hid_refs[2 * li + 1][...]
                h = jnp.maximum(
                    jnp.dot(h, w, preferred_element_type=jnp.float32) + b, 0.0)

            # Forecast projection (interpolation already folded in, lane-padded)
            fc = jnp.dot(h, wf_ref[...],
                         preferred_element_type=jnp.float32) + bf_ref[...]
            fcst = fcst + fc

            # Residual update (skipped for the last block: never consumed)
            if bi + 1 < n_total:
                backcast = jnp.dot(h, wb_ref[...],
                                   preferred_element_type=jnp.float32) + bb_ref[...]
                resid = resid - backcast

        out_ref[...] = fcst

    return kernel


# ----------------------------------------------------------------------------
# Host-side parameter construction (deterministic, synthetic)
# ----------------------------------------------------------------------------
def linear_interp_matrix(T, H):
    """F.interpolate(mode='linear', align_corners=False): knots[T] -> out[H],
    expressed as a [T, H] matrix."""
    M = np.zeros((T, H), np.float32)
    if T == 1:
        M[0, :] = 1.0
        return jnp.asarray(M)
    scale = T / H
    for i in range(H):
        src = scale * (i + 0.5) - 0.5
        if src < 0.0:
            src = 0.0
        i0 = min(int(math.floor(src)), T - 1)
        i1 = i0 + 1 if i0 < T - 1 else i0
        lam = src - i0
        M[i0, i] += (1.0 - lam)
        M[i1, i] += lam
    return jnp.asarray(M)


def pooling_selection_matrices(L, p):
    """S_k [L, Lp] with one 1.0 per column selecting element j*p+k of window j.
    Out-of-range tail positions (ceil mode) are remapped to the first element
    of the last window, so max_k(x @ S_k) == ceil-mode max pooling exactly."""
    Lp = -(-L // p)
    last_start = (Lp - 1) * p
    mats = []
    for k in range(p):
        S = np.zeros((L, Lp), np.float32)
        for j in range(Lp):
            src = j * p + k
            if src >= L:
                src = last_start
            S[src, j] = 1.0
        mats.append(jnp.asarray(S))
    return mats, Lp


def dense_init(key, fan_in, fan_out):
    k1, k2 = jax.random.split(key)
    w = jax.random.normal(k1, (fan_in, fan_out), jnp.float32) / np.sqrt(fan_in)
    b = jax.random.normal(k2, (1, fan_out), jnp.float32) * 0.01
    return w, b


def build_nhits_params(key, context_length, prediction_length, output_size,
                       n_blocks, n_layers, hidden_size, pooling_sizes,
                       downsample_frequencies):
    assert output_size == 1, "kernel path implemented for output_size=1"
    L, H = context_length, prediction_length
    Hpad = _round_up(H, 128)
    hi = jax.lax.Precision.HIGHEST
    params = []
    for i in range(len(n_blocks)):
        for _ in range(n_blocks[i]):
            p = pooling_sizes[i]
            sel, Lp = pooling_selection_matrices(L, p)
            n_theta = max(H // downsample_frequencies[i], 1)
            hs = hidden_size[i]
            dims = [Lp] + list(hs)
            hidden = []
            for li in range(n_layers[i]):
                key, sub = jax.random.split(key)
                hidden.append(dense_init(sub, dims[li], dims[li + 1]))
            key, sub = jax.random.split(key)
            wout, bout = dense_init(sub, dims[-1], L + n_theta)
            wback, bback = wout[:, :L], bout[:, :L]
            wknot, bknot = wout[:, L:], bout[:, L:]
            minterp = linear_interp_matrix(n_theta, H)
            # Fold interpolation into the forecast projection; pad to Hpad lanes.
            wfc = jnp.dot(wknot, minterp, precision=hi)
            bfc = jnp.dot(bknot, minterp, precision=hi)
            wfc_pad = jnp.pad(wfc, ((0, 0), (0, Hpad - H)))
            bfc_pad = jnp.pad(bfc, ((0, 0), (0, Hpad - H)))
            params.append(dict(
                pool=p, Lp=Lp, n_theta=n_theta,
                sel=sel, hidden=hidden,
                wback=wback, bback=bback,
                wknot=wknot, bknot=bknot, minterp=minterp,
                wfc_pad=wfc_pad, bfc_pad=bfc_pad,
            ))
    return params


# ----------------------------------------------------------------------------
# NHiTS forward (Pallas) and pure-JAX reference
# ----------------------------------------------------------------------------
def nhits_forward_pallas(history_data, params, context_length, prediction_length,
                         output_size=1, naive_level=True, row_tile=None,
                         vmem_limit_bytes=None):
    B, L, N, C = history_data.shape
    assert L == context_length
    assert output_size == 1
    H = prediction_length
    Hpad = _round_up(H, 128)

    # [B, L, N, C] -> channel 0 -> [B*N, L] flat slab (rows = series, lanes = time)
    x = jnp.transpose(history_data[..., 0], (0, 2, 1)).reshape(B * N, L)
    x = x.astype(jnp.float32)
    BN = B * N

    # Row tile: big tiles keep the MXU busy (review: 128 for v5e, 256 v6e/v7x).
    if row_tile is None:
        row_tile = 256 if BN >= 256 else _round_up(BN, 8)
    TB = max(8, min(_round_up(row_tile, 8), _round_up(BN, 8)))
    BNpad = _round_up(BN, TB)
    if BNpad != BN:
        x = jnp.pad(x, ((0, BNpad - BN), (0, 0)))
    grid = (BNpad // TB,)

    # Flatten all weights in the order the kernel parses them.
    weights = []
    if naive_level:
        nm = np.zeros((L, Hpad), np.float32)
        nm[L - 1, :] = 1.0                     # broadcast last observation
        weights.append(jnp.asarray(nm))
    block_meta = []
    for bp in params:
        block_meta.append(dict(p=len(bp["sel"]), n_hidden=len(bp["hidden"])))
        weights += list(bp["sel"])
        for (w, b) in bp["hidden"]:
            weights += [w, b]
        weights += [bp["wback"], bp["bback"], bp["wfc_pad"], bp["bfc_pad"]]

    def full_spec(arr):                         # grid-invariant: DMA'd once
        nd = arr.ndim
        return pl.BlockSpec(arr.shape, lambda i, _nd=nd: (0,) * _nd)

    in_specs = [pl.BlockSpec((TB, L), lambda i: (i, 0))] + \
               [full_spec(w) for w in weights]
    out_specs = pl.BlockSpec((TB, Hpad), lambda i: (i, 0))   # lane-dense output
    out_shape = jax.ShapeDtypeStruct((BNpad, Hpad), jnp.float32)

    kernel = make_fused_kernel(block_meta, naive_level)

    cparams = dict(dimension_semantics=("parallel",))
    if vmem_limit_bytes is not None:            # raise for very large fused configs
        cparams["vmem_limit_bytes"] = vmem_limit_bytes

    fcst = pl.pallas_call(
        kernel,
        out_shape=out_shape,
        grid_spec=pltpu.PrefetchScalarGridSpec(
            num_scalar_prefetch=0,
            grid=grid,
            in_specs=in_specs,
            out_specs=out_specs,
        ),
        compiler_params=pltpu.CompilerParams(**cparams),
    )(x, *weights)

    fcst = fcst[:BN, :H]                        # drop row/lane padding
    fcst = fcst.reshape(B, N, H, output_size)
    return jnp.transpose(fcst, (0, 2, 1, 3))    # [B, H, N, output_size]


def nhits_forward_ref(history_data, params, context_length, prediction_length,
                      output_size=1, naive_level=True):
    """Pure-JAX reference mirroring the PyTorch forward (pool -> MLP ->
    backcast/knots -> linear interpolation -> residual/forecast update)."""
    B, L, N, C = history_data.shape
    H = prediction_length
    x = jnp.transpose(history_data[..., 0], (0, 2, 1)).reshape(B * N, L)
    x = x.astype(jnp.float32)
    residuals = x
    forecast = (jnp.broadcast_to(x[:, -1:], (B * N, H)) if naive_level
                else jnp.zeros((B * N, H), jnp.float32))
    hi = jax.lax.Precision.HIGHEST
    for bp in params:
        p = bp["pool"]
        Lp = bp["Lp"]
        pad = Lp * p - L
        xw = residuals
        if pad:
            xw = jnp.pad(xw, ((0, 0), (0, pad)), constant_values=-jnp.inf)
        h = jnp.max(xw.reshape(B * N, Lp, p), axis=-1)
        for (w, b) in bp["hidden"]:
            h = jnp.maximum(jnp.dot(h, w, precision=hi) + b, 0.0)
        backcast = jnp.dot(h, bp["wback"], precision=hi) + bp["bback"]
        knots = jnp.dot(h, bp["wknot"], precision=hi) + bp["bknot"]
        fc = jnp.dot(knots, bp["minterp"], precision=hi)
        residuals = residuals - backcast
        forecast = forecast + fc
    forecast = forecast.reshape(B, N, H, output_size)
    return jnp.transpose(forecast, (0, 2, 1, 3))


# ----------------------------------------------------------------------------
if __name__ == "__main__":
    # Small but representative NHiTS config (BN=512 -> 2 grid tiles of 256 rows)
    B, N, C = 16, 32, 3
    context_length = 96
    prediction_length = 24
    output_size = 1
    n_blocks = [1, 1]
    n_layers = [2, 2]
    hidden_size = [[64, 64], [64, 64]]
    pooling_sizes = [7, 4]            # 7 does not divide 96 -> exercises ceil mode
    downsample_frequencies = [4, 2]

    key = jax.random.PRNGKey(0)
    key, pkey, dkey = jax.random.split(key, 3)

    params = build_nhits_params(
        pkey, context_length, prediction_length, output_size,
        n_blocks, n_layers, hidden_size, pooling_sizes, downsample_frequencies)

    # history_data: [B, L, N, C]
    history_data = jax.random.normal(
        dkey, (B, context_length, N, C), jnp.float32)

    out = nhits_forward_pallas(history_data, params,
                               context_length, prediction_length, output_size)
    out = jax.block_until_ready(out)

    ref = nhits_forward_ref(history_data, params,
                            context_length, prediction_length, output_size)
    ref = jax.block_until_ready(ref)

    assert out.shape == (B, prediction_length, N, output_size), out.shape
    max_err = float(jnp.max(jnp.abs(out - ref)))
    assert jnp.allclose(out, ref, atol=2e-3, rtol=2e-3), max_err

    print("KERNEL_OK")
</pallas_src>

<mosaic_0001>
module attributes {stable_mosaic.version = 11 : i64} {
  func.func @kernel(%arg0: i32, %arg1: memref<256x96xf32, #tpu.memory_space<vmem>>, %arg2: memref<96x128xf32, #tpu.memory_space<vmem>>, %arg3: memref<96x14xf32, #tpu.memory_space<vmem>>, %arg4: memref<96x14xf32, #tpu.memory_space<vmem>>, %arg5: memref<96x14xf32, #tpu.memory_space<vmem>>, %arg6: memref<96x14xf32, #tpu.memory_space<vmem>>, %arg7: memref<96x14xf32, #tpu.memory_space<vmem>>, %arg8: memref<96x14xf32, #tpu.memory_space<vmem>>, %arg9: memref<96x14xf32, #tpu.memory_space<vmem>>, %arg10: memref<14x64xf32, #tpu.memory_space<vmem>>, %arg11: memref<1x64xf32, #tpu.memory_space<vmem>>, %arg12: memref<64x64xf32, #tpu.memory_space<vmem>>, %arg13: memref<1x64xf32, #tpu.memory_space<vmem>>, %arg14: memref<64x96xf32, #tpu.memory_space<vmem>>, %arg15: memref<1x96xf32, #tpu.memory_space<vmem>>, %arg16: memref<64x128xf32, #tpu.memory_space<vmem>>, %arg17: memref<1x128xf32, #tpu.memory_space<vmem>>, %arg18: memref<96x24xf32, #tpu.memory_space<vmem>>, %arg19: memref<96x24xf32, #tpu.memory_space<vmem>>, %arg20: memref<96x24xf32, #tpu.memory_space<vmem>>, %arg21: memref<96x24xf32, #tpu.memory_space<vmem>>, %arg22: memref<24x64xf32, #tpu.memory_space<vmem>>, %arg23: memref<1x64xf32, #tpu.memory_space<vmem>>, %arg24: memref<64x64xf32, #tpu.memory_space<vmem>>, %arg25: memref<1x64xf32, #tpu.memory_space<vmem>>, %arg26: memref<64x96xf32, #tpu.memory_space<vmem>>, %arg27: memref<1x96xf32, #tpu.memory_space<vmem>>, %arg28: memref<64x128xf32, #tpu.memory_space<vmem>>, %arg29: memref<1x128xf32, #tpu.memory_space<vmem>>, %arg30: memref<256x128xf32, #tpu.memory_space<vmem>>) attributes {dimension_semantics = [#tpu.dimension_semantics<parallel>], iteration_bounds = array<i64: 2>, scalar_prefetch = 0 : i64, scratch_operands = 0 : i64, tpu.core_type = #tpu.core_type<tc>, window_params = [{transform_indices = @transform_0, window_bounds = array<i64: 256, 96>}, {pipeline_mode = #tpu.pipeline_mode<synchronous>, transform_indices = @transform_1, window_bounds = array<i64: 96, 128>}, {pipeline_mode = #tpu.pipeline_mode<synchronous>, transform_indices = @transform_2, window_bounds = array<i64: 96, 14>}, {pipeline_mode = #tpu.pipeline_mode<synchronous>, transform_indices = @transform_3, window_bounds = array<i64: 96, 14>}, {pipeline_mode = #tpu.pipeline_mode<synchronous>, transform_indices = @transform_4, window_bounds = array<i64: 96, 14>}, {pipeline_mode = #tpu.pipeline_mode<synchronous>, transform_indices = @transform_5, window_bounds = array<i64: 96, 14>}, {pipeline_mode = #tpu.pipeline_mode<synchronous>, transform_indices = @transform_6, window_bounds = array<i64: 96, 14>}, {pipeline_mode = #tpu.pipeline_mode<synchronous>, transform_indices = @transform_7, window_bounds = array<i64: 96, 14>}, {pipeline_mode = #tpu.pipeline_mode<synchronous>, transform_indices = @transform_8, window_bounds = array<i64: 96, 14>}, {pipeline_mode = #tpu.pipeline_mode<synchronous>, transform_indices = @transform_9, window_bounds = array<i64: 14, 64>}, {pipeline_mode = #tpu.pipeline_mode<synchronous>, transform_indices = @transform_10, window_bounds = array<i64: 1, 64>}, {pipeline_mode = #tpu.pipeline_mode<synchronous>, transform_indices = @transform_11, window_bounds = array<i64: 64, 64>}, {pipeline_mode = #tpu.pipeline_mode<synchronous>, transform_indices = @transform_12, window_bounds = array<i64: 1, 64>}, {pipeline_mode = #tpu.pipeline_mode<synchronous>, transform_indices = @transform_13, window_bounds = array<i64: 64, 96>}, {pipeline_mode = #tpu.pipeline_mode<synchronous>, transform_indices = @transform_14, window_bounds = array<i64: 1, 96>}, {pipeline_mode = #tpu.pipeline_mode<synchronous>, transform_indices = @transform_15, window_bounds = array<i64: 64, 128>}, {pipeline_mode = #tpu.pipeline_mode<synchronous>, transform_indices = @transform_16, window_bounds = array<i64: 1, 128>}, {pipeline_mode = #tpu.pipeline_mode<synchronous>, transform_indices = @transform_17, window_bounds = array<i64: 96, 24>}, {pipeline_mode = #tpu.pipeline_mode<synchronous>, transform_indices = @transform_18, window_bounds = array<i64: 96, 24>}, {pipeline_mode = #tpu.pipeline_mode<synchronous>, transform_indices = @transform_19, window_bounds = array<i64: 96, 24>}, {pipeline_mode = #tpu.pipeline_mode<synchronous>, transform_indices = @transform_20, window_bounds = array<i64: 96, 24>}, {pipeline_mode = #tpu.pipeline_mode<synchronous>, transform_indices = @transform_21, window_bounds = array<i64: 24, 64>}, {pipeline_mode = #tpu.pipeline_mode<synchronous>, transform_indices = @transform_22, window_bounds = array<i64: 1, 64>}, {pipeline_mode = #tpu.pipeline_mode<synchronous>, transform_indices = @transform_23, window_bounds = array<i64: 64, 64>}, {pipeline_mode = #tpu.pipeline_mode<synchronous>, transform_indices = @transform_24, window_bounds = array<i64: 1, 64>}, {pipeline_mode = #tpu.pipeline_mode<synchronous>, transform_indices = @transform_25, window_bounds = array<i64: 64, 96>}, {pipeline_mode = #tpu.pipeline_mode<synchronous>, transform_indices = @transform_26, window_bounds = array<i64: 1, 96>}, {pipeline_mode = #tpu.pipeline_mode<synchronous>, transform_indices = @transform_27, window_bounds = array<i64: 64, 128>}, {pipeline_mode = #tpu.pipeline_mode<synchronous>, transform_indices = @transform_28, window_bounds = array<i64: 1, 128>}, {transform_indices = @transform_29, window_bounds = array<i64: 256, 128>}]} {
    %c0 = arith.constant 0 : index
    %c0_0 = arith.constant 0 : index
    %0 = vector.load %arg1[%c0, %c0_0] : memref<256x96xf32, #tpu.memory_space<vmem>>, vector<256x96xf32>
    %c0_1 = arith.constant 0 : index
    %c0_2 = arith.constant 0 : index
    %1 = vector.load %arg2[%c0_1, %c0_2] : memref<96x128xf32, #tpu.memory_space<vmem>>, vector<96x128xf32>
    %cst = arith.constant dense<0.000000e+00> : vector<256x128xf32>
    %2 = tpu.matmul %0, %1, %cst {dimension_numbers = #tpu.dot_dimension_numbers<[1], [0], [0], [1], [0, 0, 1, 1], [], []>} : vector<256x96xf32>, vector<96x128xf32>, vector<256x128xf32> -> vector<256x128xf32>
    %c0_3 = arith.constant 0 : index
    %c0_4 = arith.constant 0 : index
    %3 = vector.load %arg3[%c0_3, %c0_4] : memref<96x14xf32, #tpu.memory_space<vmem>>, vector<96x14xf32>
    %cst_5 = arith.constant dense<0.000000e+00> : vector<256x14xf32>
    %4 = tpu.matmul %0, %3, %cst_5 {dimension_numbers = #tpu.dot_dimension_numbers<[1], [0], [0], [1], [0, 0, 1, 1], [], []>} : vector<256x96xf32>, vector<96x14xf32>, vector<256x14xf32> -> vector<256x14xf32>
    %c0_6 = arith.constant 0 : index
    %c0_7 = arith.constant 0 : index
    %5 = vector.load %arg4[%c0_6, %c0_7] : memref<96x14xf32, #tpu.memory_space<vmem>>, vector<96x14xf32>
    %cst_8 = arith.constant dense<0.000000e+00> : vector<256x14xf32>
    %6 = tpu.matmul %0, %5, %cst_8 {dimension_numbers = #tpu.dot_dimension_numbers<[1], [0], [0], [1], [0, 0, 1, 1], [], []>} : vector<256x96xf32>, vector<96x14xf32>, vector<256x14xf32> -> vector<256x14xf32>
    %7 = arith.maximumf %4, %6 : vector<256x14xf32>
    %c0_9 = arith.constant 0 : index
    %c0_10 = arith.constant 0 : index
    %8 = vector.load %arg5[%c0_9, %c0_10] : memref<96x14xf32, #tpu.memory_space<vmem>>, vector<96x14xf32>
    %cst_11 = arith.constant dense<0.000000e+00> : vector<256x14xf32>
    %9 = tpu.matmul %0, %8, %cst_11 {dimension_numbers = #tpu.dot_dimension_numbers<[1], [0], [0], [1], [0, 0, 1, 1], [], []>} : vector<256x96xf32>, vector<96x14xf32>, vector<256x14xf32> -> vector<256x14xf32>
    %10 = arith.maximumf %7, %9 : vector<256x14xf32>
    %c0_12 = arith.constant 0 : index
    %c0_13 = arith.constant 0 : index
    %11 = vector.load %arg6[%c0_12, %c0_13] : memref<96x14xf32, #tpu.memory_space<vmem>>, vector<96x14xf32>
    %cst_14 = arith.constant dense<0.000000e+00> : vector<256x14xf32>
    %12 = tpu.matmul %0, %11, %cst_14 {dimension_numbers = #tpu.dot_dimension_numbers<[1], [0], [0], [1], [0, 0, 1, 1], [], []>} : vector<256x96xf32>, vector<96x14xf32>, vector<256x14xf32> -> vector<256x14xf32>
    %13 = arith.maximumf %10, %12 : vector<256x14xf32>
    %c0_15 = arith.constant 0 : index
    %c0_16 = arith.constant 0 : index
    %14 = vector.load %arg7[%c0_15, %c0_16] : memref<96x14xf32, #tpu.memory_space<vmem>>, vector<96x14xf32>
    %cst_17 = arith.constant dense<0.000000e+00> : vector<256x14xf32>
    %15 = tpu.matmul %0, %14, %cst_17 {dimension_numbers = #tpu.dot_dimension_numbers<[1], [0], [0], [1], [0, 0, 1, 1], [], []>} : vector<256x96xf32>, vector<96x14xf32>, vector<256x14xf32> -> vector<256x14xf32>
    %16 = arith.maximumf %13, %15 : vector<256x14xf32>
    %c0_18 = arith.constant 0 : index
    %c0_19 = arith.constant 0 : index
    %17 = vector.load %arg8[%c0_18, %c0_19] : memref<96x14xf32, #tpu.memory_space<vmem>>, vector<96x14xf32>
    %cst_20 = arith.constant dense<0.000000e+00> : vector<256x14xf32>
    %18 = tpu.matmul %0, %17, %cst_20 {dimension_numbers = #tpu.dot_dimension_numbers<[1], [0], [0], [1], [0, 0, 1, 1], [], []>} : vector<256x96xf32>, vector<96x14xf32>, vector<256x14xf32> -> vector<256x14xf32>
    %19 = arith.maximumf %16, %18 : vector<256x14xf32>
    %c0_21 = arith.constant 0 : index
    %c0_22 = arith.constant 0 : index
    %20 = vector.load %arg9[%c0_21, %c0_22] : memref<96x14xf32, #tpu.memory_space<vmem>>, vector<96x14xf32>
    %cst_23 = arith.constant dense<0.000000e+00> : vector<256x14xf32>
    %21 = tpu.matmul %0, %20, %cst_23 {dimension_numbers = #tpu.dot_dimension_numbers<[1], [0], [0], [1], [0, 0, 1, 1], [], []>} : vector<256x96xf32>, vector<96x14xf32>, vector<256x14xf32> -> vector<256x14xf32>
    %22 = arith.maximumf %19, %21 : vector<256x14xf32>
    %c0_24 = arith.constant 0 : index
    %c0_25 = arith.constant 0 : index
    %23 = vector.load %arg10[%c0_24, %c0_25] : memref<14x64xf32, #tpu.memory_space<vmem>>, vector<14x64xf32>
    %c0_26 = arith.constant 0 : index
    %c0_27 = arith.constant 0 : index
    %24 = vector.load %arg11[%c0_26, %c0_27] : memref<1x64xf32, #tpu.memory_space<vmem>>, vector<1x64xf32>
    %cst_28 = arith.constant dense<0.000000e+00> : vector<256x64xf32>
    %25 = tpu.matmul %22, %23, %cst_28 {dimension_numbers = #tpu.dot_dimension_numbers<[1], [0], [0], [1], [0, 0, 1, 1], [], []>} : vector<256x14xf32>, vector<14x64xf32>, vector<256x64xf32> -> vector<256x64xf32>
    %26 = vector.broadcast %24 : vector<1x64xf32> to vector<256x64xf32>
    %27 = arith.addf %25, %26 : vector<256x64xf32>
    %cst_29 = arith.constant 0.000000e+00 : f32
    %28 = vector.broadcast %cst_29 : f32 to vector<256x64xf32>
    %29 = arith.maximumf %27, %28 : vector<256x64xf32>
    %c0_30 = arith.constant 0 : index
    %c0_31 = arith.constant 0 : index
    %30 = vector.load %arg12[%c0_30, %c0_31] : memref<64x64xf32, #tpu.memory_space<vmem>>, vector<64x64xf32>
    %c0_32 = arith.constant 0 : index
    %c0_33 = arith.constant 0 : index
    %31 = vector.load %arg13[%c0_32, %c0_33] : memref<1x64xf32, #tpu.memory_space<vmem>>, vector<1x64xf32>
    %cst_34 = arith.constant dense<0.000000e+00> : vector<256x64xf32>
    %32 = tpu.matmul %29, %30, %cst_34 {dimension_numbers = #tpu.dot_dimension_numbers<[1], [0], [0], [1], [0, 0, 1, 1], [], []>} : vector<256x64xf32>, vector<64x64xf32>, vector<256x64xf32> -> vector<256x64xf32>
    %33 = vector.broadcast %31 : vector<1x64xf32> to vector<256x64xf32>
    %34 = arith.addf %32, %33 : vector<256x64xf32>
    %cst_35 = arith.constant 0.000000e+00 : f32
    %35 = vector.broadcast %cst_35 : f32 to vector<256x64xf32>
    %36 = arith.maximumf %34, %35 : vector<256x64xf32>
    %c0_36 = arith.constant 0 : index
    %c0_37 = arith.constant 0 : index
    %37 = vector.load %arg16[%c0_36, %c0_37] : memref<64x128xf32, #tpu.memory_space<vmem>>, vector<64x128xf32>
    %cst_38 = arith.constant dense<0.000000e+00> : vector<256x128xf32>
    %38 = tpu.matmul %36, %37, %cst_38 {dimension_numbers = #tpu.dot_dimension_numbers<[1], [0], [0], [1], [0, 0, 1, 1], [], []>} : vector<256x64xf32>, vector<64x128xf32>, vector<256x128xf32> -> vector<256x128xf32>
    %c0_39 = arith.constant 0 : index
    %c0_40 = arith.constant 0 : index
    %39 = vector.load %arg17[%c0_39, %c0_40] : memref<1x128xf32, #tpu.memory_space<vmem>>, vector<1x128xf32>
    %40 = vector.broadcast %39 : vector<1x128xf32> to vector<256x128xf32>
    %41 = arith.addf %38, %40 : vector<256x128xf32>
    %42 = arith.addf %2, %41 : vector<256x128xf32>
    %c0_41 = arith.constant 0 : index
    %c0_42 = arith.constant 0 : index
    %43 = vector.load %arg14[%c0_41, %c0_42] : memref<64x96xf32, #tpu.memory_space<vmem>>, vector<64x96xf32>
    %cst_43 = arith.constant dense<0.000000e+00> : vector<256x96xf32>
    %44 = tpu.matmul %36, %43, %cst_43 {dimension_numbers = #tpu.dot_dimension_numbers<[1], [0], [0], [1], [0, 0, 1, 1], [], []>} : vector<256x64xf32>, vector<64x96xf32>, vector<256x96xf32> -> vector<256x96xf32>
    %c0_44 = arith.constant 0 : index
    %c0_45 = arith.constant 0 : index
    %45 = vector.load %arg15[%c0_44, %c0_45] : memref<1x96xf32, #tpu.memory_space<vmem>>, vector<1x96xf32>
    %46 = vector.broadcast %45 : vector<1x96xf32> to vector<256x96xf32>
    %47 = arith.addf %44, %46 : vector<256x96xf32>
    %48 = arith.subf %0, %47 : vector<256x96xf32>
    %c0_46 = arith.constant 0 : index
    %c0_47 = arith.constant 0 : index
    %49 = vector.load %arg18[%c0_46, %c0_47] : memref<96x24xf32, #tpu.memory_space<vmem>>, vector<96x24xf32>
    %cst_48 = arith.constant dense<0.000000e+00> : vector<256x24xf32>
    %50 = tpu.matmul %48, %49, %cst_48 {dimension_numbers = #tpu.dot_dimension_numbers<[1], [0], [0], [1], [0, 0, 1, 1], [], []>} : vector<256x96xf32>, vector<96x24xf32>, vector<256x24xf32> -> vector<256x24xf32>
    %c0_49 = arith.constant 0 : index
    %c0_50 = arith.constant 0 : index
    %51 = vector.load %arg19[%c0_49, %c0_50] : memref<96x24xf32, #tpu.memory_space<vmem>>, vector<96x24xf32>
    %cst_51 = arith.constant dense<0.000000e+00> : vector<256x24xf32>
    %52 = tpu.matmul %48, %51, %cst_51 {dimension_numbers = #tpu.dot_dimension_numbers<[1], [0], [0], [1], [0, 0, 1, 1], [], []>} : vector<256x96xf32>, vector<96x24xf32>, vector<256x24xf32> -> vector<256x24xf32>
    %53 = arith.maximumf %50, %52 : vector<256x24xf32>
    %c0_52 = arith.constant 0 : index
    %c0_53 = arith.constant 0 : index
    %54 = vector.load %arg20[%c0_52, %c0_53] : memref<96x24xf32, #tpu.memory_space<vmem>>, vector<96x24xf32>
    %cst_54 = arith.constant dense<0.000000e+00> : vector<256x24xf32>
    %55 = tpu.matmul %48, %54, %cst_54 {dimension_numbers = #tpu.dot_dimension_numbers<[1], [0], [0], [1], [0, 0, 1, 1], [], []>} : vector<256x96xf32>, vector<96x24xf32>, vector<256x24xf32> -> vector<256x24xf32>
    %56 = arith.maximumf %53, %55 : vector<256x24xf32>
    %c0_55 = arith.constant 0 : index
    %c0_56 = arith.constant 0 : index
    %57 = vector.load %arg21[%c0_55, %c0_56] : memref<96x24xf32, #tpu.memory_space<vmem>>, vector<96x24xf32>
    %cst_57 = arith.constant dense<0.000000e+00> : vector<256x24xf32>
    %58 = tpu.matmul %48, %57, %cst_57 {dimension_numbers = #tpu.dot_dimension_numbers<[1], [0], [0], [1], [0, 0, 1, 1], [], []>} : vector<256x96xf32>, vector<96x24xf32>, vector<256x24xf32> -> vector<256x24xf32>
    %59 = arith.maximumf %56, %58 : vector<256x24xf32>
    %c0_58 = arith.constant 0 : index
    %c0_59 = arith.constant 0 : index
    %60 = vector.load %arg22[%c0_58, %c0_59] : memref<24x64xf32, #tpu.memory_space<vmem>>, vector<24x64xf32>
    %c0_60 = arith.constant 0 : index
    %c0_61 = arith.constant 0 : index
    %61 = vector.load %arg23[%c0_60, %c0_61] : memref<1x64xf32, #tpu.memory_space<vmem>>, vector<1x64xf32>
    %cst_62 = arith.constant dense<0.000000e+00> : vector<256x64xf32>
    %62 = tpu.matmul %59, %60, %cst_62 {dimension_numbers = #tpu.dot_dimension_numbers<[1], [0], [0], [1], [0, 0, 1, 1], [], []>} : vector<256x24xf32>, vector<24x64xf32>, vector<256x64xf32> -> vector<256x64xf32>
    %63 = vector.broadcast %61 : vector<1x64xf32> to vector<256x64xf32>
    %64 = arith.addf %62, %63 : vector<256x64xf32>
    %cst_63 = arith.constant 0.000000e+00 : f32
    %65 = vector.broadcast %cst_63 : f32 to vector<256x64xf32>
    %66 = arith.maximumf %64, %65 : vector<256x64xf32>
    %c0_64 = arith.constant 0 : index
    %c0_65 = arith.constant 0 : index
    %67 = vector.load %arg24[%c0_64, %c0_65] : memref<64x64xf32, #tpu.memory_space<vmem>>, vector<64x64xf32>
    %c0_66 = arith.constant 0 : index
    %c0_67 = arith.constant 0 : index
    %68 = vector.load %arg25[%c0_66, %c0_67] : memref<1x64xf32, #tpu.memory_space<vmem>>, vector<1x64xf32>
    %cst_68 = arith.constant dense<0.000000e+00> : vector<256x64xf32>
    %69 = tpu.matmul %66, %67, %cst_68 {dimension_numbers = #tpu.dot_dimension_numbers<[1], [0], [0], [1], [0, 0, 1, 1], [], []>} : vector<256x64xf32>, vector<64x64xf32>, vector<256x64xf32> -> vector<256x64xf32>
    %70 = vector.broadcast %68 : vector<1x64xf32> to vector<256x64xf32>
    %71 = arith.addf %69, %70 : vector<256x64xf32>
    %cst_69 = arith.constant 0.000000e+00 : f32
    %72 = vector.broadcast %cst_69 : f32 to vector<256x64xf32>
    %73 = arith.maximumf %71, %72 : vector<256x64xf32>
    %c0_70 = arith.constant 0 : index
    %c0_71 = arith.constant 0 : index
    %74 = vector.load %arg28[%c0_70, %c0_71] : memref<64x128xf32, #tpu.memory_space<vmem>>, vector<64x128xf32>
    %cst_72 = arith.constant dense<0.000000e+00> : vector<256x128xf32>
    %75 = tpu.matmul %73, %74, %cst_72 {dimension_numbers = #tpu.dot_dimension_numbers<[1], [0], [0], [1], [0, 0, 1, 1], [], []>} : vector<256x64xf32>, vector<64x128xf32>, vector<256x128xf32> -> vector<256x128xf32>
    %c0_73 = arith.constant 0 : index
    %c0_74 = arith.constant 0 : index
    %76 = vector.load %arg29[%c0_73, %c0_74] : memref<1x128xf32, #tpu.memory_space<vmem>>, vector<1x128xf32>
    %77 = vector.broadcast %76 : vector<1x128xf32> to vector<256x128xf32>
    %78 = arith.addf %75, %77 : vector<256x128xf32>
    %79 = arith.addf %42, %78 : vector<256x128xf32>
    %c0_75 = arith.constant 0 : index
    %c0_76 = arith.constant 0 : index
    %80 = vector.load %arg30[%c0_75, %c0_76] : memref<256x128xf32, #tpu.memory_space<vmem>>, vector<256x128xf32>
    tpu.vector_store %arg30[%c0_75, %c0_76], %79 {strides = array<i32>} : memref<256x128xf32, #tpu.memory_space<vmem>>, vector<256x128xf32>,
    return
  }
  func.func @transform_0(%arg0: i32) -> (i32, i32) {
    %c0_i32 = arith.constant 0 : i32
    %c0_i32_0 = arith.constant 0 : i32
    return %arg0, %c0_i32 : i32, i32
  }
  func.func @transform_1(%arg0: i32) -> (i32, i32) {
    %c0_i32 = arith.constant 0 : i32
    %c0_i32_0 = arith.constant 0 : i32
    %c0_i32_1 = arith.constant 0 : i32
    return %c0_i32, %c0_i32_0 : i32, i32
  }
  func.func @transform_2(%arg0: i32) -> (i32, i32) {
    %c0_i32 = arith.constant 0 : i32
    %c0_i32_0 = arith.constant 0 : i32
    %c0_i32_1 = arith.constant 0 : i32
    return %c0_i32, %c0_i32_0 : i32, i32
  }
  func.func @transform_3(%arg0: i32) -> (i32, i32) {
    %c0_i32 = arith.constant 0 : i32
    %c0_i32_0 = arith.constant 0 : i32
    %c0_i32_1 = arith.constant 0 : i32
    return %c0_i32, %c0_i32_0 : i32, i32
  }
  func.func @transform_4(%arg0: i32) -> (i32, i32) {
    %c0_i32 = arith.constant 0 : i32
    %c0_i32_0 = arith.constant 0 : i32
    %c0_i32_1 = arith.constant 0 : i32
    return %c0_i32, %c0_i32_0 : i32, i32
  }
  func.func @transform_5(%arg0: i32) -> (i32, i32) {
    %c0_i32 = arith.constant 0 : i32
    %c0_i32_0 = arith.constant 0 : i32
    %c0_i32_1 = arith.constant 0 : i32
    return %c0_i32, %c0_i32_0 : i32, i32
  }
  func.func @transform_6(%arg0: i32) -> (i32, i32) {
    %c0_i32 = arith.constant 0 : i32
    %c0_i32_0 = arith.constant 0 : i32
    %c0_i32_1 = arith.constant 0 : i32
    return %c0_i32, %c0_i32_0 : i32, i32
  }
  func.func @transform_7(%arg0: i32) -> (i32, i32) {
    %c0_i32 = arith.constant 0 : i32
    %c0_i32_0 = arith.constant 0 : i32
    %c0_i32_1 = arith.constant 0 : i32
    return %c0_i32, %c0_i32_0 : i32, i32
  }
  func.func @transform_8(%arg0: i32) -> (i32, i32) {
    %c0_i32 = arith.constant 0 : i32
    %c0_i32_0 = arith.constant 0 : i32
    %c0_i32_1 = arith.constant 0 : i32
    return %c0_i32, %c0_i32_0 : i32, i32
  }
  func.func @transform_9(%arg0: i32) -> (i32, i32) {
    %c0_i32 = arith.constant 0 : i32
    %c0_i32_0 = arith.constant 0 : i32
    %c0_i32_1 = arith.constant 0 : i32
    return %c0_i32, %c0_i32_0 : i32, i32
  }
  func.func @transform_10(%arg0: i32) -> (i32, i32) {
    %c0_i32 = arith.constant 0 : i32
    %c0_i32_0 = arith.constant 0 : i32
    %c0_i32_1 = arith.constant 0 : i32
    return %c0_i32, %c0_i32_0 : i32, i32
  }
  func.func @transform_11(%arg0: i32) -> (i32, i32) {
    %c0_i32 = arith.constant 0 : i32
    %c0_i32_0 = arith.constant 0 : i32
    %c0_i32_1 = arith.constant 0 : i32
    return %c0_i32, %c0_i32_0 : i32, i32
  }
  func.func @transform_12(%arg0: i32) -> (i32, i32) {
    %c0_i32 = arith.constant 0 : i32
    %c0_i32_0 = arith.constant 0 : i32
    %c0_i32_1 = arith.constant 0 : i32
    return %c0_i32, %c0_i32_0 : i32, i32
  }
  func.func @transform_13(%arg0: i32) -> (i32, i32) {
    %c0_i32 = arith.constant 0 : i32
    %c0_i32_0 = arith.constant 0 : i32
    %c0_i32_1 = arith.constant 0 : i32
    return %c0_i32, %c0_i32_0 : i32, i32
  }
  func.func @transform_14(%arg0: i32) -> (i32, i32) {
    %c0_i32 = arith.constant 0 : i32
    %c0_i32_0 = arith.constant 0 : i32
    %c0_i32_1 = arith.constant 0 : i32
    return %c0_i32, %c0_i32_0 : i32, i32
  }
  func.func @transform_15(%arg0: i32) -> (i32, i32) {
    %c0_i32 = arith.constant 0 : i32
    %c0_i32_0 = arith.constant 0 : i32
    %c0_i32_1 = arith.constant 0 : i32
    return %c0_i32, %c0_i32_0 : i32, i32
  }
  func.func @transform_16(%arg0: i32) -> (i32, i32) {
    %c0_i32 = arith.constant 0 : i32
    %c0_i32_0 = arith.constant 0 : i32
    %c0_i32_1 = arith.constant 0 : i32
    return %c0_i32, %c0_i32_0 : i32, i32
  }
  func.func @transform_17(%arg0: i32) -> (i32, i32) {
    %c0_i32 = arith.constant 0 : i32
    %c0_i32_0 = arith.constant 0 : i32
    %c0_i32_1 = arith.constant 0 : i32
    return %c0_i32, %c0_i32_0 : i32, i32
  }
  func.func @transform_18(%arg0: i32) -> (i32, i32) {
    %c0_i32 = arith.constant 0 : i32
    %c0_i32_0 = arith.constant 0 : i32
    %c0_i32_1 = arith.constant 0 : i32
    return %c0_i32, %c0_i32_0 : i32, i32
  }
  func.func @transform_19(%arg0: i32) -> (i32, i32) {
    %c0_i32 = arith.constant 0 : i32
    %c0_i32_0 = arith.constant 0 : i32
    %c0_i32_1 = arith.constant 0 : i32
    return %c0_i32, %c0_i32_0 : i32, i32
  }
  func.func @transform_20(%arg0: i32) -> (i32, i32) {
    %c0_i32 = arith.constant 0 : i32
    %c0_i32_0 = arith.constant 0 : i32
    %c0_i32_1 = arith.constant 0 : i32
    return %c0_i32, %c0_i32_0 : i32, i32
  }
  func.func @transform_21(%arg0: i32) -> (i32, i32) {
    %c0_i32 = arith.constant 0 : i32
    %c0_i32_0 = arith.constant 0 : i32
    %c0_i32_1 = arith.constant 0 : i32
    return %c0_i32, %c0_i32_0 : i32, i32
  }
  func.func @transform_22(%arg0: i32) -> (i32, i32) {
    %c0_i32 = arith.constant 0 : i32
    %c0_i32_0 = arith.constant 0 : i32
    %c0_i32_1 = arith.constant 0 : i32
    return %c0_i32, %c0_i32_0 : i32, i32
  }
  func.func @transform_23(%arg0: i32) -> (i32, i32) {
    %c0_i32 = arith.constant 0 : i32
    %c0_i32_0 = arith.constant 0 : i32
    %c0_i32_1 = arith.constant 0 : i32
    return %c0_i32, %c0_i32_0 : i32, i32
  }
  func.func @transform_24(%arg0: i32) -> (i32, i32) {
    %c0_i32 = arith.constant 0 : i32
    %c0_i32_0 = arith.constant 0 : i32
    %c0_i32_1 = arith.constant 0 : i32
    return %c0_i32, %c0_i32_0 : i32, i32
  }
  func.func @transform_25(%arg0: i32) -> (i32, i32) {
    %c0_i32 = arith.constant 0 : i32
    %c0_i32_0 = arith.constant 0 : i32
    %c0_i32_1 = arith.constant 0 : i32
    return %c0_i32, %c0_i32_0 : i32, i32
  }
  func.func @transform_26(%arg0: i32) -> (i32, i32) {
    %c0_i32 = arith.constant 0 : i32
    %c0_i32_0 = arith.constant 0 : i32
    %c0_i32_1 = arith.constant 0 : i32
    return %c0_i32, %c0_i32_0 : i32, i32
  }
  func.func @transform_27(%arg0: i32) -> (i32, i32) {
    %c0_i32 = arith.constant 0 : i32
    %c0_i32_0 = arith.constant 0 : i32
    %c0_i32_1 = arith.constant 0 : i32
    return %c0_i32, %c0_i32_0 : i32, i32
  }
  func.func @transform_28(%arg0: i32) -> (i32, i32) {
    %c0_i32 = arith.constant 0 : i32
    %c0_i32_0 = arith.constant 0 : i32
    %c0_i32_1 = arith.constant 0 : i32
    return %c0_i32, %c0_i32_0 : i32, i32
  }
  func.func @transform_29(%arg0: i32) -> (i32, i32) {
    %c0_i32 = arith.constant 0 : i32
    %c0_i32_0 = arith.constant 0 : i32
    return %arg0, %c0_i32 : i32, i32
  }
}

</mosaic_0001>

<bundles_post_ra>
// kernel: tpu_custom_call.1
= control target key start
LH: loop header
LB: loop body
LE: loop exit
PB: predicated region body
PF: predicated region fallthrough
CT: control target
= control target key end

     0   :  { %s9744_s6 = smov 1   ;;  %s9745_s10 = smov 2   ;;  %s12793_s0 = inlined_call_operand.smem [shape: u32[30], index: -1, kind: input, shape index: {}] }
   0x1   :  { %s9782_s5 = sld [smem:[%s12793_s0]]   ;;  %s9746_s14 = smov 3  }
   0x2   :  { %s9787_s9 = sld [smem:[%s12793_s0 + %s9744_s6]]   ;;  %s9747_s18 = smov 4  }
   0x3   :  { %s9792_s13 = sld [smem:[%s12793_s0 + %s9745_s10]]   ;;  %s9748_s22 = smov 5  }
   0x4   :  { %s9797_s17 = sld [smem:[%s12793_s0 + %s9746_s14]]   ;;  %s9749_s26 = smov 6  }
   0x5   :  { %s9802_s21 = sld [smem:[%s12793_s0 + %s9747_s18]]   ;;  %s9750_s30 = smov 7  }
   0x6   :  { %s9807_s25 = sld [smem:[%s12793_s0 + %s9748_s22]]   ;;  %s9751_s4 = smov 8  }
   0x7   :  { %12845 = sst [smem:[#allocation5_spill]] %s9782_s5  ;;  %s9752_s10 = smov 9  }
   0x8   :  { %12846 = sst [smem:[#allocation6_spill]] %s9787_s9  ;;  %s9753_s15 = smov 10  }
   0x9   :  { %s9812_s29 = sld [smem:[%s12793_s0 + %s9749_s26]]   ;;  %s9754_s20 = smov 11  }
   0xa   :  { %s9817_s3 = sld [smem:[%s12793_s0 + %s9750_s30]]   ;;  %s9755_s26 = smov 12  }
   0xb   :  { %s9822_s8 = sld [smem:[%s12793_s0 + %s9751_s4]]   ;;  %s9756_s1 = smov 13  }
   0xc   :  { %s9827_s14 = sld [smem:[%s12793_s0 + %s9752_s10]]   ;;  %s9757_s7 = smov 14  }
   0xd   :  { %s9832_s19 = sld [smem:[%s12793_s0 + %s9753_s15]]   ;;  %s9758_s15 = smov 15  }
   0xe   :  { %s9837_s24 = sld [smem:[%s12793_s0 + %s9754_s20]]   ;;  %s9759_s22 = smov 16  }
   0xf   :  { %s9842_s30 = sld [smem:[%s12793_s0 + %s9755_s26]]   ;;  %s9760_s28 = smov 17  }
  0x10   :  { %12847 = sst [smem:[#allocation7_spill]] %s9817_s3 }
  0x11   :  { %12848 = sst [smem:[#allocation8_spill]] %s9822_s8 }
  0x12   :  { %s9847_s6 = sld [smem:[%s12793_s0 + %s9756_s1]]  }
  0x13   :  { %s9852_s12 = sld [smem:[%s12793_s0 + %s9757_s7]]   ;;  %s9761_s7 = smov 18  }
  0x14   :  { %s9857_s20 = sld [smem:[%s12793_s0 + %s9758_s15]]   ;;  %s9762_s15 = smov 19  }
  0x15   :  { %12849 = sst [smem:[#allocation9_spill]] %s9842_s30 }
  0x16   :  { %s9862_s27 = sld [smem:[%s12793_s0 + %s9759_s22]]   ;;  %s9763_s22 = smov 20  }
  0x17   :  { %s9867_s4 = sld [smem:[%s12793_s0 + %s9760_s28]]   ;;  %s9764_s28 = smov 21  }
  0x18   :  { %12850 = sst [smem:[#allocation10_spill]] %s9847_s6 }
  0x19   :  { %12851 = sst [smem:[#allocation11_spill]] %s9852_s12 }
  0x1a   :  { %s9872_s12 = sld [smem:[%s12793_s0 + %s9761_s7]]   ;;  %s9765_s7 = smov 22  }
  0x1b   :  { %s9877_s30 = sld [smem:[%s12793_s0 + %s9762_s15]]   ;;  %s9766_s15 = smov 23  }
  0x1c   :  { %12852 = sst [smem:[#allocation12_spill]] %s9862_s27 }
  0x1d   :  { %12853 = sst [smem:[#allocation13_spill]] %s9867_s4 }
  0x1e   :  { %s9882_s27 = sld [smem:[%s12793_s0 + %s9763_s22]]   ;;  %s9767_s22 = smov 24  }
  0x1f   :  { %s9887_s4 = sld [smem:[%s12793_s0 + %s9764_s28]]   ;;  %s9768_s28 = smov 27  }
  0x20   :  { %12854 = sst [smem:[#allocation14_spill]] %s9872_s12 }
  0x21   :  { %12855 = sst [smem:[#allocation15_spill]] %s9877_s30 }
  0x22   :  { %s9892_s12 = sld [smem:[%s12793_s0 + %s9765_s7]]   ;;  %s9769_s7 = smov 28  }
  0x23   :  { %s9897_s30 = sld [smem:[%s12793_s0 + %s9766_s15]]   ;;  %s9770_s15 = smov 29  }
  0x24   :  { %12856 = sst [smem:[#allocation16_spill]] %s9882_s27 }
  0x25   :  { %12857 = sst [smem:[#allocation17_spill]] %s9887_s4 }
  0x26   :  { %s9902_s27 = sld [smem:[%s12793_s0 + %s9767_s22]]  }
  0x27   :  { %s9907_s4 = sld [smem:[%s12793_s0 + %s9768_s28]]  }
  0x28   :  { %12858 = sst [smem:[#allocation18_spill]] %s9892_s12 }
  0x29   :  { %12859 = sst [smem:[#allocation19_spill]] %s9897_s30 }
  0x2a   :  { %s9912_s12 = sld [smem:[%s12793_s0 + %s9769_s7]]  }
  0x2b   :  { %s9917_s30 = sld [smem:[%s12793_s0 + %s9770_s15]]  }
  0x2d   :  { %12860 = sst [smem:[#allocation20_spill]] %s9907_s4 }
  0x2e   :  { %64 = vsyncpa [#allocation3], 0 }
  0x2f   :  { %66 = vsyncpa [#allocation3 + $0x1], 0  ;;  %s9919_s22 = smov 0   ;;  %s9921_s23 = smov 0  }
  0x30   :  { %s9923_s26 = smov 0   ;;  %s9925_s28 = smov 0  }
  0x31 LB: > { %s12861_s9 = sld [smem:[#allocation6_spill]]  ;;  %s9940_s0 = sadd.s32 4294967295, %s9742_s28   ;;  %s9730_s22 = sphi %s9919_s22, %s13218_s22   ;;  %s9742_s28 = sphi %s9925_s28, %s13221_s28   ;;  %s9738_s26 = sphi %s9923_s26, %s13220_s26   ;;  %s9734_s23 = sphi %s9921_s23, %s13219_s23  }
  0x32   : > { %s12862_s8 = sld [smem:[#allocation8_spill]]  ;;  %s6840_s1 = sadd.s32 4294967294, %s9742_s28  }
  0x33   : > { %s12863_s6 = sld [smem:[#allocation10_spill]]  ;;  %s9944_s2 = sadd.s32 1, %s9742_s28  }
  0x34   : > { %s12864_s4 = sld [smem:[#allocation20_spill]]  ;;  %s693_s7 = sadd.s32 1, %s9738_s26 }
  0x35   : > { %s12865_s3 = sld [smem:[#allocation7_spill]]  ;;  %s690_s10 = ssub.s32 %s9742_s28, %s9944_s2 }
  0x36   : > { %p703_p0 = scmp.ne.s32.totalorder %s9738_s26, %s9734_s23  ;;  %p691_p1 = scmp.eq.s32.totalorder %s690_s10, 0 }
  0x37   : > { %p704_p2 = scmp.eq.s32.totalorder %s9940_s0, 1  ;;  %p709_p3 = scmp.ne.s32.totalorder %s9734_s23, %s9730_s22 }
  0x38   : > { %p710_p4 = scmp.eq.s32.totalorder %s6840_s1, 1  ;;  %p6843_p7 = scmp.ge.s32.totalorder %s9742_s28, 1 }
  0x39   : > { %s9955_s11 = scalar_select %p691_p1, %s9738_s26, %s693_s7  }
  0x3a   : > { %p9957_p5 = por %p704_p2, %p703_p0  ;;  %p9961_p6 = por %p710_p4, %p709_p3 }
  0x3b   : > { %p821_p8 = scmp.lt.s32.totalorder %s9742_s28, 3 }
  0x3d   : > { %p822_p9 = pnand %p6843_p7, %p821_p8 }
  0x3f   : > { %825 = sbr.rel (%p822_p9) target bundleno = 2062 (0x80e), region = 136 }
  0x44   : > { %v959_v0 = vld [vmem:[%s9792_s13 + $0x58] sm:$0xff]  ;;  %v958_v1 = vld [vmem:[%s9792_s13 + $0x50] sm:$0xff]  ;;  %v957_v2 = vld [vmem:[%s9792_s13 + $0x48] sm:$0xff]  ;;  %s6845_s18 = sshll.u32 %s9940_s0, 5  ;;  %s12868_s5 = sld [smem:[#allocation5_spill]]  ;;  %vm960_vm0 = vcmask 785408  }
  0x45   : > { %9556 = vmatprep.subr.mxu1 %v959_v0  ;;  %8266 = vmatprep.subr.mxu0 %v959_v0  ;;  %v956_v3 = vld [vmem:[%s9792_s13 + $0x40] sm:$0xff]  ;;  %v955_v4 = vld [vmem:[%s9792_s13 + $0x38] sm:$0xff]  ;;  %p898_p10 = scmp.lt.s32.totalorder %s6845_s18, 63  ;;  %v954_v5 = vld [vmem:[%s9792_s13 + $0x30] sm:$0xff]  ;;  %vm3002_vm1 = vcmask 1045504   ;;  %vm2905_vm2 = vcmask 113664  }
  0x46   : > { %9568 = vmatpush3.msra.mxu1 %v959_v0  ;;  %8267 = vmatpush3.msra.mxu0 %v959_v0  ;;  %v953_v6 = vld [vmem:[%s9792_s13 + $0x28] sm:$0xff]  ;;  %v952_v7 = vld [vmem:[%s9792_s13 + $0x20] sm:$0xff]  ;;  %v951_v8 = vld [vmem:[%s9792_s13 + $0x18] sm:$0xff]  ;;  %vm3278_vm3 = vcmask 523264   ;;  %s13007_s10 = sld [smem:[#allocation9_spill]]  ;;  %vm5615_vm4 = vcmask 195584  }
  0x47   : > { %9557 = vmatprep.subr.mxu1 %v958_v1  ;;  %8268 = vmatprep.subr.mxu0 %v958_v1  ;;  %s13223_s18 = smov (!%p898_p10, %s6845_s18), 63  ;;  %v950_v9 = vld [vmem:[%s9792_s13 + $0x10] sm:$0xff]  ;;  %v949_v10 = vld [vmem:[%s9792_s13 + $0x8] sm:$0xff]  ;;  %v948_v11 = vld [vmem:[%s9792_s13] sm:$0xff] }
  0x48   : > { %9569 = vmatpush3.msra.mxu1 %v958_v1  ;;  %8269 = vmatpush3.msra.mxu0 %v958_v1  ;;  %s6846_s1 = sshll.u32 %s13223_s18, 3  ;;  %v1293_v15 = vld [vmem:[%s9797_s17 + $0x58] sm:$0xff]  ;;  %v1292_v19 = vld [vmem:[%s9797_s17 + $0x50] sm:$0xff]  ;;  %v1291_v24 = vld [vmem:[%s9797_s17 + $0x48] sm:$0xff]  ;;  %s13013_s18 = sld [smem:[#allocation13_spill]] }
  0x49   : > { %9558 = vmatprep.subr.mxu1 %v957_v2  ;;  %8270 = vmatprep.subr.mxu0 %v957_v2  ;;  %v1562_v17 = vld [vmem:[%s9802_s21 + $0x58] sm:$0xff]  ;;  %v1561_v23 = vld [vmem:[%s9802_s21 + $0x50] sm:$0xff]  ;;  %v1290_v28 = vld [vmem:[%s9797_s17 + $0x40] sm:$0xff] }
  0x4a   : > { %9570 = vmatpush3.msra.mxu1 %v957_v2  ;;  %8271 = vmatpush3.msra.mxu0 %v957_v2  ;;  %s9980_s7 = scalar_lea.vmem %s12868_s5, %s6846_s1  ;;  %v1560_v29 = vld [vmem:[%s9802_s21 + $0x48] sm:$0xff]  ;;  %v1559_v31 = vld [vmem:[%s9802_s21 + $0x40] sm:$0xff]  ;;  %v1289_v33 = vld [vmem:[%s9797_s17 + $0x38] sm:$0xff]  ;;  %s13014_s1 = sld [smem:[#allocation14_spill]] }
  0x4b   : > { %9559 = vmatprep.subr.mxu1 %v956_v3  ;;  %8272 = vmatprep.subr.mxu0 %v956_v3  ;;  %v9984_v12 = vld [vmem:[%s9980_s7 + $0x80] sm:$0xff]  ;;  %v9990_v14 = vld [vmem:[%s9980_s7 + $0x88] sm:$0xff]  ;;  %v10002_v18 = vld [vmem:[%s9980_s7 + $0x90] sm:$0xff] }
  0x4c   : > { %9571 = vmatpush3.msra.mxu1 %v956_v3  ;;  %8273 = vmatpush3.msra.mxu0 %v956_v3  ;;  %v9987_v13 = vld [vmem:[%s9980_s7] sm:$0xff]  ;;  %v9996_v16 = vld [vmem:[%s9980_s7 + $0x8] sm:$0xff]  ;;  %v10010_v20 = vld [vmem:[%s9980_s7 + $0x10] sm:$0xff] }
  0x4d   : > { %9560 = vmatprep.subr.mxu1 %v955_v4  ;;  %8274 = vmatprep.subr.mxu0 %v955_v4  ;;  %v10013_v21 = vld [vmem:[%s9980_s7 + $0x98] sm:$0xff]  ;;  %v10027_v25 = vld [vmem:[%s9980_s7 + $0xa0] sm:$0xff]  ;;  %v10035_v27 = vld [vmem:[%s9980_s7 + $0xa8] sm:$0xff] }
  0x4e   : > { %9572 = vmatpush3.msra.mxu1 %v955_v4  ;;  %8275 = vmatpush3.msra.mxu0 %v955_v4  ;;  %v10018_v22 = vld [vmem:[%s9980_s7 + $0x18] sm:$0xff]  ;;  %v10032_v26 = vld [vmem:[%s9980_s7 + $0x20] sm:$0xff]  ;;  %v10042_v30 = vld [vmem:[%s9980_s7 + $0x28] sm:$0xff] }
  0x4f   : > { %9561 = vmatprep.subr.mxu1 %v954_v5  ;;  %8276 = vmatprep.subr.mxu0 %v954_v5  ;;  %v10050_v32 = vld [vmem:[%s9980_s7 + $0xb0] sm:$0xff]  ;;  %v10059_v35 = vld [vmem:[%s9980_s7 + $0xb8] sm:$0xff]  ;;  %v10073_v39 = vld [vmem:[%s9980_s7 + $0xc0] sm:$0xff] }
  0x50   : > { %9573 = vmatpush3.msra.mxu1 %v954_v5  ;;  %8277 = vmatpush3.msra.mxu0 %v954_v5  ;;  %v10056_v34 = vld [vmem:[%s9980_s7 + $0x30] sm:$0xff]  ;;  %v10064_v36 = vld [vmem:[%s9980_s7 + $0x38] sm:$0xff]  ;;  %v10078_v40 = vld [vmem:[%s9980_s7 + $0x40] sm:$0xff] }
  0x51   : > { %9562 = vmatprep.subr.mxu1 %v953_v6  ;;  %8278 = vmatprep.subr.mxu0 %v953_v6  ;;  %v1558_v37 = vld [vmem:[%s9802_s21 + $0x38] sm:$0xff]  ;;  %v1288_v38 = vld [vmem:[%s9797_s17 + $0x30] sm:$0xff]  ;;  %v10081_v41 = vld [vmem:[%s9980_s7 + $0xc8] sm:$0xff] }
  0x52   : > { %9574 = vmatpush3.msra.mxu1 %v953_v6  ;;  %8279 = vmatpush3.msra.mxu0 %v953_v6  ;;  %v1287_v42 = vld [vmem:[%s9797_s17 + $0x28] sm:$0xff]  ;;  %v1557_v43 = vld [vmem:[%s9802_s21 + $0x30] sm:$0xff]  ;;  %v1286_v47 = vld [vmem:[%s9797_s17 + $0x20] sm:$0xff] }
  0x53   : > { %9563 = vmatprep.subr.mxu1 %v952_v7  ;;  %8280 = vmatprep.subr.mxu0 %v952_v7  ;;  %v10088_v44 = vld [vmem:[%s9980_s7 + $0x48] sm:$0xff]  ;;  %v10096_v46 = vld [vmem:[%s9980_s7 + $0xd0] sm:$0xff]  ;;  %v10105_v49 = vld [vmem:[%s9980_s7 + $0xd8] sm:$0xff] }
  0x54   : > { %9575 = vmatpush3.msra.mxu1 %v952_v7  ;;  %8281 = vmatpush3.msra.mxu0 %v952_v7  ;;  %v1556_v45 = vld [vmem:[%s9802_s21 + $0x28] sm:$0xff]  ;;  %v10102_v48 = vld [vmem:[%s9980_s7 + $0x50] sm:$0xff]  ;;  %v10110_v50 = vld [vmem:[%s9980_s7 + $0x58] sm:$0xff] }
  0x55   : > { %9564 = vmatprep.subr.mxu1 %v951_v8  ;;  %8282 = vmatprep.subr.mxu0 %v951_v8  ;;  %v1555_v51 = vld [vmem:[%s9802_s21 + $0x20] sm:$0xff]  ;;  %v1285_v52 = vld [vmem:[%s9797_s17 + $0x18] sm:$0xff]  ;;  %v10127_v55 = vld [vmem:[%s9980_s7 + $0xe8] sm:$0xff] }
  0x56   : > { %9576 = vmatpush3.msra.mxu1 %v951_v8  ;;  %8283 = vmatpush3.msra.mxu0 %v951_v8  ;;  %v10119_v53 = vld [vmem:[%s9980_s7 + $0xe0] sm:$0xff]  ;;  %v1284_v56 = vld [vmem:[%s9797_s17 + $0x10] sm:$0xff]  ;;  %v1554_v57 = vld [vmem:[%s9802_s21 + $0x18] sm:$0xff] }
  0x57   : > { %9565 = vmatprep.subr.mxu1 %v950_v9  ;;  %8284 = vmatprep.subr.mxu0 %v950_v9  ;;  %v10124_v54 = vld [vmem:[%s9980_s7 + $0x60] sm:$0xff]  ;;  %v10134_v58 = vld [vmem:[%s9980_s7 + $0x68] sm:$0xff]  ;;  %v1553_v59 = vld [vmem:[%s9802_s21 + $0x10] sm:$0xff] }
  0x58   : > { %9577 = vmatpush3.msra.mxu1 %v950_v9  ;;  %8285 = vmatpush3.msra.mxu0 %v950_v9  ;;  %v10142_v60 = vld [vmem:[%s9980_s7 + $0xf0] sm:$0xff]  ;;  %v1283_v61 = vld [vmem:[%s9797_s17 + $0x8] sm:$0xff]  ;;  %v10151_v63 = vld [vmem:[%s9980_s7 + $0xf8] sm:$0xff] }
  0x59   : > { %9566 = vmatprep.subr.mxu1 %v949_v10  ;;  %8286 = vmatprep.subr.mxu0 %v949_v10  ;;  %v10148_v62 = vld [vmem:[%s9980_s7 + $0x70] sm:$0xff]  ;;  %v10156_v0 = vld [vmem:[%s9980_s7 + $0x78] sm:$0xff]  ;;  %v1552_v1 = vld [vmem:[%s9802_s21 + $0x8] sm:$0xff] }
  0x5a   : > { %9578 = vmatpush3.msra.mxu1 %v949_v10  ;;  %8287 = vmatpush3.msra.mxu0 %v949_v10  ;;  %v1282_v2 = vld [vmem:[%s9797_s17] sm:$0xff]  ;;  %v1831_v4 = vld [vmem:[%s9807_s25 + $0x58] sm:$0xff]  ;;  %v1830_v6 = vld [vmem:[%s9807_s25 + $0x50] sm:$0xff] }
  0x5b   : > { %9567 = vmatprep.subr.mxu1 %v948_v11  ;;  %8288 = vmatprep.subr.mxu0 %v948_v11  ;;  %v1551_v3 = vld [vmem:[%s9802_s21] sm:$0xff]  ;;  %v2100_v5 = vld [vmem:[%s9812_s29 + $0x58] sm:$0xff]  ;;  %v2099_v7 = vld [vmem:[%s9812_s29 + $0x50] sm:$0xff] }
  0x5c   : > { %9579 = vmatpush3.msra.mxu1 %v948_v11  ;;  %8314 = vmatprep.mubr.msk.f32.mxu1 %vm960_vm0, %v9984_v12  ;;  %v1829_v8 = vld [vmem:[%s9807_s25 + $0x48] sm:$0xff]  ;;  %v1828_v10 = vld [vmem:[%s9807_s25 + $0x40] sm:$0xff] }
  0x5d   : > { %8289 = vmatpush3.msra.mxu0 %v948_v11  ;;  %8290 = vmatprep.mubr.msk.f32.mxu0 %vm960_vm0, %v9987_v13  ;;  %v2098_v9 = vld [vmem:[%s9812_s29 + $0x48] sm:$0xff]  ;;  %v2097_v11 = vld [vmem:[%s9812_s29 + $0x40] sm:$0xff] }
  0x5e   : > { %8315 = vmatmul.mubr.msk.f32.vlgmr.msra.gmra.mxu1 %vm960_vm0, %v9990_v14  ;;  %8338 = vmatprep.subr.mxu1 %v1293_v15 }
  0x5f   : > { %8291 = vmatmul.mubr.msk.f32.vlgmr.msra.gmra.mxu0 %vm960_vm0, %v9996_v16  ;;  %8339 = vmatpush3.msra.mxu1 %v1293_v15  ;;  %v1827_v15 = vld [vmem:[%s9807_s25 + $0x38] sm:$0xff] }
  0x60   : > { %8410 = vmatprep.subr.mxu0 %v1562_v17  ;;  %8317 = vmatprep.mubr.msk.f32.mxu1 %vm960_vm0, %v10002_v18 }
  0x61   : > { %8340 = vmatprep.subr.mxu1 %v1292_v19  ;;  %8411 = vmatpush3.msra.mxu0 %v1562_v17  ;;  %v2096_v17 = vld [vmem:[%s9812_s29 + $0x38] sm:$0xff] }
  0x62   : > { %8293 = vmatprep.mubr.msk.f32.mxu0 %vm960_vm0, %v10010_v20  ;;  %8318 = vmatmul.mubr.msk.f32.gmra.mxu1 %vm960_vm0, %v10013_v21 }
  0x63   : > { %8341 = vmatpush3.msra.mxu1 %v1292_v19  ;;  %8294 = vmatmul.mubr.msk.f32.gmra.mxu0 %vm960_vm0, %v10018_v22  ;;  %v1826_v19 = vld [vmem:[%s9807_s25 + $0x30] sm:$0xff] }
  0x64   : > { %8412 = vmatprep.subr.mxu0 %v1561_v23  ;;  %8342 = vmatprep.subr.mxu1 %v1291_v24 }
  0x65   : > { %8413 = vmatpush3.msra.mxu0 %v1561_v23  ;;  %8320 = vmatprep.mubr.msk.f32.mxu1 %vm960_vm0, %v10027_v25  ;;  %v2095_v23 = vld [vmem:[%s9812_s29 + $0x30] sm:$0xff] }
  0x66   : > { %8343 = vmatpush3.msra.mxu1 %v1291_v24  ;;  %8296 = vmatprep.mubr.msk.f32.mxu0 %vm960_vm0, %v10032_v26  ;;  %v1825_v24 = vld [vmem:[%s9807_s25 + $0x28] sm:$0xff] }
  0x67   : > { %8321 = vmatmul.mubr.msk.f32.gmra.mxu1 %vm960_vm0, %v10035_v27  ;;  %8344 = vmatprep.subr.mxu1 %v1290_v28 }
  0x68   : > { %8414 = vmatprep.subr.mxu0 %v1560_v29  ;;  %8297 = vmatmul.mubr.msk.f32.gmra.mxu0 %vm960_vm0, %v10042_v30 }
  0x69   : > { %8345 = vmatpush3.msra.mxu1 %v1290_v28  ;;  %8415 = vmatpush3.msra.mxu0 %v1560_v29  ;;  %v2094_v28 = vld [vmem:[%s9812_s29 + $0x28] sm:$0xff]  ;;  %v1824_v29 = vld [vmem:[%s9807_s25 + $0x20] sm:$0xff] }
  0x6a   : > { %8416 = vmatprep.subr.mxu0 %v1559_v31  ;;  %8323 = vmatprep.mubr.msk.f32.mxu1 %vm960_vm0, %v10050_v32 }
  0x6b   : > { %8346 = vmatprep.subr.mxu1 %v1289_v33  ;;  %8417 = vmatpush3.msra.mxu0 %v1559_v31  ;;  %v2093_v31 = vld [vmem:[%s9812_s29 + $0x20] sm:$0xff] }
  0x6c   : > { %8299 = vmatprep.mubr.msk.f32.mxu0 %vm960_vm0, %v10056_v34  ;;  %8324 = vmatmul.mubr.msk.f32.gmra.mxu1 %vm960_vm0, %v10059_v35 }
  0x6d   : > { %8347 = vmatpush3.msra.mxu1 %v1289_v33  ;;  %8300 = vmatmul.mubr.msk.f32.gmra.mxu0 %vm960_vm0, %v10064_v36  ;;  %v1823_v33 = vld [vmem:[%s9807_s25 + $0x18] sm:$0xff] }
  0x6e   : > { %8418 = vmatprep.subr.mxu0 %v1558_v37  ;;  %8348 = vmatprep.subr.mxu1 %v1288_v38 }
  0x6f   : > { %8419 = vmatpush3.msra.mxu0 %v1558_v37  ;;  %8326 = vmatprep.mubr.msk.f32.mxu1 %vm960_vm0, %v10073_v39  ;;  %v2092_v37 = vld [vmem:[%s9812_s29 + $0x18] sm:$0xff] }
  0x70   : > { %8349 = vmatpush3.msra.mxu1 %v1288_v38  ;;  %8302 = vmatprep.mubr.msk.f32.mxu0 %vm960_vm0, %v10078_v40  ;;  %v1822_v38 = vld [vmem:[%s9807_s25 + $0x10] sm:$0xff] }
  0x71   : > { %8327 = vmatmul.mubr.msk.f32.gmra.mxu1 %vm960_vm0, %v10081_v41  ;;  %8350 = vmatprep.subr.mxu1 %v1287_v42 }
  0x72   : > { %8420 = vmatprep.subr.mxu0 %v1557_v43  ;;  %8303 = vmatmul.mubr.msk.f32.gmra.mxu0 %vm960_vm0, %v10088_v44 }
  0x73   : > { %8351 = vmatpush3.msra.mxu1 %v1287_v42  ;;  %8421 = vmatpush3.msra.mxu0 %v1557_v43  ;;  %v2091_v42 = vld [vmem:[%s9812_s29 + $0x10] sm:$0xff]  ;;  %v1821_v43 = vld [vmem:[%s9807_s25 + $0x8] sm:$0xff] }
  0x74   : > { %8422 = vmatprep.subr.mxu0 %v1556_v45  ;;  %8329 = vmatprep.mubr.msk.f32.mxu1 %vm960_vm0, %v10096_v46 }
  0x75   : > { %8352 = vmatprep.subr.mxu1 %v1286_v47  ;;  %8423 = vmatpush3.msra.mxu0 %v1556_v45  ;;  %v2090_v45 = vld [vmem:[%s9812_s29 + $0x8] sm:$0xff] }
  0x76   : > { %8305 = vmatprep.mubr.msk.f32.mxu0 %vm960_vm0, %v10102_v48  ;;  %8330 = vmatmul.mubr.msk.f32.gmra.mxu1 %vm960_vm0, %v10105_v49 }
  0x77   : > { %8353 = vmatpush3.msra.mxu1 %v1286_v47  ;;  %8306 = vmatmul.mubr.msk.f32.gmra.mxu0 %vm960_vm0, %v10110_v50  ;;  %v1820_v47 = vld [vmem:[%s9807_s25] sm:$0xff] }
  0x78   : > { %8424 = vmatprep.subr.mxu0 %v1555_v51  ;;  %8354 = vmatprep.subr.mxu1 %v1285_v52 }
  0x79   : > { %8425 = vmatpush3.msra.mxu0 %v1555_v51  ;;  %8332 = vmatprep.mubr.msk.f32.mxu1 %vm960_vm0, %v10119_v53  ;;  %v2089_v51 = vld [vmem:[%s9812_s29] sm:$0xff] }
  0x7a   : > { %8355 = vmatpush3.msra.mxu1 %v1285_v52  ;;  %8308 = vmatprep.mubr.msk.f32.mxu0 %vm960_vm0, %v10124_v54  ;;  %v2369_v52 = vld [vmem:[%s12865_s3 + $0x58] sm:$0xff] }
  0x7b   : > { %8333 = vmatmul.mubr.msk.f32.gmra.mxu1 %vm960_vm0, %v10127_v55  ;;  %8356 = vmatprep.subr.mxu1 %v1284_v56 }
  0x7c   : > { %8426 = vmatprep.subr.mxu0 %v1554_v57  ;;  %8309 = vmatmul.mubr.msk.f32.gmra.mxu0 %vm960_vm0, %v10134_v58 }
  0x7d   : > { %8357 = vmatpush3.msra.mxu1 %v1284_v56  ;;  %8427 = vmatpush3.msra.mxu0 %v1554_v57  ;;  %v2638_v56 = vld [vmem:[%s12862_s8 + $0x58] sm:$0xff]  ;;  %v2368_v57 = vld [vmem:[%s12865_s3 + $0x50] sm:$0xff] }
  0x7e   : > { %8428 = vmatprep.subr.mxu0 %v1553_v59  ;;  %8335 = vmatprep.mubr.msk.f32.mxu1 %vm960_vm0, %v10142_v60 }
  0x7f   : > { %8358 = vmatprep.subr.mxu1 %v1283_v61  ;;  %8429 = vmatpush3.msra.mxu0 %v1553_v59  ;;  %v2637_v59 = vld [vmem:[%s12862_s8 + $0x50] sm:$0xff] }
  0x80   : > { %8311 = vmatprep.mubr.msk.f32.mxu0 %vm960_vm0, %v10148_v62  ;;  %8336 = vmatmul.mubr.msk.f32.gmra.mxu1 %vm960_vm0, %v10151_v63 }
  0x81   : > { %8359 = vmatpush3.msra.mxu1 %v1283_v61  ;;  %8312 = vmatmul.mubr.msk.f32.gmra.mxu0 %vm960_vm0, %v10156_v0  ;;  %v2367_v61 = vld [vmem:[%s12865_s3 + $0x48] sm:$0xff] }
  0x82   : > { %8430 = vmatprep.subr.mxu0 %v1552_v1  ;;  %8360 = vmatprep.subr.mxu1 %v1282_v2 }
  0x83   : > { %8431 = vmatpush3.msra.mxu0 %v1552_v1  ;;  %8361 = vmatpush3.msra.mxu1 %v1282_v2  ;;  %v2636_v1 = vld [vmem:[%s12862_s8 + $0x48] sm:$0xff]  ;;  %v2366_v2 = vld [vmem:[%s12865_s3 + $0x40] sm:$0xff] }
  0x84   : > { %8362 = vmatprep.mubr.msk.f32.mxu1 %vm960_vm0, %v9987_v13  ;;  %8432 = vmatprep.subr.mxu0 %v1551_v3 }
  0x85   : > { %8363 = vmatmul.mubr.msk.f32.vlgmr.msra.gmra.mxu1 %vm960_vm0, %v9996_v16  ;;  %8433 = vmatpush3.msra.mxu0 %v1551_v3  ;;  %v2635_v3 = vld [vmem:[%s12862_s8 + $0x40] sm:$0xff] }
  0x86   : > { %8434 = vmatprep.mubr.msk.f32.mxu0 %vm960_vm0, %v9987_v13  ;;  %8482 = vmatprep.subr.mxu1 %v1831_v4 }
  0x87   : > { %8435 = vmatmul.mubr.msk.f32.vlgmr.msra.gmra.mxu0 %vm960_vm0, %v9996_v16  ;;  %8483 = vmatpush3.msra.mxu1 %v1831_v4  ;;  %v2365_v4 = vld [vmem:[%s12865_s3 + $0x38] sm:$0xff] }
  0x88   : > { %8554 = vmatprep.subr.mxu0 %v2100_v5  ;;  %8365 = vmatprep.mubr.msk.f32.mxu1 %vm960_vm0, %v10010_v20 }
  0x89   : > { %8555 = vmatpush3.msra.mxu0 %v2100_v5  ;;  %8366 = vmatmul.mubr.msk.f32.gmra.mxu1 %vm960_vm0, %v10018_v22  ;;  %v2634_v5 = vld [vmem:[%s12862_s8 + $0x38] sm:$0xff] }
  0x8a   : > { %8437 = vmatprep.mubr.msk.f32.mxu0 %vm960_vm0, %v10010_v20  ;;  %8484 = vmatprep.subr.mxu1 %v1830_v6 }
  0x8b   : > { %8438 = vmatmul.mubr.msk.f32.gmra.mxu0 %vm960_vm0, %v10018_v22  ;;  %8368 = vmatprep.mubr.msk.f32.mxu1 %vm960_vm0, %v10032_v26 }
  0x8c   : > { %8485 = vmatpush3.msra.mxu1 %v1830_v6  ;;  %8440 = vmatprep.mubr.msk.f32.mxu0 %vm960_vm0, %v10032_v26  ;;  %v2364_v6 = vld [vmem:[%s12865_s3 + $0x30] sm:$0xff] }
  0x8d   : > { %8369 = vmatmul.mubr.msk.f32.gmra.mxu1 %vm960_vm0, %v10042_v30  ;;  %8556 = vmatprep.subr.mxu0 %v2099_v7 }
  0x8e   : > { %8557 = vmatpush3.msra.mxu0 %v2099_v7  ;;  %8371 = vmatprep.mubr.msk.f32.mxu1 %vm960_vm0, %v10056_v34  ;;  %v2633_v7 = vld [vmem:[%s12862_s8 + $0x30] sm:$0xff] }
  0x8f   : > { %8441 = vmatmul.mubr.msk.f32.gmra.mxu0 %vm960_vm0, %v10042_v30  ;;  %8486 = vmatprep.subr.mxu1 %v1829_v8 }
  0x90   : > { %8443 = vmatprep.mubr.msk.f32.mxu0 %vm960_vm0, %v10056_v34  ;;  %8487 = vmatpush3.msra.mxu1 %v1829_v8  ;;  %v2363_v8 = vld [vmem:[%s12865_s3 + $0x28] sm:$0xff] }
  0x91   : > { %8372 = vmatmul.mubr.msk.f32.gmra.mxu1 %vm960_vm0, %v10064_v36  ;;  %8558 = vmatprep.subr.mxu0 %v2098_v9 }
  0x92   : > { %8559 = vmatpush3.msra.mxu0 %v2098_v9  ;;  %8374 = vmatprep.mubr.msk.f32.mxu1 %vm960_vm0, %v10078_v40  ;;  %v2632_v9 = vld [vmem:[%s12862_s8 + $0x28] sm:$0xff] }
  0x93   : > { %8444 = vmatmul.mubr.msk.f32.gmra.mxu0 %vm960_vm0, %v10064_v36  ;;  %8488 = vmatprep.subr.mxu1 %v1828_v10 }
  0x94   : > { %8446 = vmatprep.mubr.msk.f32.mxu0 %vm960_vm0, %v10078_v40  ;;  %8489 = vmatpush3.msra.mxu1 %v1828_v10  ;;  %v2362_v10 = vld [vmem:[%s12865_s3 + $0x20] sm:$0xff] }
  0x95   : > { %8375 = vmatmul.mubr.msk.f32.gmra.mxu1 %vm960_vm0, %v10088_v44  ;;  %8560 = vmatprep.subr.mxu0 %v2097_v11 }
  0x96   : > { %8377 = vmatprep.mubr.msk.f32.mxu1 %vm960_vm0, %v10102_v48  ;;  %8561 = vmatpush3.msra.mxu0 %v2097_v11  ;;  %v2631_v11 = vld [vmem:[%s12862_s8 + $0x20] sm:$0xff] }
  0x97   : > { %8447 = vmatmul.mubr.msk.f32.gmra.mxu0 %vm960_vm0, %v10088_v44  ;;  %8490 = vmatprep.subr.mxu1 %v1827_v15 }
  0x98   : > { %8449 = vmatprep.mubr.msk.f32.mxu0 %vm960_vm0, %v10102_v48  ;;  %8491 = vmatpush3.msra.mxu1 %v1827_v15  ;;  %v2361_v15 = vld [vmem:[%s12865_s3 + $0x18] sm:$0xff] }
  0x99   : > { %8378 = vmatmul.mubr.msk.f32.gmra.mxu1 %vm960_vm0, %v10110_v50  ;;  %8562 = vmatprep.subr.mxu0 %v2096_v17 }
  0x9a   : > { %8380 = vmatprep.mubr.msk.f32.mxu1 %vm960_vm0, %v10124_v54  ;;  %8563 = vmatpush3.msra.mxu0 %v2096_v17  ;;  %v2630_v17 = vld [vmem:[%s12862_s8 + $0x18] sm:$0xff] }
  0x9b   : > { %8450 = vmatmul.mubr.msk.f32.gmra.mxu0 %vm960_vm0, %v10110_v50  ;;  %8492 = vmatprep.subr.mxu1 %v1826_v19 }
  0x9c   : > { %8452 = vmatprep.mubr.msk.f32.mxu0 %vm960_vm0, %v10124_v54  ;;  %8493 = vmatpush3.msra.mxu1 %v1826_v19  ;;  %v2360_v19 = vld [vmem:[%s12865_s3 + $0x10] sm:$0xff] }
  0x9d   : > { %8381 = vmatmul.mubr.msk.f32.gmra.mxu1 %vm960_vm0, %v10134_v58  ;;  %8564 = vmatprep.subr.mxu0 %v2095_v23 }
  0x9e   : > { %8383 = vmatprep.mubr.msk.f32.mxu1 %vm960_vm0, %v10148_v62  ;;  %8565 = vmatpush3.msra.mxu0 %v2095_v23  ;;  %v2629_v23 = vld [vmem:[%s12862_s8 + $0x10] sm:$0xff] }
  0x9f   : > { %8453 = vmatmul.mubr.msk.f32.gmra.mxu0 %vm960_vm0, %v10134_v58  ;;  %8494 = vmatprep.subr.mxu1 %v1825_v24 }
  0xa0   : > { %8455 = vmatprep.mubr.msk.f32.mxu0 %vm960_vm0, %v10148_v62  ;;  %8495 = vmatpush3.msra.mxu1 %v1825_v24  ;;  %v2359_v24 = vld [vmem:[%s12865_s3 + $0x8] sm:$0xff] }
  0xa1   : > { %8384 = vmatmul.mubr.msk.f32.gmra.mxu1 %vm960_vm0, %v10156_v0  ;;  %8566 = vmatprep.subr.mxu0 %v2094_v28 }
  0xa2   : > { %8386 = vmatprep.mubr.msk.f32.mxu1 %vm960_vm0, %v9984_v12  ;;  %8567 = vmatpush3.msra.mxu0 %v2094_v28  ;;  %v2628_v28 = vld [vmem:[%s12862_s8 + $0x8] sm:$0xff] }
  0xa3   : > { %8456 = vmatmul.mubr.msk.f32.gmra.mxu0 %vm960_vm0, %v10156_v0  ;;  %8496 = vmatprep.subr.mxu1 %v1824_v29 }
  0xa4   : > { %8458 = vmatprep.mubr.msk.f32.mxu0 %vm960_vm0, %v9984_v12  ;;  %8497 = vmatpush3.msra.mxu1 %v1824_v29  ;;  %v2358_v29 = vld [vmem:[%s12865_s3] sm:$0xff]  ;;  %s13046_s3 = sld [smem:[#allocation16_spill]] }
  0xa5   : > { %8387 = vmatmul.mubr.msk.f32.gmra.mxu1 %vm960_vm0, %v9990_v14  ;;  %8568 = vmatprep.subr.mxu0 %v2093_v31 }
  0xa6   : > { %8389 = vmatprep.mubr.msk.f32.mxu1 %vm960_vm0, %v10002_v18  ;;  %8569 = vmatpush3.msra.mxu0 %v2093_v31  ;;  %v2627_v31 = vld [vmem:[%s12862_s8] sm:$0xff]  ;;  %s9771_s8 = smov [#allocation2]  }
  0xa7   : > { %8459 = vmatmul.mubr.msk.f32.gmra.mxu0 %vm960_vm0, %v9990_v14  ;;  %8498 = vmatprep.subr.mxu1 %v1823_v33 }
  0xa8   : > { %8461 = vmatprep.mubr.msk.f32.mxu0 %vm960_vm0, %v10002_v18  ;;  %8499 = vmatpush3.msra.mxu1 %v1823_v33 }
  0xa9   : > { %8390 = vmatmul.mubr.msk.f32.gmra.mxu1 %vm960_vm0, %v10013_v21  ;;  %8570 = vmatprep.subr.mxu0 %v2092_v37 }
  0xaa   : > { %8392 = vmatprep.mubr.msk.f32.mxu1 %vm960_vm0, %v10027_v25  ;;  %8571 = vmatpush3.msra.mxu0 %v2092_v37 }
  0xab   : > { %8462 = vmatmul.mubr.msk.f32.gmra.mxu0 %vm960_vm0, %v10013_v21  ;;  %8500 = vmatprep.subr.mxu1 %v1822_v38 }
  0xac   : > { %8464 = vmatprep.mubr.msk.f32.mxu0 %vm960_vm0, %v10027_v25  ;;  %8501 = vmatpush3.msra.mxu1 %v1822_v38 }
  0xad   : > { %8393 = vmatmul.mubr.msk.f32.gmra.mxu1 %vm960_vm0, %v10035_v27  ;;  %8572 = vmatprep.subr.mxu0 %v2091_v42 }
  0xae   : > { %8395 = vmatprep.mubr.msk.f32.mxu1 %vm960_vm0, %v10050_v32  ;;  %8573 = vmatpush3.msra.mxu0 %v2091_v42 }
  0xaf   : > { %8465 = vmatmul.mubr.msk.f32.gmra.mxu0 %vm960_vm0, %v10035_v27  ;;  %8502 = vmatprep.subr.mxu1 %v1821_v43 }
  0xb0   : > { %8467 = vmatprep.mubr.msk.f32.mxu0 %vm960_vm0, %v10050_v32  ;;  %8503 = vmatpush3.msra.mxu1 %v1821_v43 }
  0xb1   : > { %8396 = vmatmul.mubr.msk.f32.gmra.mxu1 %vm960_vm0, %v10059_v35  ;;  %8574 = vmatprep.subr.mxu0 %v2090_v45 }
  0xb2   : > { %8398 = vmatprep.mubr.msk.f32.mxu1 %vm960_vm0, %v10073_v39  ;;  %8575 = vmatpush3.msra.mxu0 %v2090_v45 }
  0xb3   : > { %8468 = vmatmul.mubr.msk.f32.gmra.mxu0 %vm960_vm0, %v10059_v35  ;;  %8504 = vmatprep.subr.mxu1 %v1820_v47 }
  0xb4   : > { %8470 = vmatprep.mubr.msk.f32.mxu0 %vm960_vm0, %v10073_v39  ;;  %8505 = vmatpush3.msra.mxu1 %v1820_v47 }
  0xb5   : > { %8399 = vmatmul.mubr.msk.f32.gmra.mxu1 %vm960_vm0, %v10081_v41  ;;  %8576 = vmatprep.subr.mxu0 %v2089_v51 }
  0xb6   : > { %8401 = vmatprep.mubr.msk.f32.mxu1 %vm960_vm0, %v10096_v46  ;;  %8577 = vmatpush3.msra.mxu0 %v2089_v51 }
  0xb7   : > { %8471 = vmatmul.mubr.msk.f32.gmra.mxu0 %vm960_vm0, %v10081_v41  ;;  %8626 = vmatprep.subr.mxu1 %v2369_v52 }
  0xb8   : > { %8473 = vmatprep.mubr.msk.f32.mxu0 %vm960_vm0, %v10096_v46  ;;  %8698 = vmatprep.subr.mxu0 %v2638_v56 }
  0xb9   : > { %8402 = vmatmul.mubr.msk.f32.gmra.mxu1 %vm960_vm0, %v10105_v49 }
  0xba   : > { %8404 = vmatprep.mubr.msk.f32.mxu1 %vm960_vm0, %v10119_v53 }
  0xbb   : > { %8474 = vmatmul.mubr.msk.f32.gmra.mxu0 %vm960_vm0, %v10105_v49 }
  0xbc   : > { %8476 = vmatprep.mubr.msk.f32.mxu0 %vm960_vm0, %v10119_v53 }
  0xbd   : > { %8405 = vmatmul.mubr.msk.f32.gmra.mxu1 %vm960_vm0, %v10127_v55 }
  0xbe   : > { %8407 = vmatprep.mubr.msk.f32.mxu1 %vm960_vm0, %v10142_v60 }
  0xbf   : > { %8477 = vmatmul.mubr.msk.f32.gmra.mxu0 %vm960_vm0, %v10127_v55 }
  0xc0   : > { %8479 = vmatprep.mubr.msk.f32.mxu0 %vm960_vm0, %v10142_v60 }
  0xc1   : > { %8408 = vmatmul.mubr.msk.f32.gmra.mxu1 %vm960_vm0, %v10151_v63 }
  0xc2   : > { %8506 = vmatprep.mubr.msk.f32.mxu1 %vm960_vm0, %v9987_v13 }
  0xc3   : > { %8480 = vmatmul.mubr.msk.f32.gmra.mxu0 %vm960_vm0, %v10151_v63 }
  0xc4   : > { %8578 = vmatprep.mubr.msk.f32.mxu0 %vm960_vm0, %v9987_v13 }
  0xc5   : > { %8507 = vmatmul.mubr.msk.f32.vlgmr.msra.gmra.mxu1 %vm960_vm0, %v9996_v16 }
  0xc6   : > { %8627 = vmatpush3.msra.mxu1 %v2369_v52  ;;  %8509 = vmatprep.mubr.msk.f32.mxu1 %vm960_vm0, %v10010_v20 }
  0xc7   : > { %8579 = vmatmul.mubr.msk.f32.vlgmr.msra.gmra.mxu0 %vm960_vm0, %v9996_v16  ;;  %8628 = vmatprep.subr.mxu1 %v2368_v57 }
  0xc8   : > { %8699 = vmatpush3.msra.mxu0 %v2638_v56  ;;  %8581 = vmatprep.mubr.msk.f32.mxu0 %vm960_vm0, %v10010_v20 }
  0xc9   : > { %8510 = vmatmul.mubr.msk.f32.gmra.mxu1 %vm960_vm0, %v10018_v22  ;;  %8700 = vmatprep.subr.mxu0 %v2637_v59 }
  0xca   : > { %8512 = vmatprep.mubr.msk.f32.mxu1 %vm960_vm0, %v10032_v26  ;;  %8629 = vmatpush3.msra.mxu1 %v2368_v57 }
  0xcb   : > { %8582 = vmatmul.mubr.msk.f32.gmra.mxu0 %vm960_vm0, %v10018_v22  ;;  %8630 = vmatprep.subr.mxu1 %v2367_v61 }
  0xcc   : > { %8584 = vmatprep.mubr.msk.f32.mxu0 %vm960_vm0, %v10032_v26  ;;  %8701 = vmatpush3.msra.mxu0 %v2637_v59 }
  0xcd   : > { %8513 = vmatmul.mubr.msk.f32.gmra.mxu1 %vm960_vm0, %v10042_v30  ;;  %8702 = vmatprep.subr.mxu0 %v2636_v1 }
  0xce   : > { %8515 = vmatprep.mubr.msk.f32.mxu1 %vm960_vm0, %v10056_v34  ;;  %8631 = vmatpush3.msra.mxu1 %v2367_v61 }
  0xcf   : > { %8585 = vmatmul.mubr.msk.f32.gmra.mxu0 %vm960_vm0, %v10042_v30  ;;  %8632 = vmatprep.subr.mxu1 %v2366_v2 }
  0xd0   : > { %8587 = vmatprep.mubr.msk.f32.mxu0 %vm960_vm0, %v10056_v34  ;;  %8703 = vmatpush3.msra.mxu0 %v2636_v1 }
  0xd1   : > { %8516 = vmatmul.mubr.msk.f32.gmra.mxu1 %vm960_vm0, %v10064_v36  ;;  %8704 = vmatprep.subr.mxu0 %v2635_v3 }
  0xd2   : > { %8518 = vmatprep.mubr.msk.f32.mxu1 %vm960_vm0, %v10078_v40  ;;  %8633 = vmatpush3.msra.mxu1 %v2366_v2 }
  0xd3   : > { %8588 = vmatmul.mubr.msk.f32.gmra.mxu0 %vm960_vm0, %v10064_v36  ;;  %8634 = vmatprep.subr.mxu1 %v2365_v4 }
  0xd4   : > { %8590 = vmatprep.mubr.msk.f32.mxu0 %vm960_vm0, %v10078_v40  ;;  %8705 = vmatpush3.msra.mxu0 %v2635_v3 }
  0xd5   : > { %8519 = vmatmul.mubr.msk.f32.gmra.mxu1 %vm960_vm0, %v10088_v44  ;;  %8706 = vmatprep.subr.mxu0 %v2634_v5 }
  0xd6   : > { %8521 = vmatprep.mubr.msk.f32.mxu1 %vm960_vm0, %v10102_v48  ;;  %8635 = vmatpush3.msra.mxu1 %v2365_v4 }
  0xd7   : > { %8591 = vmatmul.mubr.msk.f32.gmra.mxu0 %vm960_vm0, %v10088_v44  ;;  %8636 = vmatprep.subr.mxu1 %v2364_v6 }
  0xd8   : > { %8593 = vmatprep.mubr.msk.f32.mxu0 %vm960_vm0, %v10102_v48  ;;  %8707 = vmatpush3.msra.mxu0 %v2634_v5 }
  0xd9   : > { %8522 = vmatmul.mubr.msk.f32.gmra.mxu1 %vm960_vm0, %v10110_v50  ;;  %8708 = vmatprep.subr.mxu0 %v2633_v7 }
  0xda   : > { %8524 = vmatprep.mubr.msk.f32.mxu1 %vm960_vm0, %v10124_v54  ;;  %8637 = vmatpush3.msra.mxu1 %v2364_v6 }
  0xdb   : > { %8594 = vmatmul.mubr.msk.f32.gmra.mxu0 %vm960_vm0, %v10110_v50  ;;  %8638 = vmatprep.subr.mxu1 %v2363_v8 }
  0xdc   : > { %8596 = vmatprep.mubr.msk.f32.mxu0 %vm960_vm0, %v10124_v54  ;;  %8709 = vmatpush3.msra.mxu0 %v2633_v7 }
  0xdd   : > { %8525 = vmatmul.mubr.msk.f32.gmra.mxu1 %vm960_vm0, %v10134_v58  ;;  %8710 = vmatprep.subr.mxu0 %v2632_v9 }
  0xde   : > { %8527 = vmatprep.mubr.msk.f32.mxu1 %vm960_vm0, %v10148_v62  ;;  %8639 = vmatpush3.msra.mxu1 %v2363_v8 }
  0xdf   : > { %8597 = vmatmul.mubr.msk.f32.gmra.mxu0 %vm960_vm0, %v10134_v58  ;;  %8640 = vmatprep.subr.mxu1 %v2362_v10 }
  0xe0   : > { %8599 = vmatprep.mubr.msk.f32.mxu0 %vm960_vm0, %v10148_v62  ;;  %8711 = vmatpush3.msra.mxu0 %v2632_v9 }
  0xe1   : > { %8528 = vmatmul.mubr.msk.f32.gmra.mxu1 %vm960_vm0, %v10156_v0  ;;  %8712 = vmatprep.subr.mxu0 %v2631_v11 }
  0xe2   : > { %8530 = vmatprep.mubr.msk.f32.mxu1 %vm960_vm0, %v9984_v12  ;;  %8641 = vmatpush3.msra.mxu1 %v2362_v10 }
  0xe3   : > { %8600 = vmatmul.mubr.msk.f32.gmra.mxu0 %vm960_vm0, %v10156_v0  ;;  %8642 = vmatprep.subr.mxu1 %v2361_v15 }
  0xe4   : > { %8602 = vmatprep.mubr.msk.f32.mxu0 %vm960_vm0, %v9984_v12  ;;  %8713 = vmatpush3.msra.mxu0 %v2631_v11 }
  0xe5   : > { %8531 = vmatmul.mubr.msk.f32.gmra.mxu1 %vm960_vm0, %v9990_v14  ;;  %8714 = vmatprep.subr.mxu0 %v2630_v17 }
  0xe6   : > { %8533 = vmatprep.mubr.msk.f32.mxu1 %vm960_vm0, %v10002_v18  ;;  %8643 = vmatpush3.msra.mxu1 %v2361_v15 }
  0xe7   : > { %8603 = vmatmul.mubr.msk.f32.gmra.mxu0 %vm960_vm0, %v9990_v14  ;;  %8644 = vmatprep.subr.mxu1 %v2360_v19 }
  0xe8   : > { %8605 = vmatprep.mubr.msk.f32.mxu0 %vm960_vm0, %v10002_v18  ;;  %8715 = vmatpush3.msra.mxu0 %v2630_v17 }
  0xe9   : > { %8534 = vmatmul.mubr.msk.f32.gmra.mxu1 %vm960_vm0, %v10013_v21  ;;  %8716 = vmatprep.subr.mxu0 %v2629_v23 }
  0xea   : > { %8536 = vmatprep.mubr.msk.f32.mxu1 %vm960_vm0, %v10027_v25  ;;  %8645 = vmatpush3.msra.mxu1 %v2360_v19 }
  0xeb   : > { %8606 = vmatmul.mubr.msk.f32.gmra.mxu0 %vm960_vm0, %v10013_v21  ;;  %8646 = vmatprep.subr.mxu1 %v2359_v24 }
  0xec   : > { %8608 = vmatprep.mubr.msk.f32.mxu0 %vm960_vm0, %v10027_v25  ;;  %8717 = vmatpush3.msra.mxu0 %v2629_v23 }
  0xed   : > { %8537 = vmatmul.mubr.msk.f32.gmra.mxu1 %vm960_vm0, %v10035_v27  ;;  %8718 = vmatprep.subr.mxu0 %v2628_v28 }
  0xee   : > { %8539 = vmatprep.mubr.msk.f32.mxu1 %vm960_vm0, %v10050_v32  ;;  %8647 = vmatpush3.msra.mxu1 %v2359_v24 }
  0xef   : > { %8609 = vmatmul.mubr.msk.f32.gmra.mxu0 %vm960_vm0, %v10035_v27  ;;  %8648 = vmatprep.subr.mxu1 %v2358_v29 }
  0xf0   : > { %8611 = vmatprep.mubr.msk.f32.mxu0 %vm960_vm0, %v10050_v32  ;;  %8719 = vmatpush3.msra.mxu0 %v2628_v28 }
  0xf1   : > { %8540 = vmatmul.mubr.msk.f32.gmra.mxu1 %vm960_vm0, %v10059_v35  ;;  %8720 = vmatprep.subr.mxu0 %v2627_v31 }
  0xf2   : > { %8542 = vmatprep.mubr.msk.f32.mxu1 %vm960_vm0, %v10073_v39  ;;  %8649 = vmatpush3.msra.mxu1 %v2358_v29 }
  0xf3   : > { %8612 = vmatmul.mubr.msk.f32.gmra.mxu0 %vm960_vm0, %v10059_v35 }
  0xf4   : > { %8614 = vmatprep.mubr.msk.f32.mxu0 %vm960_vm0, %v10073_v39  ;;  %8721 = vmatpush3.msra.mxu0 %v2627_v31 }
  0xf5   : > { %8543 = vmatmul.mubr.msk.f32.gmra.mxu1 %vm960_vm0, %v10081_v41 }
  0xf6   : > { %8545 = vmatprep.mubr.msk.f32.mxu1 %vm960_vm0, %v10096_v46 }
  0xf7   : > { %8615 = vmatmul.mubr.msk.f32.gmra.mxu0 %vm960_vm0, %v10081_v41 }
  0xf8   : > { %8617 = vmatprep.mubr.msk.f32.mxu0 %vm960_vm0, %v10096_v46 }
  0xf9   : > { %8546 = vmatmul.mubr.msk.f32.gmra.mxu1 %vm960_vm0, %v10105_v49 }
  0xfa   : > { %8548 = vmatprep.mubr.msk.f32.mxu1 %vm960_vm0, %v10119_v53 }
  0xfb   : > { %8618 = vmatmul.mubr.msk.f32.gmra.mxu0 %vm960_vm0, %v10105_v49 }
  0xfc   : > { %8620 = vmatprep.mubr.msk.f32.mxu0 %vm960_vm0, %v10119_v53 }
  0xfd   : > { %8549 = vmatmul.mubr.msk.f32.gmra.mxu1 %vm960_vm0, %v10127_v55 }
  0xfe   : > { %8551 = vmatprep.mubr.msk.f32.mxu1 %vm960_vm0, %v10142_v60 }
  0xff   : > { %8621 = vmatmul.mubr.msk.f32.gmra.mxu0 %vm960_vm0, %v10127_v55 }
 0x100   : > { %8623 = vmatprep.mubr.msk.f32.mxu0 %vm960_vm0, %v10142_v60 }
 0x101   : > { %8552 = vmatmul.mubr.msk.f32.gmra.mxu1 %vm960_vm0, %v10151_v63 }
 0x102   : > { %8650 = vmatprep.mubr.msk.f32.mxu1 %vm960_vm0, %v9987_v13 }
 0x103   : > { %8624 = vmatmul.mubr.msk.f32.gmra.mxu0 %vm960_vm0, %v10151_v63 }
 0x104   : > { %8722 = vmatprep.mubr.msk.f32.mxu0 %vm960_vm0, %v9987_v13  ;;  %v2897_v13 = vld [vmem:[%s9827_s14 + $0x8] sm:$0x3f] }
 0x105   : > { %8651 = vmatmul.mubr.msk.f32.vlgmr.msra.gmra.mxu1 %vm960_vm0, %v9996_v16  ;;  %8770 = vmatprep.subr.msk.mxu1 %vm3002_vm1, %v2897_v13 }
 0x106   : > { %8653 = vmatprep.mubr.msk.f32.mxu1 %vm960_vm0, %v10010_v20  ;;  %8771 = vmatpush3.msk.msra.mxu1 %vm3002_vm1, %v2897_v13 }
 0x107   : > { %8723 = vmatmul.mubr.msk.f32.vlgmr.msra.gmra.mxu0 %vm960_vm0, %v9996_v16 }
 0x108   : > { %8725 = vmatprep.mubr.msk.f32.mxu0 %vm960_vm0, %v10010_v20 }
 0x109   : > { %8654 = vmatmul.mubr.msk.f32.gmra.mxu1 %vm960_vm0, %v10018_v22 }
 0x10a   : > { %8656 = vmatprep.mubr.msk.f32.mxu1 %vm960_vm0, %v10032_v26 }
 0x10b   : > { %8726 = vmatmul.mubr.msk.f32.gmra.mxu0 %vm960_vm0, %v10018_v22 }
 0x10c   : > { %8728 = vmatprep.mubr.msk.f32.mxu0 %vm960_vm0, %v10032_v26 }
 0x10d   : > { %8657 = vmatmul.mubr.msk.f32.gmra.mxu1 %vm960_vm0, %v10042_v30 }
 0x10e   : > { %8659 = vmatprep.mubr.msk.f32.mxu1 %vm960_vm0, %v10056_v34 }
 0x10f   : > { %8729 = vmatmul.mubr.msk.f32.gmra.mxu0 %vm960_vm0, %v10042_v30 }
 0x110   : > { %8731 = vmatprep.mubr.msk.f32.mxu0 %vm960_vm0, %v10056_v34 }
 0x111   : > { %8660 = vmatmul.mubr.msk.f32.gmra.mxu1 %vm960_vm0, %v10064_v36 }
 0x112   : > { %8662 = vmatprep.mubr.msk.f32.mxu1 %vm960_vm0, %v10078_v40 }
 0x113   : > { %8732 = vmatmul.mubr.msk.f32.gmra.mxu0 %vm960_vm0, %v10064_v36 }
 0x114   : > { %8734 = vmatprep.mubr.msk.f32.mxu0 %vm960_vm0, %v10078_v40 }
 0x115   : > { %8663 = vmatmul.mubr.msk.f32.gmra.mxu1 %vm960_vm0, %v10088_v44 }
 0x116   : > { %8665 = vmatprep.mubr.msk.f32.mxu1 %vm960_vm0, %v10102_v48 }
 0x117   : > { %8735 = vmatmul.mubr.msk.f32.gmra.mxu0 %vm960_vm0, %v10088_v44 }
 0x118   : > { %8737 = vmatprep.mubr.msk.f32.mxu0 %vm960_vm0, %v10102_v48 }
 0x119   : > { %8666 = vmatmul.mubr.msk.f32.gmra.mxu1 %vm960_vm0, %v10110_v50 }
 0x11a   : > { %8668 = vmatprep.mubr.msk.f32.mxu1 %vm960_vm0, %v10124_v54 }
 0x11b   : > { %8738 = vmatmul.mubr.msk.f32.gmra.mxu0 %vm960_vm0, %v10110_v50 }
 0x11c   : > { %8740 = vmatprep.mubr.msk.f32.mxu0 %vm960_vm0, %v10124_v54 }
 0x11d   : > { %8669 = vmatmul.mubr.msk.f32.gmra.mxu1 %vm960_vm0, %v10134_v58 }
 0x11e   : > { %8671 = vmatprep.mubr.msk.f32.mxu1 %vm960_vm0, %v10148_v62  ;;  %v10528_v16 = vpop.f32.mrf.mxu1 }
 0x11f   : > { %8741 = vmatmul.mubr.msk.f32.gmra.mxu0 %vm960_vm0, %v10134_v58  ;;  %v10532_v20 = vpop.f32.mrf.mxu0  ;;  %v2896_v58 = vld [vmem:[%s9827_s14] sm:$0xff] }
 0x120   : > { %8743 = vmatprep.mubr.msk.f32.mxu0 %vm960_vm0, %v10148_v62  ;;  %v10536_v22 = vpop.f32.mrf.mxu1  ;;  %8772 = vmatprep.subr.mxu1 %v2896_v58 }
 0x121   : > { %12869 = vst [vmem:[#allocation21_spill] sm:$0xff] %v10536_v22  ;;  %8672 = vmatmul.mubr.msk.f32.gmra.mxu1 %vm960_vm0, %v10156_v0  ;;  %v10540_v26 = vpop.f32.mrf.mxu0 }
 0x122   : > { %8674 = vmatprep.mubr.msk.f32.mxu1 %vm960_vm0, %v9984_v12  ;;  %v10544_v30 = vpop.f32.mrf.mxu1  ;;  %8773 = vmatpush3.msra.mxu1 %v2896_v58 }
 0x123   : > { %8744 = vmatmul.mubr.msk.f32.gmra.mxu0 %vm960_vm0, %v10156_v0  ;;  %v10548_v34 = vpop.f32.mrf.mxu0 }
 0x124   : > { %8746 = vmatprep.mubr.msk.f32.mxu0 %vm960_vm0, %v9984_v12  ;;  %v10552_v36 = vpop.f32.mrf.mxu1 }
 0x125   : > { %12870 = vst [vmem:[#allocation22_spill] sm:$0xff] %v10552_v36  ;;  %8675 = vmatmul.mubr.msk.f32.gmra.mxu1 %vm960_vm0, %v9990_v14  ;;  %v10556_v40 = vpop.f32.mrf.mxu0 }
 0x126   : > { %8677 = vmatprep.mubr.msk.f32.mxu1 %vm960_vm0, %v10002_v18 }
 0x127   : > { %8747 = vmatmul.mubr.msk.f32.gmra.mxu0 %vm960_vm0, %v9990_v14  ;;  %v10562_v44 = vpop.f32.mrf.mxu1 }
 0x128   : > { %8749 = vmatprep.mubr.msk.f32.mxu0 %vm960_vm0, %v10002_v18  ;;  %v10566_v12 = vpop.f32.mrf.mxu0 }
 0x129   : > { %8678 = vmatmul.mubr.msk.f32.gmra.mxu1 %vm960_vm0, %v10013_v21  ;;  %v10570_v48 = vpop.f32.mrf.mxu1 }
 0x12a   : > { %12871 = vst [vmem:[#allocation23_spill] sm:$0xff] %v10570_v48  ;;  %8680 = vmatprep.mubr.msk.f32.mxu1 %vm960_vm0, %v10027_v25  ;;  %v10574_v50 = vpop.f32.mrf.mxu0 }
 0x12b   : > { %8750 = vmatmul.mubr.msk.f32.gmra.mxu0 %vm960_vm0, %v10013_v21 }
 0x12c   : > { %8752 = vmatprep.mubr.msk.f32.mxu0 %vm960_vm0, %v10027_v25  ;;  %v10580_v14 = vpop.f32.mrf.mxu1 }
 0x12d   : > { %8681 = vmatmul.mubr.msk.f32.gmra.mxu1 %vm960_vm0, %v10035_v27  ;;  %v10584_v18 = vpop.f32.mrf.mxu0 }
 0x12e   : > { %8683 = vmatprep.mubr.msk.f32.mxu1 %vm960_vm0, %v10050_v32  ;;  %v10588_v54 = vpop.f32.mrf.mxu1 }
 0x12f   : > { %12872 = vst [vmem:[#allocation24_spill] sm:$0xff] %v10588_v54  ;;  %8753 = vmatmul.mubr.msk.f32.gmra.mxu0 %vm960_vm0, %v10035_v27  ;;  %v10593_v21 = vpop.f32.mrf.mxu0  ;;  %v3264_v54 = vld [vmem:[%s9837_s24 + $0x8] sm:$0xff] }
 0x130   : > { %8755 = vmatprep.mubr.msk.f32.mxu0 %vm960_vm0, %v10050_v32 }
 0x131   : > { %8684 = vmatmul.mubr.msk.f32.gmra.mxu1 %vm960_vm0, %v10059_v35  ;;  %v10599_v25 = vpop.f32.mrf.mxu1 }
 0x132   : > { %8686 = vmatprep.mubr.msk.f32.mxu1 %vm960_vm0, %v10073_v39  ;;  %v8304_v62 = vpop.f32.mrf.mxu0 }
 0x133   : > { %8756 = vmatmul.mubr.msk.f32.gmra.mxu0 %vm960_vm0, %v10059_v35  ;;  %v10605_v27 = vpop.f32.mrf.mxu1 }
 0x134   : > { %12873 = vst [vmem:[#allocation25_spill] sm:$0xff] %v10605_v27  ;;  %8758 = vmatprep.mubr.msk.f32.mxu0 %vm960_vm0, %v10073_v39  ;;  %v10609_v0 = vpop.f32.mrf.mxu0 }
 0x135   : > { %8687 = vmatmul.mubr.msk.f32.gmra.mxu1 %vm960_vm0, %v10081_v41 }
 0x136   : > { %8689 = vmatprep.mubr.msk.f32.mxu1 %vm960_vm0, %v10096_v46  ;;  %v10615_v32 = vpop.f32.mrf.mxu1 }
 0x137   : > { %8759 = vmatmul.mubr.msk.f32.gmra.mxu0 %vm960_vm0, %v10081_v41  ;;  %v8307_v33 = vpop.f32.mrf.mxu0 }
 0x138   : > { %8761 = vmatprep.mubr.msk.f32.mxu0 %vm960_vm0, %v10096_v46  ;;  %v10621_v35 = vpop.f32.mrf.mxu1 }
 0x139   : > { %12874 = vst [vmem:[#allocation26_spill] sm:$0xff] %v10621_v35  ;;  %8690 = vmatmul.mubr.msk.f32.gmra.mxu1 %vm960_vm0, %v10105_v49  ;;  %v10625_v39 = vpop.f32.mrf.mxu0 }
 0x13a   : > { %8692 = vmatprep.mubr.msk.f32.mxu1 %vm960_vm0, %v10119_v53 }
 0x13b   : > { %8762 = vmatmul.mubr.msk.f32.gmra.mxu0 %vm960_vm0, %v10105_v49  ;;  %v10631_v37 = vpop.f32.mrf.mxu1 }
 0x13c   : > { %8764 = vmatprep.mubr.msk.f32.mxu0 %vm960_vm0, %v10119_v53  ;;  %v8310_v41 = vpop.f32.mrf.mxu0 }
 0x13d   : > { %8693 = vmatmul.mubr.msk.f32.gmra.mxu1 %vm960_vm0, %v10127_v55  ;;  %v10637_v46 = vpop.f32.mrf.mxu1 }
 0x13e   : > { %12875 = vst [vmem:[#allocation27_spill] sm:$0xff] %v10637_v46  ;;  %v10639_v38 = vpop.f32.mrf.mxu0  ;;  %8695 = vmatprep.mubr.msk.f32.mxu1 %vm960_vm0, %v10142_v60 }
 0x13f   : > { %8765 = vmatmul.mubr.msk.f32.gmra.mxu0 %vm960_vm0, %v10127_v55 }
 0x140   : > { %v10645_v49 = vpop.f32.mrf.mxu1  ;;  %8767 = vmatprep.mubr.msk.f32.mxu0 %vm960_vm0, %v10142_v60 }
 0x141   : > { %8696 = vmatmul.mubr.msk.f32.gmra.mxu1 %vm960_vm0, %v10151_v63  ;;  %v8313_v53 = vpop.f32.mrf.mxu0 }
 0x142   : > { %v10651_v42 = vpop.f32.mrf.mxu1 }
 0x143   : > { %12876 = vst [vmem:[#allocation28_spill] sm:$0xff] %v10651_v42  ;;  %8768 = vmatmul.mubr.msk.f32.gmra.mxu0 %vm960_vm0, %v10151_v63  ;;  %v10655_v43 = vpop.f32.mrf.mxu0 }
 0x145   : > { %v8364_v45 = vpop.f32.mrf.mxu1 }
 0x146   : > { %v1520_v47 = vmax.f32 %v10532_v20, %v8364_v45 }
 0x147   : > { %v8436_v55 = vpop.f32.mrf.mxu0  ;;  %v10658_v51 = vpop.f32.mrf.mxu1 }
 0x148   : > { %v10660_v52 = vmax.f32 %v1520_v47, %v8436_v55 }
 0x149   : > { %v10662_v60 = vpop.f32.mrf.mxu0  ;;  %v8367_v56 = vpop.f32.mrf.mxu1 }
 0x14a   : > { %v1522_v57 = vmax.f32 %v10548_v34, %v8367_v56 }
 0x14b   : > { %v8439_v59 = vpop.f32.mrf.mxu0  ;;  %v10665_v61 = vpop.f32.mrf.mxu1 }
 0x14c   : > { %v10667_v1 = vmax.f32 %v1522_v57, %v8439_v59 }
 0x14d   : > { %v10669_v63 = vpop.f32.mrf.mxu0  ;;  %v8370_v2 = vpop.f32.mrf.mxu1 }
 0x14e   : > { %v1524_v3 = vmax.f32 %v10566_v12, %v8370_v2 }
 0x14f   : > { %v8442_v4 = vpop.f32.mrf.mxu0  ;;  %v10672_v5 = vpop.f32.mrf.mxu1 }
 0x150   : > { %v10674_v6 = vmax.f32 %v1524_v3, %v8442_v4 }
 0x151   : > { %v10676_v7 = vpop.f32.mrf.mxu0  ;;  %v8373_v8 = vpop.f32.mrf.mxu1 }
 0x152   : > { %v1526_v9 = vmax.f32 %v10584_v18, %v8373_v8 }
 0x153   : > { %v8445_v10 = vpop.f32.mrf.mxu0  ;;  %v10679_v11 = vpop.f32.mrf.mxu1 }
 0x154   : > { %v10681_v15 = vmax.f32 %v1526_v9, %v8445_v10 }
 0x155   : > { %v10683_v17 = vpop.f32.mrf.mxu0  ;;  %v8376_v19 = vpop.f32.mrf.mxu1 }
 0x156   : > { %v1528_v23 = vmax.f32 %v8304_v62, %v8376_v19 }
 0x157   : > { %v8448_v24 = vpop.f32.mrf.mxu0  ;;  %v10685_v28 = vpop.f32.mrf.mxu1 }
 0x158   : > { %v10687_v29 = vmax.f32 %v1528_v23, %v8448_v24 }
 0x159   : > { %v10689_v31 = vpop.f32.mrf.mxu0  ;;  %v8379_v13 = vpop.f32.mrf.mxu1 }
 0x15a   : > { %v1530_v20 = vmax.f32 %v8307_v33, %v8379_v13 }
 0x15b   : > { %v8451_v34 = vpop.f32.mrf.mxu0  ;;  %v10691_v12 = vpop.f32.mrf.mxu1 }
 0x15c   : > { %v10693_v18 = vmax.f32 %v1530_v20, %v8451_v34 }
 0x15d   : > { %v10695_v58 = vpop.f32.mrf.mxu0  ;;  %v8382_v45 = vpop.f32.mrf.mxu1 }
 0x15e   : > { %v1532_v47 = vmax.f32 %v8310_v41, %v8382_v45 }
 0x15f   : > { %v8454_v55 = vpop.f32.mrf.mxu0  ;;  %v10697_v62 = vpop.f32.mrf.mxu1 }
 0x160   : > { %v10699_v56 = vmax.f32 %v1532_v47, %v8454_v55 }
 0x161   : > { %v10701_v57 = vpop.f32.mrf.mxu0  ;;  %v8385_v59 = vpop.f32.mrf.mxu1 }
 0x162   : > { %12877 = vst [vmem:[#allocation29_spill] sm:$0xff] %v10699_v56  ;;  %v1534_v2 = vmax.f32 %v8313_v53, %v8385_v59 }
 0x163   : > { %v8457_v3 = vpop.f32.mrf.mxu0  ;;  %v10703_v33 = vpop.f32.mrf.mxu1 }
 0x164   : > { %v10705_v4 = vmax.f32 %v1534_v2, %v8457_v3 }
 0x165   : > { %v10707_v8 = vpop.f32.mrf.mxu0  ;;  %v8388_v9 = vpop.f32.mrf.mxu1 }
 0x166   : > { %12878 = vst [vmem:[#allocation30_spill] sm:$0xff] %v10705_v4  ;;  %12879 = vst [vmem:[#allocation31_spill] sm:$0xff] %v10707_v8  ;;  %v1536_v10 = vmax.f32 %v10528_v16, %v8388_v9 }
 0x167   : > { %v8460_v41 = vpop.f32.mrf.mxu0  ;;  %v10710_v19 = vpop.f32.mrf.mxu1 }
 0x168   : > { %12880 = vst [vmem:[#allocation32_spill] sm:$0xff] %v10710_v19  ;;  %v10712_v23 = vmax.f32 %v1536_v10, %v8460_v41 }
 0x169   : > { %v10714_v24 = vpop.f32.mrf.mxu0  ;;  %v8391_v13 = vpop.f32.mrf.mxu1 }
 0x16a   : > { %12881 = vst [vmem:[#allocation33_spill] sm:$0xff] %v10712_v23  ;;  %12882 = vst [vmem:[#allocation34_spill] sm:$0xff] %v10714_v24  ;;  %v1538_v53 = vmax.f32 %v10544_v30, %v8391_v13 }
 0x16b   : > { %v8463_v20 = vpop.f32.mrf.mxu0  ;;  %v10717_v34 = vpop.f32.mrf.mxu1 }
 0x16c   : > { %12883 = vst [vmem:[#allocation35_spill] sm:$0xff] %v10717_v34  ;;  %v10719_v45 = vmax.f32 %v1538_v53, %v8463_v20 }
 0x16d   : > { %v10721_v47 = vpop.f32.mrf.mxu0  ;;  %v8394_v55 = vpop.f32.mrf.mxu1 }
 0x16e   : > { %12884 = vst [vmem:[#allocation36_spill] sm:$0xff] %v10719_v45  ;;  %12885 = vst [vmem:[#allocation37_spill] sm:$0xff] %v10721_v47  ;;  %v1540_v16 = vmax.f32 %v10562_v44, %v8394_v55 }
 0x16f   : > { %v8466_v59 = vpop.f32.mrf.mxu0  ;;  %v10724_v2 = vpop.f32.mrf.mxu1 }
 0x170   : > { %12886 = vst [vmem:[#allocation38_spill] sm:$0xff] %v10724_v2  ;;  %v10726_v3 = vmax.f32 %v1540_v16, %v8466_v59 }
 0x171   : > { %v10728_v9 = vpop.f32.mrf.mxu0  ;;  %v8397_v10 = vpop.f32.mrf.mxu1 }
 0x172   : > { %12887 = vst [vmem:[#allocation39_spill] sm:$0xff] %v10726_v3  ;;  %12888 = vst [vmem:[#allocation40_spill] sm:$0xff] %v10728_v9  ;;  %v1542_v30 = vmax.f32 %v10580_v14, %v8397_v10 }
 0x173   : > { %v8469_v41 = vpop.f32.mrf.mxu0  ;;  %v10731_v13 = vpop.f32.mrf.mxu1 }
 0x174   : > { %12889 = vst [vmem:[#allocation41_spill] sm:$0xff] %v10731_v13  ;;  %v10733_v53 = vmax.f32 %v1542_v30, %v8469_v41 }
 0x175   : > { %v10735_v20 = vpop.f32.mrf.mxu0  ;;  %v8400_v42 = vpop.f32.mrf.mxu1 }
 0x176   : > { %12890 = vst [vmem:[#allocation42_spill] sm:$0xff] %v10733_v53  ;;  %12891 = vst [vmem:[#allocation43_spill] sm:$0xff] %v10735_v20  ;;  %v1544_v44 = vmax.f32 %v10599_v25, %v8400_v42  ;;  %v3265_v20 = vld [vmem:[%s9837_s24 + $0x10] sm:$0xff] }
 0x177   : > { %v8472_v55 = vpop.f32.mrf.mxu0  ;;  %v10738_v46 = vpop.f32.mrf.mxu1 }
 0x178   : > { %12892 = vst [vmem:[#allocation44_spill] sm:$0xff] %v10738_v46  ;;  %v10740_v16 = vmax.f32 %v1544_v44, %v8472_v55 }
 0x179   : > { %v10742_v59 = vpop.f32.mrf.mxu0  ;;  %v8403_v35 = vpop.f32.mrf.mxu1 }
 0x17a   : > { %12893 = vst [vmem:[#allocation45_spill] sm:$0xff] %v10740_v16  ;;  %12894 = vst [vmem:[#allocation46_spill] sm:$0xff] %v10742_v59  ;;  %v1546_v14 = vmax.f32 %v10615_v32, %v8403_v35  ;;  %v3266_v59 = vld [vmem:[%s9837_s24 + $0x18] sm:$0xff] }
 0x17b   : > { %v8475_v10 = vpop.f32.mrf.mxu0  ;;  %v10745_v27 = vpop.f32.mrf.mxu1 }
 0x17c   : > { %12895 = vst [vmem:[#allocation47_spill] sm:$0xff] %v10745_v27  ;;  %v10747_v30 = vmax.f32 %v1546_v14, %v8475_v10 }
 0x17d   : > { %v10749_v41 = vpop.f32.mrf.mxu0  ;;  %v8406_v53 = vpop.f32.mrf.mxu1 }
 0x17e   : > { %12896 = vst [vmem:[#allocation48_spill] sm:$0xff] %v10747_v30  ;;  %12897 = vst [vmem:[#allocation49_spill] sm:$0xff] %v10749_v41  ;;  %v1548_v25 = vmax.f32 %v10631_v37, %v8406_v53 }
 0x17f   : > { %v8478_v42 = vpop.f32.mrf.mxu0  ;;  %v10752_v44 = vpop.f32.mrf.mxu1 }
 0x180   : > { %12898 = vst [vmem:[#allocation50_spill] sm:$0xff] %v10752_v44  ;;  %v10754_v55 = vmax.f32 %v1548_v25, %v8478_v42 }
 0x181   : > { %v10756_v16 = vpop.f32.mrf.mxu0  ;;  %v8409_v32 = vpop.f32.mrf.mxu1 }
 0x182   : > { %12899 = vst [vmem:[#allocation51_spill] sm:$0xff] %v10754_v55  ;;  %12900 = vst [vmem:[#allocation52_spill] sm:$0xff] %v10756_v16  ;;  %v1550_v35 = vmax.f32 %v10645_v49, %v8409_v32  ;;  %v3270_v49 = vld [vmem:[%s9837_s24 + $0x38] sm:$0xff]  ;;  %v3269_v32 = vld [vmem:[%s9837_s24 + $0x30] sm:$0xff] }
 0x183   : > { %v8481_v14 = vpop.f32.mrf.mxu0  ;;  %v10759_v10 = vpop.f32.mrf.mxu1  ;;  %8822 = vmatprep.subr.mxu0 %v3270_v49  ;;  %v3267_v16 = vld [vmem:[%s9837_s24 + $0x20] sm:$0xff] }
 0x184   : > { %12901 = vst [vmem:[#allocation53_spill] sm:$0xff] %v10759_v10  ;;  %v10761_v30 = vmax.f32 %v1550_v35, %v8481_v14  ;;  %8823 = vmatpush3.msra.mxu0 %v3270_v49  ;;  %v3268_v14 = vld [vmem:[%s9837_s24 + $0x28] sm:$0xff] }
 0x185   : > { %v10763_v41 = vpop.f32.mrf.mxu0  ;;  %v10765_v37 = vpop.f32.mrf.mxu1  ;;  %8824 = vmatprep.subr.mxu0 %v3269_v32 }
 0x186   : > { %12902 = vst [vmem:[#allocation54_spill] sm:$0xff] %v10761_v30  ;;  %12903 = vst [vmem:[#allocation55_spill] sm:$0xff] %v10763_v41  ;;  %8825 = vmatpush3.msra.mxu0 %v3269_v32 }
 0x187   : > { %v10767_v53 = vpop.f32.mrf.mxu0  ;;  %v10769_v25 = vpop.f32.mrf.mxu1  ;;  %8826 = vmatprep.subr.mxu0 %v3268_v14 }
 0x188   : > { %8827 = vmatpush3.msra.mxu0 %v3268_v14 }
 0x189   : > { %v10771_v42 = vpop.f32.mrf.mxu0  ;;  %v10773_v55 = vpop.f32.mrf.mxu1  ;;  %8828 = vmatprep.subr.mxu0 %v3267_v16 }
 0x18a   : > { %8829 = vmatpush3.msra.mxu0 %v3267_v16 }
 0x18b   : > { %v10777_v10 = vpop.f32.mrf.mxu0  ;;  %v10779_v35 = vpop.f32.mrf.mxu1  ;;  %8830 = vmatprep.subr.mxu0 %v3266_v59 }
 0x18c   : > { %8831 = vmatpush3.msra.mxu0 %v3266_v59 }
 0x18d   : > { %v10782_v30 = vpop.f32.mrf.mxu0  ;;  %v10784_v41 = vpop.f32.mrf.mxu1  ;;  %8832 = vmatprep.subr.mxu0 %v3265_v20 }
 0x18e   : > { %8833 = vmatpush3.msra.mxu0 %v3265_v20 }
 0x18f   : > { %v10787_v44 = vpop.f32.mrf.mxu0  ;;  %v10789_v27 = vpop.f32.mrf.mxu1  ;;  %8834 = vmatprep.subr.mxu0 %v3264_v54 }
 0x190   : > { %8835 = vmatpush3.msra.mxu0 %v3264_v54 }
 0x191   : > { %v10792_v46 = vpop.f32.mrf.mxu0  ;;  %v10794_v49 = vpop.f32.mrf.mxu1 }
 0x193   : > { %v10797_v3 = vpop.f32.mrf.mxu0  ;;  %v10799_v32 = vpop.f32.mrf.mxu1 }
 0x195   : > { %v10802_v13 = vpop.f32.mrf.mxu0  ;;  %v10804_v9 = vpop.f32.mrf.mxu1 }
 0x197   : > { %v10806_v14 = vpop.f32.mrf.mxu0  ;;  %v10808_v45 = vpop.f32.mrf.mxu1 }
 0x199   : > { %v10810_v16 = vpop.f32.mrf.mxu0  ;;  %v10812_v48 = vpop.f32.mrf.mxu1 }
 0x19b   : > { %v10814_v2 = vpop.f32.mrf.mxu0  ;;  %v10816_v59 = vpop.f32.mrf.mxu1 }
 0x19d   : > { %v10818_v47 = vpop.f32.mrf.mxu0  ;;  %v10820_v23 = vpop.f32.mrf.mxu1 }
 0x19e   : > { %12904 = vst [vmem:[#allocation56_spill] sm:$0xff] %v10818_v47 }
 0x19f   : > { %v10822_v36 = vpop.f32.mrf.mxu0  ;;  %v10824_v20 = vpop.f32.mrf.mxu1 }
 0x1a0   : > { %12905 = vst [vmem:[#allocation57_spill] sm:$0xff] %v10822_v36  ;;  %12906 = vst [vmem:[#allocation58_spill] sm:$0xff] %v10824_v20 }
 0x1a1   : > { %v10826_v34 = vpop.f32.mrf.mxu0  ;;  %v10828_v24 = vpop.f32.mrf.mxu1 }
 0x1a2   : > { %12907 = vst [vmem:[#allocation59_spill] sm:$0xff] %v10826_v34  ;;  %12908 = vst [vmem:[#allocation60_spill] sm:$0xff] %v10828_v24 }
 0x1a3   : > { %v10830_v54 = vpop.f32.mrf.mxu0  ;;  %v10832_v4 = vpop.f32.mrf.mxu1 }
 0x1a4   : > { %12909 = vst [vmem:[#allocation61_spill] sm:$0xff] %v10830_v54  ;;  %12910 = vst [vmem:[#allocation62_spill] sm:$0xff] %v10832_v4 }
 0x1a5   : > { %v10834_v22 = vpop.f32.mrf.mxu0  ;;  %v10836_v19 = vpop.f32.mrf.mxu1 }
 0x1a6   : > { %12911 = vst [vmem:[#allocation63_spill] sm:$0xff] %v10834_v22  ;;  %12912 = vst [vmem:[#allocation64_spill] sm:$0xff] %v10836_v19 }
 0x1a7   : > { %v10838_v8 = vpop.f32.mrf.mxu0  ;;  %v10840_v47 = vpop.f32.mrf.mxu1 }
 0x1a8   : > { %12913 = vst [vmem:[#allocation65_spill] sm:$0xff] %v10838_v8  ;;  %12914 = vst [vmem:[#allocation66_spill] sm:$0xff] %v10840_v47 }
 0x1a9   : > { %v10842_v56 = vpop.f32.mrf.mxu0  ;;  %v10844_v36 = vpop.f32.mrf.mxu1 }
 0x1aa   : > { %12915 = vst [vmem:[#allocation67_spill] sm:$0xff] %v10842_v56  ;;  %12916 = vst [vmem:[#allocation68_spill] sm:$0xff] %v10844_v36 }
 0x1ab   : > { %v10846_v20 = vpop.f32.mrf.mxu0  ;;  %v10848_v34 = vpop.f32.mrf.mxu1 }
 0x1ac   : > { %12917 = vst [vmem:[#allocation69_spill] sm:$0xff] %v10846_v20  ;;  %12918 = vst [vmem:[#allocation70_spill] sm:$0xff] %v10848_v34 }
 0x1ad   : > { %v10850_v24 = vpop.f32.mrf.mxu0  ;;  %v10852_v54 = vpop.f32.mrf.mxu1 }
 0x1ae   : > { %12919 = vst [vmem:[#allocation71_spill] sm:$0xff] %v10850_v24  ;;  %12920 = vst [vmem:[#allocation72_spill] sm:$0xff] %v10852_v54 }
 0x1af   : > { %v10854_v4 = vpop.f32.mrf.mxu0  ;;  %v10856_v22 = vpop.f32.mrf.mxu1 }
 0x1b0   : > { %12921 = vst [vmem:[#allocation73_spill] sm:$0xff] %v10854_v4  ;;  %12922 = vst [vmem:[#allocation74_spill] sm:$0xff] %v10856_v22 }
 0x1b1   : > { %v10858_v19 = vpop.f32.mrf.mxu0  ;;  %v10860_v8 = vpop.f32.mrf.mxu1 }
 0x1b2   : > { %12923 = vst [vmem:[#allocation75_spill] sm:$0xff] %v10858_v19 }
 0x1b3   : > { %v10862_v47 = vpop.f32.mrf.mxu0  ;;  %v10864_v56 = vpop.f32.mrf.mxu1 }
 0x1b4   : > { %12924 = vst [vmem:[#allocation76_spill] sm:$0xff] %v10862_v47  ;;  %12925 = vst [vmem:[#allocation77_spill] sm:$0xff] %v10864_v56  ;;  %v1519_v47 = vmax.f32 %v10540_v26, %v10658_v51 }
 0x1b5   : > { %v10866_v36 = vpop.f32.mrf.mxu0  ;;  %v10868_v20 = vpop.f32.mrf.mxu1 }
 0x1b6   : > { %12926 = vst [vmem:[#allocation78_spill] sm:$0xff] %v10866_v36  ;;  %12927 = vst [vmem:[#allocation79_spill] sm:$0xff] %v10868_v20 }
 0x1b7   : > { %v10870_v34 = vpop.f32.mrf.mxu0  ;;  %v10872_v24 = vpop.f32.mrf.mxu1 }
 0x1b8   : > { %12928 = vst [vmem:[#allocation80_spill] sm:$0xff] %v10870_v34  ;;  %12929 = vst [vmem:[#allocation81_spill] sm:$0xff] %v10872_v24  ;;  %v1788_v24 = vmax.f32 %v1519_v47, %v10662_v60  ;;  %v1523_v60 = vmax.f32 %v10574_v50, %v10672_v5  ;;  %v1525_v50 = vmax.f32 %v10593_v21, %v10679_v11 }
 0x1b9   : > { %v10874_v54 = vpop.f32.mrf.mxu0  ;;  %v10876_v4 = vpop.f32.mrf.mxu1  ;;  %v1527_v11 = vmax.f32 %v10609_v0, %v10685_v28 }
 0x1ba   : > { %12930 = vst [vmem:[#allocation82_spill] sm:$0xff] %v10874_v54  ;;  %12931 = vst [vmem:[#allocation83_spill] sm:$0xff] %v10876_v4  ;;  %v1521_v54 = vmax.f32 %v10556_v40, %v10665_v61  ;;  %v2057_v26 = vmax.f32 %v1788_v24, %v10769_v25  ;;  %v1794_v21 = vmax.f32 %v1525_v50, %v10683_v17 }
 0x1bb   : > { %v10878_v22 = vpop.f32.mrf.mxu0  ;;  %v10880_v19 = vpop.f32.mrf.mxu1 }
 0x1bc   : > { %12932 = vst [vmem:[#allocation84_spill] sm:$0xff] %v10878_v22  ;;  %12933 = vst [vmem:[#allocation85_spill] sm:$0xff] %v10880_v19  ;;  %v2058_v22 = vmax.f32 %v10660_v52, %v10765_v37  ;;  %v2060_v52 = vmax.f32 %v10667_v1, %v10773_v55  ;;  %v2326_v37 = vmax.f32 %v2057_v26, %v10771_v42 }
 0x1bd   : > { %v10884_v56 = vpop.f32.mrf.mxu0  ;;  %v10886_v36 = vpop.f32.mrf.mxu1  ;;  %v2062_v1 = vmax.f32 %v10674_v6, %v10784_v41 }
 0x1be   : > { %12934 = vst [vmem:[#allocation86_spill] sm:$0xff] %v10884_v56  ;;  %v2327_v40 = vmax.f32 %v2058_v22, %v10767_v53  ;;  %v2329_v22 = vmax.f32 %v2060_v52, %v10777_v10 }
 0x1bf   : > { %v10888_v20 = vpop.f32.mrf.mxu0  ;;  %v10890_v34 = vpop.f32.mrf.mxu1  ;;  %v2331_v6 = vmax.f32 %v2062_v1, %v10787_v44  ;;  %v1529_v44 = vmax.f32 %v10625_v39, %v10691_v12 }
 0x1c0   : > { %12935 = vst [vmem:[#allocation87_spill] sm:$0xff] %v10888_v20  ;;  %v1790_v20 = vmax.f32 %v1521_v54, %v10669_v63  ;;  %v1792_v63 = vmax.f32 %v1523_v60, %v10676_v7 }
 0x1c1   : > { %v10897_v19 = vpop.f32.mrf.mxu0  ;;  %v10899_v4 = vpop.f32.mrf.mxu1 }
 0x1c2   : > { %v2059_v24 = vmax.f32 %v1790_v20, %v10779_v35  ;;  %v2061_v35 = vmax.f32 %v1792_v63, %v10789_v27 }
 0x1c3   : > { %v10902_v51 = vpop.f32.mrf.mxu0  ;;  %v10904_v56 = vpop.f32.mrf.mxu1 }
 0x1c4   : > { %12936 = vst [vmem:[#allocation88_spill] sm:$0xff] %v10902_v51  ;;  %12937 = vst [vmem:[#allocation89_spill] sm:$0xff] %v10904_v56  ;;  %v2328_v42 = vmax.f32 %v2059_v24, %v10782_v30  ;;  %v2064_v30 = vmax.f32 %v10681_v15, %v10794_v49  ;;  %v2330_v10 = vmax.f32 %v2061_v35, %v10792_v46 }
 0x1c5   : > { %v10912_v61 = vpop.f32.mrf.mxu0  ;;  %v8652_v47 = vpop.f32.mrf.mxu1  ;;  %v2066_v46 = vmax.f32 %v10687_v29, %v10804_v9  ;;  %v2068_v9 = vmax.f32 %v10693_v18, %v10812_v48  ;;  %v12938_v18 = vld [vmem:[#allocation29_spill] sm:$0xff] }
 0x1c6   : > { %v2596_v25 = vmax.f32 %v2327_v40, %v8652_v47  ;;  %v1796_v47 = vmax.f32 %v1527_v11, %v10689_v31  ;;  %v2333_v15 = vmax.f32 %v2064_v30, %v10797_v3  ;;  %v1531_v3 = vmax.f32 %v10639_v38, %v10697_v62 }
 0x1c7   : > { %v8724_v51 = vpop.f32.mrf.mxu0  ;;  %v2436_v56 = vpop.f32.mrf.mxu1  ;;  %v2335_v29 = vmax.f32 %v2066_v46, %v10806_v14  ;;  %v1533_v14 = vmax.f32 %v10655_v43, %v10703_v33  ;;  %v2337_v48 = vmax.f32 %v2068_v9, %v10814_v2  ;;  %v12943_v2 = vld [vmem:[#allocation21_spill] sm:$0xff] }
 0x1c8   : > { %v2595_v5 = vmax.f32 %v2326_v37, %v2436_v56  ;;  %v2865_v54 = vmax.f32 %v2596_v25, %v8724_v51  ;;  %v2063_v51 = vmax.f32 %v1794_v21, %v10799_v32  ;;  %v2065_v25 = vmax.f32 %v1796_v47, %v10808_v45  ;;  %v12947_v47 = vld [vmem:[#allocation59_spill] sm:$0xff]  ;;  %v12954_v9 = vld [vmem:[#allocation33_spill] sm:$0xff] }
 0x1c9   : > { %v2705_v55 = vpop.f32.mrf.mxu0  ;;  %v8655_v53 = vpop.f32.mrf.mxu1  ;;  %v1800_v35 = vmax.f32 %v1531_v3, %v10701_v57  ;;  %v12952_v3 = vld [vmem:[#allocation61_spill] sm:$0xff] }
 0x1ca   : > { %v2864_v20 = vmax.f32 %v2595_v5, %v2705_v55  ;;  %v2598_v26 = vmax.f32 %v2329_v22, %v8655_v53  ;;  %v2332_v24 = vmax.f32 %v2063_v51, %v10802_v13  ;;  %v1798_v5 = vmax.f32 %v1529_v44, %v10695_v58 }
 0x1cb   : > { %v8727_v7 = vpop.f32.mrf.mxu0  ;;  %v2446_v60 = vpop.f32.mrf.mxu1  ;;  %v2334_v1 = vmax.f32 %v2065_v25, %v10810_v16  ;;  %v2070_v16 = vmax.f32 %v12938_v18, %v10820_v23  ;;  %v12944_v23 = vld [vmem:[#allocation57_spill] sm:$0xff] }
 0x1cc   : > { %v2597_v56 = vmax.f32 %v2328_v42, %v2446_v60  ;;  %8774 = vmatprep.mubr.msk.f32.mxu1 %vm2905_vm2, %v2864_v20  ;;  %v2867_v40 = vmax.f32 %v2598_v26, %v8727_v7  ;;  %v2067_v55 = vmax.f32 %v1798_v5, %v10816_v59  ;;  %v12939_v26 = vld [vmem:[#allocation56_spill] sm:$0xff]  ;;  %v12940_v60 = vld [vmem:[#allocation58_spill] sm:$0xff] }
 0x1cd   : > { %v2715_v41 = vpop.f32.mrf.mxu0  ;;  %v8658_v27 = vpop.f32.mrf.mxu1  ;;  %8775 = vmatmul.mubr.msk.f32.vlgmr.msra.gmra.mxu1 %vm2905_vm2, %v2865_v54  ;;  %v2069_v21 = vmax.f32 %v1800_v35, %v12940_v60  ;;  %v2339_v51 = vmax.f32 %v2070_v16, %v12944_v23  ;;  %v12958_v16 = vld [vmem:[#allocation38_spill] sm:$0xff] }
 0x1ce   : > { %v2866_v17 = vmax.f32 %v2597_v56, %v2715_v41  ;;  %v2600_v52 = vmax.f32 %v2331_v6, %v8658_v27  ;;  %v2336_v7 = vmax.f32 %v2067_v55, %v12939_v26  ;;  %v12941_v6 = vld [vmem:[#allocation31_spill] sm:$0xff]  ;;  %v12942_v41 = vld [vmem:[#allocation32_spill] sm:$0xff] }
 0x1cf   : > { %v8730_v0 = vpop.f32.mrf.mxu0  ;;  %v2456_v28 = vpop.f32.mrf.mxu1  ;;  %v1802_v30 = vmax.f32 %v1533_v14, %v12941_v6  ;;  %v1535_v27 = vmax.f32 %v12943_v2, %v12942_v41  ;;  %v2338_v44 = vmax.f32 %v2069_v21, %v12947_v47  ;;  %v12955_v55 = vld [vmem:[#allocation63_spill] sm:$0xff]  ;;  %v12961_v21 = vld [vmem:[#allocation68_spill] sm:$0xff] }
 0x1d0   : > { %v2599_v37 = vmax.f32 %v2330_v10, %v2456_v28  ;;  %8777 = vmatprep.mubr.msk.f32.mxu1 %vm2905_vm2, %v2866_v17  ;;  %v2869_v63 = vmax.f32 %v2600_v52, %v8730_v0  ;;  %v12945_v17 = vld [vmem:[#allocation60_spill] sm:$0xff] }
 0x1d1   : > { %v2725_v49 = vpop.f32.mrf.mxu0  ;;  %v8661_v32 = vpop.f32.mrf.mxu1  ;;  %8778 = vmatmul.mubr.msk.f32.gmra.mxu1 %vm2905_vm2, %v2867_v40  ;;  %v12946_v40 = vld [vmem:[#allocation30_spill] sm:$0xff] }
 0x1d2   : > { %v2868_v31 = vmax.f32 %v2599_v37, %v2725_v49  ;;  %v2602_v50 = vmax.f32 %v2333_v15, %v8661_v32  ;;  %v2072_v52 = vmax.f32 %v12946_v40, %v12945_v17  ;;  %v12948_v37 = vld [vmem:[#allocation62_spill] sm:$0xff]  ;;  %v12965_v17 = vld [vmem:[#allocation40_spill] sm:$0xff] }
 0x1d3   : > { %v8733_v39 = vpop.f32.mrf.mxu0  ;;  %v2466_v12 = vpop.f32.mrf.mxu1  ;;  %v2071_v15 = vmax.f32 %v1802_v30, %v12948_v37  ;;  %v12964_v30 = vld [vmem:[#allocation70_spill] sm:$0xff] }
 0x1d4   : > { %v2601_v22 = vmax.f32 %v2332_v24, %v2466_v12  ;;  %8780 = vmatprep.mubr.msk.f32.mxu1 %vm2905_vm2, %v2868_v31  ;;  %v2871_v53 = vmax.f32 %v2602_v50, %v8733_v39  ;;  %v12949_v31 = vld [vmem:[#allocation34_spill] sm:$0xff]  ;;  %v12950_v50 = vld [vmem:[#allocation35_spill] sm:$0xff] }
 0x1d5   : > { %v2735_v13 = vpop.f32.mrf.mxu0  ;;  %v8664_v45 = vpop.f32.mrf.mxu1  ;;  %8781 = vmatmul.mubr.msk.f32.gmra.mxu1 %vm2905_vm2, %v2869_v63  ;;  %v1804_v63 = vmax.f32 %v1535_v27, %v12949_v31  ;;  %v12951_v39 = vld [vmem:[#allocation22_spill] sm:$0xff] }
 0x1d6   : > { %v2870_v58 = vmax.f32 %v2601_v22, %v2735_v13  ;;  %v2604_v42 = vmax.f32 %v2335_v29, %v8664_v45  ;;  %v1537_v12 = vmax.f32 %v12951_v39, %v12950_v50  ;;  %v2341_v22 = vmax.f32 %v2072_v52, %v12952_v3  ;;  %v12953_v29 = vld [vmem:[#allocation64_spill] sm:$0xff]  ;;  %v12966_v52 = vld [vmem:[#allocation41_spill] sm:$0xff] }
 0x1d7   : > { %v8736_v38 = vpop.f32.mrf.mxu0  ;;  %v2476_v62 = vpop.f32.mrf.mxu1  ;;  %v2074_v13 = vmax.f32 %v12954_v9, %v12953_v29  ;;  %v12973_v29 = vld [vmem:[#allocation43_spill] sm:$0xff] }
 0x1d8   : > { %v2603_v20 = vmax.f32 %v2334_v1, %v2476_v62  ;;  %8783 = vmatprep.mubr.msk.f32.mxu1 %vm2905_vm2, %v2870_v58  ;;  %v2873_v11 = vmax.f32 %v2604_v42, %v8736_v38  ;;  %v2340_v58 = vmax.f32 %v2071_v15, %v12955_v55  ;;  %v12969_v15 = vld [vmem:[#allocation72_spill] sm:$0xff] }
 0x1d9   : > { %v2745_v54 = vpop.f32.mrf.mxu0  ;;  %v8667_v59 = vpop.f32.mrf.mxu1  ;;  %8784 = vmatmul.mubr.msk.f32.gmra.mxu1 %vm2905_vm2, %v2871_v53  ;;  %v12956_v53 = vld [vmem:[#allocation66_spill] sm:$0xff] }
 0x1da   : > { %v2872_v57 = vmax.f32 %v2603_v20, %v2745_v54  ;;  %v2606_v56 = vmax.f32 %v2337_v48, %v8667_v59  ;;  %v2073_v42 = vmax.f32 %v1804_v63, %v12956_v53  ;;  %v12957_v48 = vld [vmem:[#allocation37_spill] sm:$0xff]  ;;  %v12959_v54 = vld [vmem:[#allocation23_spill] sm:$0xff]  ;;  %v12972_v63 = vld [vmem:[#allocation74_spill] sm:$0xff] }
 0x1db   : > { %v8739_v43 = vpop.f32.mrf.mxu0  ;;  %v2486_v33 = vpop.f32.mrf.mxu1  ;;  %v1806_v18 = vmax.f32 %v1537_v12, %v12957_v48  ;;  %v1539_v59 = vmax.f32 %v12959_v54, %v12958_v16  ;;  %v12979_v48 = vld [vmem:[#allocation77_spill] sm:$0xff] }
 0x1dc   : > { %v2605_v10 = vmax.f32 %v2336_v7, %v2486_v33  ;;  %8786 = vmatprep.mubr.msk.f32.mxu1 %vm2905_vm2, %v2872_v57  ;;  %v2875_v49 = vmax.f32 %v2606_v56, %v8739_v43  ;;  %v12960_v7 = vld [vmem:[#allocation65_spill] sm:$0xff]  ;;  %v12962_v57 = vld [vmem:[#allocation36_spill] sm:$0xff]  ;;  %v12963_v33 = vld [vmem:[#allocation67_spill] sm:$0xff] }
 0x1dd   : > { %v2755_v0 = vpop.f32.mrf.mxu0  ;;  %v8670_v28 = vpop.f32.mrf.mxu1  ;;  %8787 = vmatmul.mubr.msk.f32.gmra.mxu1 %vm2905_vm2, %v2873_v11  ;;  %v2343_v60 = vmax.f32 %v2074_v13, %v12960_v7  ;;  %v2076_v11 = vmax.f32 %v12962_v57, %v12961_v21  ;;  %v2342_v6 = vmax.f32 %v2073_v42, %v12963_v33  ;;  %v2075_v41 = vmax.f32 %v1806_v18, %v12964_v30  ;;  %v12974_v13 = vld [vmem:[#allocation44_spill] sm:$0xff]  ;;  %v12977_v42 = vld [vmem:[#allocation42_spill] sm:$0xff]  ;;  %v12981_v57 = vld [vmem:[#allocation47_spill] sm:$0xff] }
 0x1de   : > { %v2874_v46 = vmax.f32 %v2605_v10, %v2755_v0  ;;  %v2608_v32 = vmax.f32 %v2339_v51, %v8670_v28  ;;  %v1808_v40 = vmax.f32 %v1539_v59, %v12965_v17  ;;  %v12967_v0 = vld [vmem:[#allocation24_spill] sm:$0xff]  ;;  %v12985_v30 = vld [vmem:[#allocation45_spill] sm:$0xff] }
 0x1df   : > { %v8742_v24 = vpop.f32.mrf.mxu0  ;;  %v2496_v25 = vpop.f32.mrf.mxu1  ;;  %v1541_v28 = vmax.f32 %v12967_v0, %v12966_v52 }
 0x1e0   : > { %v2607_v5 = vmax.f32 %v2338_v44, %v2496_v25  ;;  %8789 = vmatprep.mubr.msk.f32.mxu1 %vm2905_vm2, %v2874_v46  ;;  %v2877_v62 = vmax.f32 %v2608_v32, %v8742_v24  ;;  %v12968_v44 = vld [vmem:[#allocation69_spill] sm:$0xff]  ;;  %v12970_v46 = vld [vmem:[#allocation39_spill] sm:$0xff]  ;;  %v2077_v50 = vmax.f32 %v1808_v40, %v12972_v63  ;;  %v12993_v63 = vld [vmem:[#allocation48_spill] sm:$0xff] }
 0x1e1   : > { %v2765_v45 = vpop.f32.mrf.mxu0  ;;  %v8673_v1 = vpop.f32.mrf.mxu1  ;;  %8790 = vmatmul.mubr.msk.f32.gmra.mxu1 %vm2905_vm2, %v2875_v49  ;;  %v2345_v37 = vmax.f32 %v2076_v11, %v12968_v44  ;;  %v2078_v49 = vmax.f32 %v12970_v46, %v12969_v15  ;;  %v12971_v25 = vld [vmem:[#allocation71_spill] sm:$0xff]  ;;  %v1810_v9 = vmax.f32 %v1541_v28, %v12973_v29  ;;  %v12982_v11 = vld [vmem:[#allocation26_spill] sm:$0xff]  ;;  %v12988_v44 = vld [vmem:[#allocation49_spill] sm:$0xff] }
 0x1e2   : > { %v2876_v38 = vmax.f32 %v2607_v5, %v2765_v45  ;;  %v2610_v35 = vmax.f32 %v2341_v22, %v8673_v1  ;;  %v2344_v31 = vmax.f32 %v2075_v41, %v12971_v25  ;;  %v12975_v45 = vld [vmem:[#allocation25_spill] sm:$0xff]  ;;  %v12989_v15 = vld [vmem:[#allocation50_spill] sm:$0xff]  ;;  %v12990_v46 = vld [vmem:[#allocation27_spill] sm:$0xff] }
 0x1e3   : > { %v8745_v14 = vpop.f32.mrf.mxu0  ;;  %v2506_v20 = vpop.f32.mrf.mxu1  ;;  %v1543_v1 = vmax.f32 %v12975_v45, %v12974_v13  ;;  %v2079_v18 = vmax.f32 %v1810_v9, %v12979_v48  ;;  %v13000_v48 = vld [vmem:[#allocation51_spill] sm:$0xff] }
 0x1e4   : > { %v2609_v26 = vmax.f32 %v2340_v58, %v2506_v20  ;;  %8792 = vmatprep.mubr.msk.f32.mxu1 %vm2905_vm2, %v2876_v38  ;;  %v2879_v27 = vmax.f32 %v2610_v35, %v8745_v14  ;;  %v12976_v58 = vld [vmem:[#allocation73_spill] sm:$0xff]  ;;  %v2080_v38 = vmax.f32 %v12977_v42, %v10860_v8  ;;  %v12978_v14 = vld [vmem:[#allocation75_spill] sm:$0xff]  ;;  %v12983_v8 = vld [vmem:[#allocation76_spill] sm:$0xff] }
 0x1e5   : > { %v2775_v56 = vpop.f32.mrf.mxu0  ;;  %v8676_v43 = vpop.f32.mrf.mxu1  ;;  %8793 = vmatmul.mubr.msk.f32.gmra.mxu1 %vm2905_vm2, %v2877_v62  ;;  %v2347_v53 = vmax.f32 %v2078_v49, %v12976_v58  ;;  %v2346_v20 = vmax.f32 %v2077_v50, %v12978_v14  ;;  %v1547_v49 = vmax.f32 %v12990_v46, %v12989_v15  ;;  %v12996_v58 = vld [vmem:[#allocation52_spill] sm:$0xff]  ;;  %v12997_v42 = vld [vmem:[#allocation53_spill] sm:$0xff] }
 0x1e6   : > { %v2878_v2 = vmax.f32 %v2609_v26, %v2775_v56  ;;  %v2612_v10 = vmax.f32 %v2343_v60, %v8676_v43  ;;  %v12980_v60 = vld [vmem:[#allocation46_spill] sm:$0xff]  ;;  %v1545_v56 = vmax.f32 %v12982_v11, %v12981_v57  ;;  %v2349_v33 = vmax.f32 %v2080_v38, %v12983_v8  ;;  %v12998_v38 = vld [vmem:[#allocation28_spill] sm:$0xff] }
 0x1e7   : > { %v8748_v23 = vpop.f32.mrf.mxu0  ;;  %v2516_v51 = vpop.f32.mrf.mxu1  ;;  %v1812_v21 = vmax.f32 %v1543_v1, %v12980_v60  ;;  %v12999_v14 = vld [vmem:[#allocation84_spill] sm:$0xff] }
 0x1e8   : > { %v2611_v47 = vmax.f32 %v2342_v6, %v2516_v51  ;;  %8795 = vmatprep.mubr.msk.f32.mxu1 %vm2905_vm2, %v2878_v2  ;;  %v2881_v12 = vmax.f32 %v2612_v10, %v8748_v23  ;;  %v12984_v6 = vld [vmem:[#allocation79_spill] sm:$0xff]  ;;  %v12986_v10 = vld [vmem:[#allocation78_spill] sm:$0xff]  ;;  %v12987_v51 = vld [vmem:[#allocation81_spill] sm:$0xff] }
 0x1e9   : > { %v2785_v32 = vpop.f32.mrf.mxu0  ;;  %v8679_v24 = vpop.f32.mrf.mxu1  ;;  %8796 = vmatmul.mubr.msk.f32.gmra.mxu1 %vm2905_vm2, %v2879_v27  ;;  %v2082_v41 = vmax.f32 %v12985_v30, %v12984_v6  ;;  %v2348_v23 = vmax.f32 %v2079_v18, %v12986_v10  ;;  %v2081_v17 = vmax.f32 %v1812_v21, %v12987_v51  ;;  %v2086_v18 = vmax.f32 %v13000_v48, %v10886_v36  ;;  %v13003_v6 = vld [vmem:[#allocation87_spill] sm:$0xff]  ;;  %v13004_v30 = vld [vmem:[#allocation54_spill] sm:$0xff]  ;;  %v13005_v10 = vld [vmem:[#allocation89_spill] sm:$0xff] }
 0x1ea   : > { %v2880_v39 = vmax.f32 %v2611_v47, %v2785_v32  ;;  %v2614_v5 = vmax.f32 %v2345_v37, %v8679_v24  ;;  %v1814_v37 = vmax.f32 %v1545_v56, %v12988_v44  ;;  %v12991_v24 = vld [vmem:[#allocation80_spill] sm:$0xff]  ;;  %v946_v48 = vld [vmem:[%s12861_s9 + $0x50] sm:$0xff] }
 0x1eb   : > { %v8751_v3 = vpop.f32.mrf.mxu0  ;;  %v2526_v22 = vpop.f32.mrf.mxu1  ;;  %v2351_v25 = vmax.f32 %v2082_v41, %v12991_v24  ;;  %v2355_v36 = vmax.f32 %v2086_v18, %v13003_v6  ;;  %v2088_v41 = vmax.f32 %v13004_v30, %v10899_v4 }
 0x1ec   : > { %v2613_v55 = vmax.f32 %v2344_v31, %v2526_v22  ;;  %8798 = vmatprep.mubr.msk.f32.mxu1 %vm2905_vm2, %v2880_v39  ;;  %v2883_v54 = vmax.f32 %v2614_v5, %v8751_v3  ;;  %v12992_v31 = vld [vmem:[#allocation83_spill] sm:$0xff]  ;;  %v12994_v5 = vld [vmem:[#allocation82_spill] sm:$0xff]  ;;  %v12995_v22 = vld [vmem:[#allocation85_spill] sm:$0xff] }
 0x1ed   : > { %v2795_v62 = vpop.f32.mrf.mxu0  ;;  %v8682_v35 = vpop.f32.mrf.mxu1  ;;  %8799 = vmatmul.mubr.msk.f32.gmra.mxu1 %vm2905_vm2, %v2881_v12  ;;  %v2084_v50 = vmax.f32 %v12993_v63, %v12992_v31  ;;  %v2350_v3 = vmax.f32 %v2081_v17, %v12994_v5  ;;  %v2083_v29 = vmax.f32 %v1814_v37, %v12995_v22  ;;  %v3637_v5 = vld [vmem:[%s9857_s20 + $0x28] sm:$0xff]  ;;  %v3636_v22 = vld [vmem:[%s9857_s20 + $0x20] sm:$0xff] }
 0x1ee   : > { %v2882_v16 = vmax.f32 %v2613_v55, %v2795_v62  ;;  %v2616_v59 = vmax.f32 %v2347_v53, %v8682_v35  ;;  %v1816_v53 = vmax.f32 %v1547_v49, %v12996_v58  ;;  %v1549_v62 = vmax.f32 %v12998_v38, %v12997_v42 }
 0x1ef   : > { %v8754_v26 = vpop.f32.mrf.mxu0  ;;  %v2536_v7 = vpop.f32.mrf.mxu1 }
 0x1f0   : > { %v2615_v43 = vmax.f32 %v2346_v20, %v2536_v7  ;;  %8801 = vmatprep.mubr.msk.f32.mxu1 %vm2905_vm2, %v2882_v16  ;;  %v2885_v52 = vmax.f32 %v2616_v59, %v8754_v26  ;;  %v2353_v20 = vmax.f32 %v2084_v50, %v12999_v14  ;;  %v13001_v59 = vld [vmem:[#allocation86_spill] sm:$0xff]  ;;  %v2085_v7 = vmax.f32 %v1816_v53, %v10890_v34 }
 0x1f1   : > { %v2805_v2 = vpop.f32.mrf.mxu0  ;;  %v8685_v27 = vpop.f32.mrf.mxu1  ;;  %8802 = vmatmul.mubr.msk.f32.gmra.mxu1 %vm2905_vm2, %v2883_v54  ;;  %v2352_v26 = vmax.f32 %v2083_v29, %v13001_v59  ;;  %v3635_v29 = vld [vmem:[%s9857_s20 + $0x18] sm:$0xff] }
 0x1f2   : > { %v2884_v40 = vmax.f32 %v2615_v43, %v2805_v2  ;;  %v2618_v0 = vmax.f32 %v2349_v33, %v8685_v27  ;;  %v13002_v43 = vld [vmem:[#allocation55_spill] sm:$0xff]  ;;  %v2354_v34 = vmax.f32 %v2085_v7, %v10897_v19 }
 0x1f3   : > { %v8757_v28 = vpop.f32.mrf.mxu0  ;;  %v2546_v47 = vpop.f32.mrf.mxu1  ;;  %v1818_v8 = vmax.f32 %v1549_v62, %v13002_v43 }
 0x1f4   : > { %v2617_v32 = vmax.f32 %v2348_v23, %v2546_v47  ;;  %8804 = vmatprep.mubr.msk.f32.mxu1 %vm2905_vm2, %v2884_v40  ;;  %v2887_v13 = vmax.f32 %v2618_v0, %v8757_v28  ;;  %v13006_v47 = vld [vmem:[#allocation88_spill] sm:$0xff] }
 0x1f5   : > { %v2815_v39 = vpop.f32.mrf.mxu0  ;;  %v8688_v12 = vpop.f32.mrf.mxu1  ;;  %8805 = vmatmul.mubr.msk.f32.gmra.mxu1 %vm2905_vm2, %v2885_v52  ;;  %v2087_v23 = vmax.f32 %v1818_v8, %v13005_v10  ;;  %v2357_v44 = vmax.f32 %v2088_v41, %v13006_v47 }
 0x1f6   : > { %v2886_v9 = vmax.f32 %v2617_v32, %v2815_v39  ;;  %v2620_v45 = vmax.f32 %v2351_v25, %v8688_v12  ;;  %v3639_v39 = vld [vmem:[%s9857_s20 + $0x38] sm:$0xff]  ;;  %v3638_v12 = vld [vmem:[%s9857_s20 + $0x30] sm:$0xff] }
 0x1f7   : > { %v8760_v1 = vpop.f32.mrf.mxu0  ;;  %v2556_v55 = vpop.f32.mrf.mxu1  ;;  %v2356_v15 = vmax.f32 %v2087_v23, %v10912_v61  ;;  %v3263_v61 = vld [vmem:[%s9837_s24] sm:$0xff]  ;;  %8886 = vmatprep.subr.mxu1 %v3639_v39 }
 0x1f8   : > { %v2619_v35 = vmax.f32 %v2350_v3, %v2556_v55  ;;  %8807 = vmatprep.mubr.msk.f32.mxu1 %vm2905_vm2, %v2886_v9  ;;  %v2889_v21 = vmax.f32 %v2620_v45, %v8760_v1  ;;  %8836 = vmatprep.subr.mxu0 %v3263_v61  ;;  %v947_v3 = vld [vmem:[%s12861_s9 + $0x58] sm:$0xff]  ;;  %v3634_v9 = vld [vmem:[%s9857_s20 + $0x10] sm:$0xff]  ;;  %v11070_v45 = vld [vmem:[%s9832_s19] ss:$0 sm:$0xff] }
 0x1f9   : > { %v2825_v16 = vpop.f32.mrf.mxu0  ;;  %v8691_v54 = vpop.f32.mrf.mxu1  ;;  %8808 = vmatmul.mubr.msk.f32.gmra.mxu1 %vm2905_vm2, %v2887_v13  ;;  %8837 = vmatpush3.msra.mxu0 %v3263_v61  ;;  %v3633_v13 = vld [vmem:[%s9857_s20 + $0x8] sm:$0xff] }
 0x1fa   : > { %v2888_v60 = vmax.f32 %v2619_v35, %v2825_v16  ;;  %v2622_v57 = vmax.f32 %v2353_v20, %v8691_v54  ;;  %8887 = vmatpush3.msra.mxu1 %v3639_v39  ;;  %8950 = vmatprep.subr.mxu0 %v947_v3  ;;  %v945_v54 = vld [vmem:[%s12861_s9 + $0x48] sm:$0xff] }
 0x1fb   : > { %v8763_v11 = vpop.f32.mrf.mxu0  ;;  %v2566_v56 = vpop.f32.mrf.mxu1  ;;  %8888 = vmatprep.subr.mxu1 %v3638_v12 }
 0x1fc   : > { %v2621_v33 = vmax.f32 %v2352_v26, %v2566_v56  ;;  %8810 = vmatprep.mubr.msk.f32.mxu1 %vm2905_vm2, %v2888_v60  ;;  %v2891_v17 = vmax.f32 %v2622_v57, %v8763_v11  ;;  %8889 = vmatpush3.msra.mxu1 %v3638_v12  ;;  %v943_v56 = vld [vmem:[%s12861_s9 + $0x38] sm:$0xff] }
 0x1fd   : > { %v2835_v2 = vpop.f32.mrf.mxu0  ;;  %v8694_v27 = vpop.f32.mrf.mxu1  ;;  %8811 = vmatmul.mubr.msk.f32.gmra.mxu1 %vm2905_vm2, %v2889_v21  ;;  %8890 = vmatprep.subr.mxu1 %v3637_v5  ;;  %v944_v21 = vld [vmem:[%s12861_s9 + $0x40] sm:$0xff] }
 0x1fe   : > { %v2890_v51 = vmax.f32 %v2621_v33, %v2835_v2  ;;  %v2624_v40 = vmax.f32 %v2355_v36, %v8694_v27  ;;  %8891 = vmatpush3.msra.mxu1 %v3637_v5  ;;  %v942_v36 = vld [vmem:[%s12861_s9 + $0x30] sm:$0xff]  ;;  %v941_v2 = vld [vmem:[%s12861_s9 + $0x28] sm:$0xff] }
 0x1ff   : > { %v8766_v52 = vpop.f32.mrf.mxu0  ;;  %v2576_v0 = vpop.f32.mrf.mxu1  ;;  %8892 = vmatprep.subr.mxu1 %v3636_v22 }
 0x200   : > { %v2623_v28 = vmax.f32 %v2354_v34, %v2576_v0  ;;  %8813 = vmatprep.mubr.msk.f32.mxu1 %vm2905_vm2, %v2890_v51  ;;  %v2893_v46 = vmax.f32 %v2624_v40, %v8766_v52  ;;  %8893 = vmatpush3.msra.mxu1 %v3636_v22 }
 0x201   : > { %v2845_v37 = vpop.f32.mrf.mxu0  ;;  %v8697_v4 = vpop.f32.mrf.mxu1  ;;  %8814 = vmatmul.mubr.msk.f32.gmra.mxu1 %vm2905_vm2, %v2891_v17  ;;  %8894 = vmatprep.subr.mxu1 %v3635_v29 }
 0x202   : > { %v2892_v19 = vmax.f32 %v2623_v28, %v2845_v37  ;;  %v2626_v49 = vmax.f32 %v2357_v44, %v8697_v4  ;;  %8895 = vmatpush3.msra.mxu1 %v3635_v29 }
 0x203   : > { %v8769_v32 = vpop.f32.mrf.mxu0  ;;  %v2586_v24 = vpop.f32.mrf.mxu1  ;;  %8896 = vmatprep.subr.mxu1 %v3634_v9 }
 0x204   : > { %v2625_v25 = vmax.f32 %v2356_v15, %v2586_v24  ;;  %8816 = vmatprep.mubr.msk.f32.mxu1 %vm2905_vm2, %v2892_v19  ;;  %v2895_v50 = vmax.f32 %v2626_v49, %v8769_v32  ;;  %8897 = vmatpush3.msra.mxu1 %v3634_v9 }
 0x205   : > { %v2855_v31 = vpop.f32.mrf.mxu0  ;;  %8817 = vmatmul.mubr.msk.f32.gmra.mxu1 %vm2905_vm2, %v2893_v46  ;;  %8898 = vmatprep.subr.mxu1 %v3633_v13 }
 0x206   : > { %v2894_v63 = vmax.f32 %v2625_v25, %v2855_v31  ;;  %8899 = vmatpush3.msra.mxu1 %v3633_v13 }
 0x208   : > { %8819 = vmatprep.mubr.msk.f32.mxu1 %vm2905_vm2, %v2894_v63 }
 0x209   : > { %8820 = vmatmul.mubr.msk.f32.gmra.mxu1 %vm2905_vm2, %v2895_v50 }
 0x28d   : > { %v8776_v1 = vpop.f32.mrf.mxu1 }
 0x28e   : > { %v3078_v55 = vadd.f32 %v8776_v1, %v11070_v45 }
 0x28f   : > { %v3072_v58 = vpop.f32.mrf.mxu1 }
 0x290   : > { %v3073_v53 = vadd.f32 %v11070_v45, %v3072_v58  ;;  %v3232_v62 = vmax.f32 %v3078_v55, 0.0 }
 0x291   : > { %v8779_v42 = vpop.f32.mrf.mxu1 }
 0x292   : > { %v3231_v38 = vmax.f32 %v3073_v53, 0.0  ;;  %v3088_v35 = vadd.f32 %v8779_v42, %v11070_v45 }
 0x293   : > { %v3082_v14 = vpop.f32.mrf.mxu1 }
 0x294   : > { %v3083_v20 = vadd.f32 %v11070_v45, %v3082_v14  ;;  %8838 = vmatprep.mubr.msk.f32.mxu0 %vm3278_vm3, %v3231_v38  ;;  %v3234_v59 = vmax.f32 %v3088_v35, 0.0 }
 0x295   : > { %v8782_v18 = vpop.f32.mrf.mxu1  ;;  %8839 = vmatmul.mubr.msk.f32.vlgmr.msra.gmra.mxu0 %vm3278_vm3, %v3232_v62 }
 0x296   : > { %v3233_v16 = vmax.f32 %v3083_v20, 0.0  ;;  %8951 = vmatpush3.msra.mxu0 %v947_v3  ;;  %v3098_v26 = vadd.f32 %v8782_v18, %v11070_v45 }
 0x297   : > { %v3092_v7 = vpop.f32.mrf.mxu1  ;;  %8952 = vmatprep.subr.mxu0 %v946_v48 }
 0x298   : > { %v3093_v60 = vadd.f32 %v11070_v45, %v3092_v7  ;;  %8841 = vmatprep.mubr.msk.f32.mxu0 %vm3278_vm3, %v3233_v16  ;;  %8953 = vmatpush3.msra.mxu0 %v946_v48  ;;  %v3236_v43 = vmax.f32 %v3098_v26, 0.0 }
 0x299   : > { %v8785_v57 = vpop.f32.mrf.mxu1  ;;  %8842 = vmatmul.mubr.msk.f32.gmra.mxu0 %vm3278_vm3, %v3234_v59  ;;  %8954 = vmatprep.subr.mxu0 %v945_v54 }
 0x29a   : > { %v3235_v11 = vmax.f32 %v3093_v60, 0.0  ;;  %8955 = vmatpush3.msra.mxu0 %v945_v54  ;;  %v3108_v8 = vadd.f32 %v8785_v57, %v11070_v45 }
 0x29b   : > { %v3102_v33 = vpop.f32.mrf.mxu1  ;;  %8956 = vmatprep.subr.mxu0 %v944_v21 }
 0x29c   : > { %v3103_v6 = vadd.f32 %v11070_v45, %v3102_v33  ;;  %8844 = vmatprep.mubr.msk.f32.mxu0 %vm3278_vm3, %v3235_v11  ;;  %8957 = vmatpush3.msra.mxu0 %v944_v21  ;;  %v3238_v27 = vmax.f32 %v3108_v8, 0.0 }
 0x29d   : > { %v8788_v30 = vpop.f32.mrf.mxu1  ;;  %8845 = vmatmul.mubr.msk.f32.gmra.mxu0 %vm3278_vm3, %v3236_v43  ;;  %8958 = vmatprep.subr.mxu0 %v943_v56 }
 0x29e   : > { %v3237_v41 = vmax.f32 %v3103_v6, 0.0  ;;  %8959 = vmatpush3.msra.mxu0 %v943_v56  ;;  %v3118_v34 = vadd.f32 %v8788_v30, %v11070_v45 }
 0x29f   : > { %v3112_v10 = vpop.f32.mrf.mxu1  ;;  %8960 = vmatprep.subr.mxu0 %v942_v36 }
 0x2a0   : > { %v3113_v23 = vadd.f32 %v11070_v45, %v3112_v10  ;;  %8847 = vmatprep.mubr.msk.f32.mxu0 %vm3278_vm3, %v3237_v41  ;;  %8961 = vmatpush3.msra.mxu0 %v942_v36  ;;  %v3240_v40 = vmax.f32 %v3118_v34, 0.0 }
 0x2a1   : > { %v8791_v51 = vpop.f32.mrf.mxu1  ;;  %8848 = vmatmul.mubr.msk.f32.gmra.mxu0 %vm3278_vm3, %v3238_v27  ;;  %8962 = vmatprep.subr.mxu0 %v941_v2 }
 0x2a2   : > { %v3239_v17 = vmax.f32 %v3113_v23, 0.0  ;;  %8963 = vmatpush3.msra.mxu0 %v941_v2  ;;  %v3128_v52 = vadd.f32 %v8791_v51, %v11070_v45 }
 0x2a3   : > { %v3122_v0 = vpop.f32.mrf.mxu1 }
 0x2a4   : > { %v3123_v28 = vadd.f32 %v11070_v45, %v3122_v0  ;;  %8850 = vmatprep.mubr.msk.f32.mxu0 %vm3278_vm3, %v3239_v17  ;;  %v3242_v37 = vmax.f32 %v3128_v52, 0.0 }
 0x2a5   : > { %v8794_v47 = vpop.f32.mrf.mxu1  ;;  %8851 = vmatmul.mubr.msk.f32.gmra.mxu0 %vm3278_vm3, %v3240_v40 }
 0x2a6   : > { %v3241_v44 = vmax.f32 %v3123_v28, 0.0  ;;  %v3138_v4 = vadd.f32 %v8794_v47, %v11070_v45  ;;  %v11143_v28 = vld [vmem:[%s9980_s7] sm:$0xff] }
 0x2a7   : > { %v3132_v15 = vpop.f32.mrf.mxu1  ;;  %v940_v47 = vld [vmem:[%s12861_s9 + $0x20] sm:$0xff] }
 0x2a8   : > { %v3133_v19 = vadd.f32 %v11070_v45, %v3132_v15  ;;  %8853 = vmatprep.mubr.msk.f32.mxu0 %vm3278_vm3, %v3241_v44  ;;  %v3244_v32 = vmax.f32 %v3138_v4, 0.0  ;;  %8964 = vmatprep.subr.mxu0 %v940_v47  ;;  %v939_v44 = vld [vmem:[%s12861_s9 + $0x18] sm:$0xff]  ;;  %v937_v4 = vld [vmem:[%s12861_s9 + $0x8] sm:$0xff]  ;;  %v936_v15 = vld [vmem:[%s12861_s9] sm:$0xff] }
 0x2a9   : > { %v8797_v46 = vpop.f32.mrf.mxu1  ;;  %8854 = vmatmul.mubr.msk.f32.gmra.mxu0 %vm3278_vm3, %v3242_v37  ;;  %v938_v37 = vld [vmem:[%s12861_s9 + $0x10] sm:$0xff]  ;;  %s9686_s9 = sshll.u32 %s9771_s8, 4  ;;  %s9687_s9 = int_to_ptr.vmem [resolvable:$false] %s9686_s9 }
 0x2aa   : > { %v3243_v49 = vmax.f32 %v3133_v19, 0.0  ;;  %v3148_v24 = vadd.f32 %v8797_v46, %v11070_v45  ;;  %8965 = vmatpush3.msra.mxu0 %v940_v47  ;;  %v11154_v19 = vld [vmem:[%s12863_s6 + $0x38] sm:$0xff]  ;;  %v11158_v46 = vld [vmem:[%s9980_s7 + $0x8] sm:$0xff] }
 0x2ab   : > { %v3142_v25 = vpop.f32.mrf.mxu1  ;;  %8966 = vmatprep.subr.mxu0 %v939_v44 }
 0x2ac   : > { %v3143_v31 = vadd.f32 %v11070_v45, %v3142_v25  ;;  %8856 = vmatprep.mubr.msk.f32.mxu0 %vm3278_vm3, %v3243_v49  ;;  %v3246_v61 = vmax.f32 %v3148_v24, 0.0  ;;  %8967 = vmatpush3.msra.mxu0 %v939_v44  ;;  %v11163_v49 = vld [vmem:[%s9980_s7 + $0x10] sm:$0xff]  ;;  %v11173_v24 = vld [vmem:[%s9980_s7 + $0x20] sm:$0xff]  ;;  %v11178_v25 = vld [vmem:[%s9980_s7 + $0x28] sm:$0xff] }
 0x2ad   : > { %v8800_v63 = vpop.f32.mrf.mxu1  ;;  %8857 = vmatmul.mubr.msk.f32.gmra.mxu0 %vm3278_vm3, %v3244_v32  ;;  %8968 = vmatprep.subr.mxu0 %v938_v37  ;;  %v11168_v32 = vld [vmem:[%s9980_s7 + $0x18] sm:$0xff]  ;;  %v4195_v44 = vld [vmem:[%s12863_s6 + $0x10] sm:$0xff] }
 0x2ae   : > { %v3245_v50 = vmax.f32 %v3143_v31, 0.0  ;;  %v3158_v39 = vadd.f32 %v8800_v63, %v11070_v45  ;;  %8969 = vmatpush3.msra.mxu0 %v938_v37  ;;  %v11183_v31 = vld [vmem:[%s9980_s7 + $0x30] sm:$0xff]  ;;  %v11188_v63 = vld [vmem:[%s9980_s7 + $0x38] sm:$0xff] }
 0x2af   : > { %v3152_v12 = vpop.f32.mrf.mxu1  ;;  %8970 = vmatprep.subr.mxu0 %v937_v4 }
 0x2b0   : > { %v3153_v5 = vadd.f32 %v11070_v45, %v3152_v12  ;;  %8859 = vmatprep.mubr.msk.f32.mxu0 %vm3278_vm3, %v3245_v50  ;;  %v3248_v29 = vmax.f32 %v3158_v39, 0.0  ;;  %8971 = vmatpush3.msra.mxu0 %v937_v4  ;;  %v11193_v50 = vld [vmem:[%s9980_s7 + $0x40] sm:$0xff]  ;;  %v11203_v39 = vld [vmem:[%s9980_s7 + $0x50] sm:$0xff]  ;;  %v11208_v12 = vld [vmem:[%s9980_s7 + $0x58] sm:$0xff] }
 0x2b1   : > { %v8803_v3 = vpop.f32.mrf.mxu1  ;;  %8860 = vmatmul.mubr.msk.f32.gmra.mxu0 %vm3278_vm3, %v3246_v61  ;;  %8972 = vmatprep.subr.mxu0 %v936_v15  ;;  %v11198_v61 = vld [vmem:[%s9980_s7 + $0x48] sm:$0xff] }
 0x2b2   : > { %v3247_v22 = vmax.f32 %v3153_v5, 0.0  ;;  %v3168_v9 = vadd.f32 %v8803_v3, %v11070_v45  ;;  %8973 = vmatpush3.msra.mxu0 %v936_v15  ;;  %v11213_v5 = vld [vmem:[%s9980_s7 + $0x60] sm:$0xff]  ;;  %v11218_v3 = vld [vmem:[%s9980_s7 + $0x68] sm:$0xff] }
 0x2b3   : > { %v3162_v13 = vpop.f32.mrf.mxu1  ;;  %v4194_v15 = vld [vmem:[%s12863_s6 + $0x8] sm:$0xff] }
 0x2b4   : > { %v3163_v1 = vadd.f32 %v11070_v45, %v3162_v13  ;;  %8862 = vmatprep.mubr.msk.f32.mxu0 %vm3278_vm3, %v3247_v22  ;;  %v3250_v53 = vmax.f32 %v3168_v9, 0.0  ;;  %v11223_v22 = vld [vmem:[%s9980_s7 + $0x70] sm:$0xff]  ;;  %v11233_v9 = vld [vmem:[%s9980_s7 + $0x80] sm:$0xff]  ;;  %v11238_v13 = vld [vmem:[%s9980_s7 + $0x88] sm:$0xff] }
 0x2b5   : > { %v8806_v55 = vpop.f32.mrf.mxu1  ;;  %8863 = vmatmul.mubr.msk.f32.gmra.mxu0 %vm3278_vm3, %v3248_v29  ;;  %v11228_v29 = vld [vmem:[%s9980_s7 + $0x78] sm:$0xff] }
 0x2b6   : > { %v3249_v58 = vmax.f32 %v3163_v1, 0.0  ;;  %v3178_v42 = vadd.f32 %v8806_v55, %v11070_v45  ;;  %v11243_v1 = vld [vmem:[%s9980_s7 + $0x90] sm:$0xff]  ;;  %v11248_v55 = vld [vmem:[%s9980_s7 + $0x98] sm:$0xff] }
 0x2b7   : > { %v3172_v38 = vpop.f32.mrf.mxu1 }
 0x2b8   : > { %v3173_v62 = vadd.f32 %v11070_v45, %v3172_v38  ;;  %8865 = vmatprep.mubr.msk.f32.mxu0 %vm3278_vm3, %v3249_v58  ;;  %v3252_v20 = vmax.f32 %v3178_v42, 0.0  ;;  %v11253_v58 = vld [vmem:[%s9980_s7 + $0xa0] sm:$0xff]  ;;  %v11263_v42 = vld [vmem:[%s9980_s7 + $0xb0] sm:$0xff]  ;;  %v11268_v38 = vld [vmem:[%s9980_s7 + $0xb8] sm:$0xff] }
 0x2b9   : > { %v8809_v35 = vpop.f32.mrf.mxu1  ;;  %8866 = vmatmul.mubr.msk.f32.gmra.mxu0 %vm3278_vm3, %v3250_v53  ;;  %v11258_v53 = vld [vmem:[%s9980_s7 + $0xa8] sm:$0xff] }
 0x2ba   : > { %v3251_v14 = vmax.f32 %v3173_v62, 0.0  ;;  %v3188_v48 = vadd.f32 %v8809_v35, %v11070_v45  ;;  %v11273_v62 = vld [vmem:[%s9980_s7 + $0xc0] sm:$0xff]  ;;  %v11278_v35 = vld [vmem:[%s9980_s7 + $0xc8] sm:$0xff] }
 0x2bb   : > { %v3182_v18 = vpop.f32.mrf.mxu1  ;;  %13008 = vst [vmem:[#allocation29_spill] sm:$0xff] %v11278_v35 }
 0x2bc   : > { %v3183_v16 = vadd.f32 %v11070_v45, %v3182_v18  ;;  %8868 = vmatprep.mubr.msk.f32.mxu0 %vm3278_vm3, %v3251_v14  ;;  %v3254_v26 = vmax.f32 %v3188_v48, 0.0  ;;  %v11283_v14 = vld [vmem:[%s9980_s7 + $0xd0] sm:$0xff]  ;;  %v11293_v48 = vld [vmem:[%s9980_s7 + $0xe0] sm:$0xff]  ;;  %v11298_v18 = vld [vmem:[%s9980_s7 + $0xe8] sm:$0xff] }
 0x2bd   : > { %v8812_v54 = vpop.f32.mrf.mxu1  ;;  %8869 = vmatmul.mubr.msk.f32.gmra.mxu0 %vm3278_vm3, %v3252_v20  ;;  %13009 = vst [vmem:[#allocation56_spill] sm:$0xff] %v11283_v14  ;;  %v11288_v20 = vld [vmem:[%s9980_s7 + $0xd8] sm:$0xff]  ;;  %13011 = vst [vmem:[#allocation31_spill] sm:$0xff] %v11293_v48 }
 0x2be   : > { %v3253_v59 = vmax.f32 %v3183_v16, 0.0  ;;  %v3198_v7 = vadd.f32 %v8812_v54, %v11070_v45  ;;  %13010 = vst [vmem:[#allocation58_spill] sm:$0xff] %v11288_v20  ;;  %13012 = vst [vmem:[#allocation32_spill] sm:$0xff] %v11298_v18  ;;  %v9678_v16 = vld [vmem:[%s9980_s7 + $0xf0] sm:$0xff]  ;;  %v9679_v54 = vld [vmem:[%s9980_s7 + $0xf8] sm:$0xff] }
 0x2bf   : > { %v3192_v60 = vpop.f32.mrf.mxu1 }
 0x2c0   : > { %v3193_v21 = vadd.f32 %v11070_v45, %v3192_v60  ;;  %8871 = vmatprep.mubr.msk.f32.mxu0 %vm3278_vm3, %v3253_v59  ;;  %v3256_v56 = vmax.f32 %v3198_v7, 0.0  ;;  %v11307_v59 = vld [vmem:[%s13007_s10] ss:$0 sm:$0xff]  ;;  %s13045_s10 = sld [smem:[#allocation15_spill]] }
 0x2c1   : > { %v8815_v57 = vpop.f32.mrf.mxu1  ;;  %8872 = vmatmul.mubr.msk.f32.gmra.mxu0 %vm3278_vm3, %v3254_v26 }
 0x2c2   : > { %v3255_v11 = vmax.f32 %v3193_v21, 0.0  ;;  %v3208_v43 = vadd.f32 %v8815_v57, %v11070_v45 }
 0x2c3   : > { %v3202_v8 = vpop.f32.mrf.mxu1 }
 0x2c4   : > { %v3203_v33 = vadd.f32 %v11070_v45, %v3202_v8  ;;  %8874 = vmatprep.mubr.msk.f32.mxu0 %vm3278_vm3, %v3255_v11  ;;  %v3258_v30 = vmax.f32 %v3208_v43, 0.0 }
 0x2c5   : > { %v8818_v6 = vpop.f32.mrf.mxu1  ;;  %8875 = vmatmul.mubr.msk.f32.gmra.mxu0 %vm3278_vm3, %v3256_v56 }
 0x2c6   : > { %v3257_v36 = vmax.f32 %v3203_v33, 0.0  ;;  %v3218_v41 = vadd.f32 %v8818_v6, %v11070_v45  ;;  %v4199_v6 = vld [vmem:[%s12863_s6 + $0x30] sm:$0xff] }
 0x2c7   : > { %v3212_v2 = vpop.f32.mrf.mxu1 }
 0x2c8   : > { %v3213_v27 = vadd.f32 %v11070_v45, %v3212_v2  ;;  %8877 = vmatprep.mubr.msk.f32.mxu0 %vm3278_vm3, %v3257_v36  ;;  %v3260_v23 = vmax.f32 %v3218_v41, 0.0  ;;  %v4198_v41 = vld [vmem:[%s12863_s6 + $0x28] sm:$0xff] }
 0x2c9   : > { %v8821_v34 = vpop.f32.mrf.mxu1  ;;  %8878 = vmatmul.mubr.msk.f32.gmra.mxu0 %vm3278_vm3, %v3258_v30 }
 0x2ca   : > { %v3259_v10 = vmax.f32 %v3213_v27, 0.0  ;;  %v3228_v51 = vadd.f32 %v8821_v34, %v11070_v45 }
 0x2cb   : > { %v3222_v17 = vpop.f32.mrf.mxu1 }
 0x2cc   : > { %v3223_v40 = vadd.f32 %v11070_v45, %v3222_v17  ;;  %8880 = vmatprep.mubr.msk.f32.mxu0 %vm3278_vm3, %v3259_v10  ;;  %v3262_v0 = vmax.f32 %v3228_v51, 0.0  ;;  %v3632_v45 = vld [vmem:[%s9857_s20] sm:$0xff] }
 0x2cd   : > { %8881 = vmatmul.mubr.msk.f32.gmra.mxu0 %vm3278_vm3, %v3260_v23  ;;  %8900 = vmatprep.subr.mxu1 %v3632_v45  ;;  %v4197_v23 = vld [vmem:[%s12863_s6 + $0x20] sm:$0xff] }
 0x2ce   : > { %v3261_v52 = vmax.f32 %v3223_v40, 0.0  ;;  %8901 = vmatpush3.msra.mxu1 %v3632_v45  ;;  %v4196_v40 = vld [vmem:[%s12863_s6 + $0x18] sm:$0xff] }
 0x2cf   : > { %9022 = vmatprep.subr.mxu1 %v11154_v19 }
 0x2d0   : > { %8883 = vmatprep.mubr.msk.f32.mxu0 %vm3278_vm3, %v3261_v52 }
 0x2d1   : > { %8884 = vmatmul.mubr.msk.f32.gmra.mxu0 %vm3278_vm3, %v3262_v0 }
 0x2d2   : > { %8974 = vmatprep.mubr.msk.f32.mxu0 %vm960_vm0, %v11143_v28 }
 0x2d5   : > { %8975 = vmatmul.mubr.msk.f32.vlgmr.msra.gmra.mxu0 %vm960_vm0, %v11158_v46 }
 0x2d6   : > { %8977 = vmatprep.mubr.msk.f32.mxu0 %vm960_vm0, %v11163_v49 }
 0x2d9   : > { %8978 = vmatmul.mubr.msk.f32.gmra.mxu0 %vm960_vm0, %v11168_v32 }
 0x2da   : > { %8980 = vmatprep.mubr.msk.f32.mxu0 %vm960_vm0, %v11173_v24 }
 0x2dd   : > { %8981 = vmatmul.mubr.msk.f32.gmra.mxu0 %vm960_vm0, %v11178_v25 }
 0x2de   : > { %8983 = vmatprep.mubr.msk.f32.mxu0 %vm960_vm0, %v11183_v31 }
 0x2e1   : > { %8984 = vmatmul.mubr.msk.f32.gmra.mxu0 %vm960_vm0, %v11188_v63 }
 0x2e2   : > { %8986 = vmatprep.mubr.msk.f32.mxu0 %vm960_vm0, %v11193_v50 }
 0x2e5   : > { %8987 = vmatmul.mubr.msk.f32.gmra.mxu0 %vm960_vm0, %v11198_v61 }
 0x2e6   : > { %8989 = vmatprep.mubr.msk.f32.mxu0 %vm960_vm0, %v11203_v39 }
 0x2e9   : > { %8990 = vmatmul.mubr.msk.f32.gmra.mxu0 %vm960_vm0, %v11208_v12 }
 0x2ea   : > { %8992 = vmatprep.mubr.msk.f32.mxu0 %vm960_vm0, %v11213_v5 }
 0x2ed   : > { %8993 = vmatmul.mubr.msk.f32.gmra.mxu0 %vm960_vm0, %v11218_v3 }
 0x2ee   : > { %8995 = vmatprep.mubr.msk.f32.mxu0 %vm960_vm0, %v11223_v22 }
 0x2f1   : > { %8996 = vmatmul.mubr.msk.f32.gmra.mxu0 %vm960_vm0, %v11228_v29 }
 0x2f2   : > { %8998 = vmatprep.mubr.msk.f32.mxu0 %vm960_vm0, %v11233_v9 }
 0x2f5   : > { %8999 = vmatmul.mubr.msk.f32.gmra.mxu0 %vm960_vm0, %v11238_v13 }
 0x2f6   : > { %9001 = vmatprep.mubr.msk.f32.mxu0 %vm960_vm0, %v11243_v1 }
 0x2f9   : > { %9002 = vmatmul.mubr.msk.f32.gmra.mxu0 %vm960_vm0, %v11248_v55 }
 0x2fa   : > { %9004 = vmatprep.mubr.msk.f32.mxu0 %vm960_vm0, %v11253_v58 }
 0x2fd   : > { %9005 = vmatmul.mubr.msk.f32.gmra.mxu0 %vm960_vm0, %v11258_v53 }
 0x2fe   : > { %9007 = vmatprep.mubr.msk.f32.mxu0 %vm960_vm0, %v11263_v42 }
 0x301   : > { %9008 = vmatmul.mubr.msk.f32.gmra.mxu0 %vm960_vm0, %v11268_v38 }
 0x302   : > { %9010 = vmatprep.mubr.msk.f32.mxu0 %vm960_vm0, %v11273_v62 }
 0x305   : > { %9011 = vmatmul.mubr.msk.f32.gmra.mxu0 %vm960_vm0, %v11278_v35 }
 0x306   : > { %9013 = vmatprep.mubr.msk.f32.mxu0 %vm960_vm0, %v11283_v14 }
 0x309   : > { %9014 = vmatmul.mubr.msk.f32.gmra.mxu0 %vm960_vm0, %v11288_v20 }
 0x30a   : > { %9016 = vmatprep.mubr.msk.f32.mxu0 %vm960_vm0, %v11293_v48 }
 0x30d   : > { %9017 = vmatmul.mubr.msk.f32.gmra.mxu0 %vm960_vm0, %v11298_v18 }
 0x30e   : > { %9019 = vmatprep.mubr.msk.f32.mxu0 %vm960_vm0, %v9678_v16 }
 0x311   : > { %9020 = vmatmul.mubr.msk.f32.gmra.mxu0 %vm960_vm0, %v9679_v54 }
 0x355   : > { %v8840_v26 = vpop.f32.mrf.mxu0 }
 0x356   : > { %v11310_v7 = vadd.f32 %v8840_v26, %v11307_v59 }
 0x357   : > { %v3441_v60 = vpop.f32.mrf.mxu0 }
 0x358   : > { %v11313_v21 = vadd.f32 %v11307_v59, %v3441_v60  ;;  %v12818_v56 = vmax.f32 %v11310_v7, 0.0  ;;  %v4193_v60 = vld [vmem:[%s12863_s6] sm:$0xff]  ;;  %s13217_s6 = sand.u32 1, %s9734_s23  }
 0x359   : > { %v8843_v57 = vpop.f32.mrf.mxu0 }
 0x35a   : > { %v12821_v11 = vmax.f32 %v11313_v21, 0.0  ;;  %v11318_v43 = vadd.f32 %v8843_v57, %v11307_v59 }
 0x35b   : > { %v3451_v8 = vpop.f32.mrf.mxu0 }
 0x35c   : > { %v11321_v33 = vadd.f32 %v11307_v59, %v3451_v8  ;;  %8902 = vmatprep.mubr.msk.f32.mxu1 %vm3278_vm3, %v12821_v11  ;;  %v12814_v2 = vmax.f32 %v11318_v43, 0.0 }
 0x35d   : > { %v8846_v36 = vpop.f32.mrf.mxu0  ;;  %8903 = vmatmul.mubr.msk.f32.vlgmr.msra.gmra.mxu1 %vm3278_vm3, %v12818_v56 }
 0x35e   : > { %v12817_v30 = vmax.f32 %v11321_v33, 0.0  ;;  %9023 = vmatpush3.msra.mxu1 %v11154_v19  ;;  %v11335_v27 = vadd.f32 %v8846_v36, %v11307_v59 }
 0x35f   : > { %v3461_v34 = vpop.f32.mrf.mxu0  ;;  %9024 = vmatprep.subr.mxu1 %v4199_v6 }
 0x360   : > { %v11338_v10 = vadd.f32 %v11307_v59, %v3461_v34  ;;  %8905 = vmatprep.mubr.msk.f32.mxu1 %vm3278_vm3, %v12817_v30  ;;  %9025 = vmatpush3.msra.mxu1 %v4199_v6  ;;  %v12810_v52 = vmax.f32 %v11335_v27, 0.0 }
 0x361   : > { %v8849_v51 = vpop.f32.mrf.mxu0  ;;  %8906 = vmatmul.mubr.msk.f32.gmra.mxu1 %vm3278_vm3, %v12814_v2  ;;  %9026 = vmatprep.subr.mxu1 %v4198_v41 }
 0x362   : > { %v12813_v17 = vmax.f32 %v11338_v10, 0.0  ;;  %9027 = vmatpush3.msra.mxu1 %v4198_v41  ;;  %v11351_v0 = vadd.f32 %v8849_v51, %v11307_v59 }
 0x363   : > { %v3471_v47 = vpop.f32.mrf.mxu0  ;;  %9028 = vmatprep.subr.mxu1 %v4197_v23 }
 0x364   : > { %v11354_v45 = vadd.f32 %v11307_v59, %v3471_v47  ;;  %8908 = vmatprep.mubr.msk.f32.mxu1 %vm3278_vm3, %v12813_v17  ;;  %9029 = vmatpush3.msra.mxu1 %v4197_v23  ;;  %v12806_v19 = vmax.f32 %v11351_v0, 0.0 }
 0x365   : > { %v8852_v37 = vpop.f32.mrf.mxu0  ;;  %8909 = vmatmul.mubr.msk.f32.gmra.mxu1 %vm3278_vm3, %v12810_v52  ;;  %9030 = vmatprep.subr.mxu1 %v4196_v40 }
 0x366   : > { %v12809_v4 = vmax.f32 %v11354_v45, 0.0  ;;  %9031 = vmatpush3.msra.mxu1 %v4196_v40  ;;  %v11367_v16 = vadd.f32 %v8852_v37, %v11307_v59 }
 0x367   : > { %v3481_v54 = vpop.f32.mrf.mxu0  ;;  %9032 = vmatprep.subr.mxu1 %v4195_v44 }
 0x368   : > { %v11370_v26 = vadd.f32 %v11307_v59, %v3481_v54  ;;  %8911 = vmatprep.mubr.msk.f32.mxu1 %vm3278_vm3, %v12809_v4  ;;  %9033 = vmatpush3.msra.mxu1 %v4195_v44  ;;  %v12802_v6 = vmax.f32 %v11367_v16, 0.0 }
 0x369   : > { %v8855_v57 = vpop.f32.mrf.mxu0  ;;  %8912 = vmatmul.mubr.msk.f32.gmra.mxu1 %vm3278_vm3, %v12806_v19  ;;  %9034 = vmatprep.subr.mxu1 %v4194_v15 }
 0x36a   : > { %v12805_v8 = vmax.f32 %v11370_v26, 0.0  ;;  %9035 = vmatpush3.msra.mxu1 %v4194_v15  ;;  %v11382_v36 = vadd.f32 %v8855_v57, %v11307_v59 }
 0x36b   : > { %v3491_v41 = vpop.f32.mrf.mxu0  ;;  %9036 = vmatprep.subr.mxu1 %v4193_v60 }
 0x36c   : > { %v11385_v34 = vadd.f32 %v11307_v59, %v3491_v41  ;;  %8914 = vmatprep.mubr.msk.f32.mxu1 %vm3278_vm3, %v12805_v8  ;;  %9037 = vmatpush3.msra.mxu1 %v4193_v60  ;;  %v12800_v40 = vmax.f32 %v11382_v36, 0.0 }
 0x36d   : > { %v8858_v23 = vpop.f32.mrf.mxu0  ;;  %8915 = vmatmul.mubr.msk.f32.gmra.mxu1 %vm3278_vm3, %v12802_v6 }
 0x36e   : > { %v12801_v51 = vmax.f32 %v11385_v34, 0.0  ;;  %v11396_v47 = vadd.f32 %v8858_v23, %v11307_v59 }
 0x36f   : > { %v3501_v44 = vpop.f32.mrf.mxu0 }
 0x370   : > { %v11399_v37 = vadd.f32 %v11307_v59, %v3501_v44  ;;  %8917 = vmatprep.mubr.msk.f32.mxu1 %vm3278_vm3, %v12801_v51  ;;  %v12804_v60 = vmax.f32 %v11396_v47, 0.0 }
 0x371   : > { %v8861_v15 = vpop.f32.mrf.mxu0  ;;  %8918 = vmatmul.mubr.msk.f32.gmra.mxu1 %vm3278_vm3, %v12800_v40 }
 0x372   : > { %v12803_v54 = vmax.f32 %v11399_v37, 0.0  ;;  %v11410_v57 = vadd.f32 %v8861_v15, %v11307_v59 }
 0x373   : > { %v3511_v41 = vpop.f32.mrf.mxu0 }
 0x374   : > { %v11413_v23 = vadd.f32 %v11307_v59, %v3511_v41  ;;  %8920 = vmatprep.mubr.msk.f32.mxu1 %vm3278_vm3, %v12803_v54  ;;  %v12808_v51 = vmax.f32 %v11410_v57, 0.0 }
 0x375   : > { %v8864_v44 = vpop.f32.mrf.mxu0  ;;  %8921 = vmatmul.mubr.msk.f32.gmra.mxu1 %vm3278_vm3, %v12804_v60 }
 0x376   : > { %v12807_v40 = vmax.f32 %v11413_v23, 0.0  ;;  %v11424_v15 = vadd.f32 %v8864_v44, %v11307_v59 }
 0x377   : > { %v3521_v6 = vpop.f32.mrf.mxu0 }
 0x378   : > { %v11427_v41 = vadd.f32 %v11307_v59, %v3521_v6  ;;  %8923 = vmatprep.mubr.msk.f32.mxu1 %vm3278_vm3, %v12807_v40  ;;  %v12812_v8 = vmax.f32 %v11424_v15, 0.0 }
 0x379   : > { %v8867_v54 = vpop.f32.mrf.mxu0  ;;  %8924 = vmatmul.mubr.msk.f32.gmra.mxu1 %vm3278_vm3, %v12808_v51 }
 0x37a   : > { %v12811_v60 = vmax.f32 %v11427_v41, 0.0  ;;  %v11438_v44 = vadd.f32 %v8867_v54, %v11307_v59 }
 0x37b   : > { %v3531_v19 = vpop.f32.mrf.mxu0 }
 0x37c   : > { %v11441_v6 = vadd.f32 %v11307_v59, %v3531_v19  ;;  %8926 = vmatprep.mubr.msk.f32.mxu1 %vm3278_vm3, %v12811_v60  ;;  %v12816_v4 = vmax.f32 %v11438_v44, 0.0 }
 0x37d   : > { %v8870_v40 = vpop.f32.mrf.mxu0  ;;  %8927 = vmatmul.mubr.msk.f32.gmra.mxu1 %vm3278_vm3, %v12812_v8 }
 0x37e   : > { %v12815_v51 = vmax.f32 %v11441_v6, 0.0  ;;  %v11452_v54 = vadd.f32 %v8870_v40, %v11307_v59 }
 0x37f   : > { %v3541_v52 = vpop.f32.mrf.mxu0 }
 0x380   : > { %v11455_v19 = vadd.f32 %v11307_v59, %v3541_v52  ;;  %8929 = vmatprep.mubr.msk.f32.mxu1 %vm3278_vm3, %v12815_v51  ;;  %v12820_v17 = vmax.f32 %v11452_v54, 0.0 }
 0x381   : > { %v8873_v60 = vpop.f32.mrf.mxu0  ;;  %8930 = vmatmul.mubr.msk.f32.gmra.mxu1 %vm3278_vm3, %v12816_v4 }
 0x382   : > { %v12819_v8 = vmax.f32 %v11455_v19, 0.0  ;;  %v11466_v40 = vadd.f32 %v8873_v60, %v11307_v59 }
 0x383   : > { %v3551_v2 = vpop.f32.mrf.mxu0 }
 0x384   : > { %v11469_v52 = vadd.f32 %v11307_v59, %v3551_v2  ;;  %8932 = vmatprep.mubr.msk.f32.mxu1 %vm3278_vm3, %v12819_v8  ;;  %v12824_v30 = vmax.f32 %v11466_v40, 0.0 }
 0x385   : > { %v8876_v51 = vpop.f32.mrf.mxu0  ;;  %8933 = vmatmul.mubr.msk.f32.gmra.mxu1 %vm3278_vm3, %v12820_v17 }
 0x386   : > { %v12823_v4 = vmax.f32 %v11469_v52, 0.0  ;;  %v11480_v60 = vadd.f32 %v8876_v51, %v11307_v59 }
 0x387   : > { %v3561_v56 = vpop.f32.mrf.mxu0 }
 0x388   : > { %v11483_v2 = vadd.f32 %v11307_v59, %v3561_v56  ;;  %8935 = vmatprep.mubr.msk.f32.mxu1 %vm3278_vm3, %v12823_v4  ;;  %v12828_v11 = vmax.f32 %v11480_v60, 0.0 }
 0x389   : > { %v8879_v8 = vpop.f32.mrf.mxu0  ;;  %8936 = vmatmul.mubr.msk.f32.gmra.mxu1 %vm3278_vm3, %v12824_v30 }
 0x38a   : > { %v12827_v17 = vmax.f32 %v11483_v2, 0.0  ;;  %v11494_v51 = vadd.f32 %v8879_v8, %v11307_v59 }
 0x38b   : > { %v3571_v18 = vpop.f32.mrf.mxu0 }
 0x38c   : > { %v11497_v56 = vadd.f32 %v11307_v59, %v3571_v18  ;;  %8938 = vmatprep.mubr.msk.f32.mxu1 %vm3278_vm3, %v12827_v17  ;;  %v12831_v48 = vmax.f32 %v11494_v51, 0.0 }
 0x38d   : > { %v8882_v4 = vpop.f32.mrf.mxu0  ;;  %8939 = vmatmul.mubr.msk.f32.gmra.mxu1 %vm3278_vm3, %v12828_v11 }
 0x38e   : > { %v12832_v30 = vmax.f32 %v11497_v56, 0.0  ;;  %v11508_v8 = vadd.f32 %v8882_v4, %v11307_v59 }
 0x38f   : > { %v3581_v20 = vpop.f32.mrf.mxu0 }
 0x390   : > { %v11511_v18 = vadd.f32 %v11307_v59, %v3581_v20  ;;  %8941 = vmatprep.mubr.msk.f32.mxu1 %vm3278_vm3, %v12832_v30  ;;  %v12833_v14 = vmax.f32 %v11508_v8, 0.0 }
 0x391   : > { %v8885_v17 = vpop.f32.mrf.mxu0  ;;  %8942 = vmatmul.mubr.msk.f32.gmra.mxu1 %vm3278_vm3, %v12831_v48 }
 0x392   : > { %v3628_v11 = vmax.f32 %v11511_v18, 0.0  ;;  %v11522_v4 = vadd.f32 %v8885_v17, %v11307_v59  ;;  %v13017_v17 = vmax.f32 %v11321_v33, 0.0  ;;  %v4476_v33 = vld [vmem:[%s13013_s18 + $0x58] sm:$0xff]  ;;  %v4800_v18 = vld [vmem:[%s13014_s1 + $0x10] sm:$0xff] }
 0x393   : > { %v3591_v35 = vpop.f32.mrf.mxu0  ;;  %9086 = vmatprep.subr.mxu0 %v4476_v33 }
 0x394   : > { %v11525_v20 = vadd.f32 %v11307_v59, %v3591_v35  ;;  %8944 = vmatprep.mubr.msk.f32.mxu1 %vm3278_vm3, %v3628_v11  ;;  %v3631_v30 = vmax.f32 %v11522_v4, 0.0  ;;  %v13015_v35 = vmax.f32 %v11313_v21, 0.0  ;;  %v13016_v59 = vmax.f32 %v11310_v7, 0.0  ;;  %9087 = vmatpush3.msra.mxu0 %v4476_v33  ;;  %v5347_v4 = vld [vmem:[%s13046_s3 + $0x58] sm:$0xff] }
 0x395   : > { %8945 = vmatmul.mubr.msk.f32.gmra.mxu1 %vm3278_vm3, %v12833_v14  ;;  %v13018_v14 = vmax.f32 %v11318_v43, 0.0  ;;  %v13020_v21 = vmax.f32 %v11335_v27, 0.0  ;;  %v13021_v7 = vmax.f32 %v11354_v45, 0.0  ;;  %v4809_v43 = vld [vmem:[%s13014_s1 + $0x58] sm:$0xff]  ;;  %v4475_v27 = vld [vmem:[%s13013_s18 + $0x50] sm:$0xff]  ;;  %v13025_v45 = vmax.f32 %v11385_v34, 0.0 }
 0x396   : > { %v12834_v48 = vmax.f32 %v11525_v20, 0.0  ;;  %9158 = vmatprep.subr.mxu1 %v4809_v43  ;;  %9088 = vmatprep.subr.mxu0 %v4475_v27  ;;  %v4807_v34 = vld [vmem:[%s13014_s1 + $0x48] sm:$0xff]  ;;  %v13033_v33 = vmax.f32 %v11441_v6, 0.0  ;;  %v4804_v6 = vld [vmem:[%s13014_s1 + $0x30] sm:$0xff] }
 0x397   : > { %9089 = vmatpush3.msra.mxu0 %v4475_v27  ;;  %v13038_v27 = vmax.f32 %v11466_v40, 0.0  ;;  %v4802_v40 = vld [vmem:[%s13014_s1 + $0x20] sm:$0xff] }
 0x398   : > { %8947 = vmatprep.mubr.msk.f32.mxu1 %vm3278_vm3, %v12834_v48  ;;  %v13019_v48 = vmax.f32 %v11338_v10, 0.0  ;;  %v13024_v10 = vmax.f32 %v11367_v16, 0.0  ;;  %v13027_v16 = vmax.f32 %v11399_v37, 0.0  ;;  %v4806_v37 = vld [vmem:[%s13014_s1 + $0x40] sm:$0xff] }
 0x399   : > { %8948 = vmatmul.mubr.msk.f32.gmra.mxu1 %vm3278_vm3, %v3631_v30 }
 0x39a   : > { %9038 = vmatprep.mubr.msk.f32.mxu1 %vm3278_vm3, %v13015_v35  ;;  %v13026_v35 = vmax.f32 %v11382_v36, 0.0  ;;  %v4473_v36 = vld [vmem:[%s13013_s18 + $0x40] sm:$0xff] }
 0x39d   : > { %9039 = vmatmul.mubr.msk.f32.vlgmr.msra.gmra.mxu1 %vm3278_vm3, %v13016_v59  ;;  %v13028_v59 = vmax.f32 %v11396_v47, 0.0  ;;  %v4472_v47 = vld [vmem:[%s13013_s18 + $0x38] sm:$0xff] }
 0x39e   : > { %9041 = vmatprep.mubr.msk.f32.mxu1 %vm3278_vm3, %v13017_v17  ;;  %9159 = vmatpush3.msra.mxu1 %v4809_v43  ;;  %v13029_v17 = vmax.f32 %v11413_v23, 0.0  ;;  %v13032_v23 = vmax.f32 %v11424_v15, 0.0  ;;  %v13034_v43 = vmax.f32 %v11438_v44, 0.0  ;;  %v13035_v15 = vmax.f32 %v11455_v19, 0.0  ;;  %v4470_v44 = vld [vmem:[%s13013_s18 + $0x28] sm:$0xff] }
 0x39f   : > { %v4803_v19 = vld [vmem:[%s13014_s1 + $0x28] sm:$0xff] }
 0x3a1   : > { %9042 = vmatmul.mubr.msk.f32.gmra.mxu1 %vm3278_vm3, %v13018_v14  ;;  %v13022_v14 = vmax.f32 %v11351_v0, 0.0  ;;  %v4808_v0 = vld [vmem:[%s13014_s1 + $0x50] sm:$0xff] }
 0x3a2   : > { %9044 = vmatprep.mubr.msk.f32.mxu1 %vm3278_vm3, %v13019_v48  ;;  %v13023_v48 = vmax.f32 %v11370_v26, 0.0  ;;  %9160 = vmatprep.subr.mxu1 %v4808_v0  ;;  %v4474_v26 = vld [vmem:[%s13013_s18 + $0x48] sm:$0xff] }
 0x3a3   : > { %9161 = vmatpush3.msra.mxu1 %v4808_v0  ;;  %9090 = vmatprep.subr.mxu0 %v4474_v26  ;;  %v13042_v0 = vmax.f32 %v11494_v51, 0.0  ;;  %v13044_v51 = vmax.f32 %v11525_v20, 0.0  ;;  %v4465_v20 = vld [vmem:[%s13013_s18] sm:$0xff] }
 0x3a4   : > { %9091 = vmatpush3.msra.mxu0 %v4474_v26  ;;  %9162 = vmatprep.subr.mxu1 %v4807_v34  ;;  %v4467_v26 = vld [vmem:[%s13013_s18 + $0x10] sm:$0xff] }
 0x3a5   : > { %9045 = vmatmul.mubr.msk.f32.gmra.mxu1 %vm3278_vm3, %v13020_v21  ;;  %9092 = vmatprep.subr.mxu0 %v4473_v36  ;;  %v13030_v21 = vmax.f32 %v11410_v57, 0.0  ;;  %v4805_v57 = vld [vmem:[%s13014_s1 + $0x38] sm:$0xff] }
 0x3a6   : > { %9047 = vmatprep.mubr.msk.f32.mxu1 %vm3278_vm3, %v13021_v7  ;;  %9163 = vmatpush3.msra.mxu1 %v4807_v34  ;;  %v13031_v7 = vmax.f32 %v11427_v41, 0.0  ;;  %v4471_v41 = vld [vmem:[%s13013_s18 + $0x30] sm:$0xff] }
 0x3a7   : > { %9093 = vmatpush3.msra.mxu0 %v4473_v36  ;;  %9164 = vmatprep.subr.mxu1 %v4806_v37 }
 0x3a8   : > { %9165 = vmatpush3.msra.mxu1 %v4806_v37  ;;  %9094 = vmatprep.subr.mxu0 %v4472_v47 }
 0x3a9   : > { %9048 = vmatmul.mubr.msk.f32.gmra.mxu1 %vm3278_vm3, %v13022_v14  ;;  %9095 = vmatpush3.msra.mxu0 %v4472_v47  ;;  %v13036_v14 = vmax.f32 %v11452_v54, 0.0  ;;  %v4469_v54 = vld [vmem:[%s13013_s18 + $0x20] sm:$0xff] }
 0x3aa   : > { %9050 = vmatprep.mubr.msk.f32.mxu1 %vm3278_vm3, %v13023_v48  ;;  %9166 = vmatprep.subr.mxu1 %v4805_v57  ;;  %v13037_v48 = vmax.f32 %v11469_v52, 0.0  ;;  %v13040_v52 = vmax.f32 %v11480_v60, 0.0  ;;  %v4801_v60 = vld [vmem:[%s13014_s1 + $0x18] sm:$0xff] }
 0x3ab   : > { %9167 = vmatpush3.msra.mxu1 %v4805_v57  ;;  %9096 = vmatprep.subr.mxu0 %v4471_v41 }
 0x3ac   : > { %9097 = vmatpush3.msra.mxu0 %v4471_v41  ;;  %9168 = vmatprep.subr.mxu1 %v4804_v6 }
 0x3ad   : > { %9051 = vmatmul.mubr.msk.f32.gmra.mxu1 %vm3278_vm3, %v13024_v10  ;;  %9098 = vmatprep.subr.mxu0 %v4470_v44  ;;  %v13039_v10 = vmax.f32 %v11483_v2, 0.0  ;;  %v4468_v2 = vld [vmem:[%s13013_s18 + $0x18] sm:$0xff] }
 0x3ae   : > { %9053 = vmatprep.mubr.msk.f32.mxu1 %vm3278_vm3, %v13025_v45  ;;  %9169 = vmatpush3.msra.mxu1 %v4804_v6  ;;  %v13041_v45 = vmax.f32 %v11497_v56, 0.0  ;;  %v13043_v56 = vmax.f32 %v11508_v8, 0.0  ;;  %v4799_v8 = vld [vmem:[%s13014_s1 + $0x8] sm:$0xff] }
 0x3af   : > { %9099 = vmatpush3.msra.mxu0 %v4470_v44  ;;  %9170 = vmatprep.subr.mxu1 %v4803_v19 }
 0x3b0   : > { %9171 = vmatpush3.msra.mxu1 %v4803_v19  ;;  %9100 = vmatprep.subr.mxu0 %v4469_v54 }
 0x3b1   : > { %9054 = vmatmul.mubr.msk.f32.gmra.mxu1 %vm3278_vm3, %v13026_v35  ;;  %9101 = vmatpush3.msra.mxu0 %v4469_v54  ;;  %v4798_v35 = vld [vmem:[%s13014_s1] sm:$0xff]  ;;  %s13064_s1 = sld [smem:[#allocation11_spill]] }
 0x3b2   : > { %9056 = vmatprep.mubr.msk.f32.mxu1 %vm3278_vm3, %v13027_v16  ;;  %9172 = vmatprep.subr.mxu1 %v4802_v40  ;;  %v5078_v16 = vld [vmem:[%s13045_s10 + $0x58] sm:$0xff] }
 0x3b3   : > { %9173 = vmatpush3.msra.mxu1 %v4802_v40  ;;  %9102 = vmatprep.subr.mxu0 %v4468_v2 }
 0x3b4   : > { %9103 = vmatpush3.msra.mxu0 %v4468_v2  ;;  %9174 = vmatprep.subr.mxu1 %v4801_v60 }
 0x3b5   : > { %9057 = vmatmul.mubr.msk.f32.gmra.mxu1 %vm3278_vm3, %v13028_v59  ;;  %9104 = vmatprep.subr.mxu0 %v4467_v26 }
 0x3b6   : > { %9059 = vmatprep.mubr.msk.f32.mxu1 %vm3278_vm3, %v13029_v17  ;;  %9175 = vmatpush3.msra.mxu1 %v4801_v60 }
 0x3b7   : > { %9105 = vmatpush3.msra.mxu0 %v4467_v26  ;;  %9176 = vmatprep.subr.mxu1 %v4800_v18 }
 0x3b8   : > { %9177 = vmatpush3.msra.mxu1 %v4800_v18  ;;  %v11728_v18 = vld [vmem:[%s13064_s1] ss:$0 sm:$0xff]  ;;  %s13109_s1 = sld [smem:[#allocation19_spill]] }
 0x3b9   : > { %9060 = vmatmul.mubr.msk.f32.gmra.mxu1 %vm3278_vm3, %v13030_v21  ;;  %9178 = vmatprep.subr.mxu1 %v4799_v8 }
 0x3ba   : > { %9062 = vmatprep.mubr.msk.f32.mxu1 %vm3278_vm3, %v13031_v7  ;;  %9179 = vmatpush3.msra.mxu1 %v4799_v8 }
 0x3bb   : > { %9180 = vmatprep.subr.mxu1 %v4798_v35 }
 0x3bc   : > { %9181 = vmatpush3.msra.mxu1 %v4798_v35 }
 0x3bd   : > { %9063 = vmatmul.mubr.msk.f32.gmra.mxu1 %vm3278_vm3, %v13032_v23  ;;  %9302 = vmatprep.subr.mxu1 %v5347_v4 }
 0x3be   : > { %9065 = vmatprep.mubr.msk.f32.mxu1 %vm3278_vm3, %v13033_v33 }
 0x3c1   : > { %9066 = vmatmul.mubr.msk.f32.gmra.mxu1 %vm3278_vm3, %v13034_v43 }
 0x3c2   : > { %9068 = vmatprep.mubr.msk.f32.mxu1 %vm3278_vm3, %v13035_v15 }
 0x3c5   : > { %9069 = vmatmul.mubr.msk.f32.gmra.mxu1 %vm3278_vm3, %v13036_v14 }
 0x3c6   : > { %9071 = vmatprep.mubr.msk.f32.mxu1 %vm3278_vm3, %v13037_v48 }
 0x3c9   : > { %9072 = vmatmul.mubr.msk.f32.gmra.mxu1 %vm3278_vm3, %v13038_v27 }
 0x3ca   : > { %9074 = vmatprep.mubr.msk.f32.mxu1 %vm3278_vm3, %v13039_v10 }
 0x3cd   : > { %9075 = vmatmul.mubr.msk.f32.gmra.mxu1 %vm3278_vm3, %v13040_v52 }
 0x3ce   : > { %9077 = vmatprep.mubr.msk.f32.mxu1 %vm3278_vm3, %v13041_v45 }
 0x3d1   : > { %9078 = vmatmul.mubr.msk.f32.gmra.mxu1 %vm3278_vm3, %v13042_v0 }
 0x3d2   : > { %9080 = vmatprep.mubr.msk.f32.mxu1 %vm3278_vm3, %v3628_v11  ;;  %v4466_v11 = vld [vmem:[%s13013_s18 + $0x8] sm:$0xff] }
 0x3d3   : > { %9106 = vmatprep.subr.mxu0 %v4466_v11 }
 0x3d4   : > { %9107 = vmatpush3.msra.mxu0 %v4466_v11 }
 0x3d5   : > { %9081 = vmatmul.mubr.msk.f32.gmra.mxu1 %vm3278_vm3, %v13043_v56  ;;  %9108 = vmatprep.subr.mxu0 %v4465_v20 }
 0x3d6   : > { %9083 = vmatprep.mubr.msk.f32.mxu1 %vm3278_vm3, %v13044_v51  ;;  %9109 = vmatpush3.msra.mxu0 %v4465_v20 }
 0x3d7   : > { %9230 = vmatprep.subr.mxu0 %v5078_v16 }
 0x3d9   : > { %9084 = vmatmul.mubr.msk.f32.gmra.mxu1 %vm3278_vm3, %v3631_v30 }
 0x41d   : > { %v11663_v30 = vpop.f32.mrf.mxu1 }
 0x41e   : > { %13047 = vst [vmem:[#allocation21_spill] sm:$0xff] %v11663_v30 }
 0x41f   : > { %v11665_v34 = vpop.f32.mrf.mxu1 }
 0x420   : > { %13048 = vst [vmem:[#allocation57_spill] sm:$0xff] %v11665_v34 }
 0x421   : > { %v11667_v59 = vpop.f32.mrf.mxu1 }
 0x422   : > { %13049 = vst [vmem:[#allocation60_spill] sm:$0xff] %v11667_v59 }
 0x423   : > { %v11669_v17 = vpop.f32.mrf.mxu1 }
 0x424   : > { %13050 = vst [vmem:[#allocation30_spill] sm:$0xff] %v11669_v17 }
 0x425   : > { %v11671_v36 = vpop.f32.mrf.mxu1 }
 0x426   : > { %13051 = vst [vmem:[#allocation59_spill] sm:$0xff] %v11671_v36 }
 0x427   : > { %v11673_v37 = vpop.f32.mrf.mxu1 }
 0x428   : > { %13052 = vst [vmem:[#allocation62_spill] sm:$0xff] %v11673_v37 }
 0x429   : > { %v11675_v21 = vpop.f32.mrf.mxu1 }
 0x42a   : > { %13053 = vst [vmem:[#allocation34_spill] sm:$0xff] %v11675_v21 }
 0x42b   : > { %v11677_v7 = vpop.f32.mrf.mxu1 }
 0x42c   : > { %13054 = vst [vmem:[#allocation35_spill] sm:$0xff] %v11677_v7 }
 0x42d   : > { %v11679_v47 = vpop.f32.mrf.mxu1 }
 0x42e   : > { %13055 = vst [vmem:[#allocation22_spill] sm:$0xff] %v11679_v47 }
 0x42f   : > { %v11681_v23 = vpop.f32.mrf.mxu1 }
 0x430   : > { %13056 = vst [vmem:[#allocation61_spill] sm:$0xff] %v11681_v23 }
 0x431   : > { %v11683_v33 = vpop.f32.mrf.mxu1 }
 0x432   : > { %13057 = vst [vmem:[#allocation64_spill] sm:$0xff] %v11683_v33 }
 0x433   : > { %v11685_v57 = vpop.f32.mrf.mxu1 }
 0x434   : > { %13058 = vst [vmem:[#allocation33_spill] sm:$0xff] %v11685_v57 }
 0x435   : > { %v11687_v41 = vpop.f32.mrf.mxu1 }
 0x436   : > { %13059 = vst [vmem:[#allocation63_spill] sm:$0xff] %v11687_v41 }
 0x437   : > { %v11689_v43 = vpop.f32.mrf.mxu1 }
 0x438   : > { %13060 = vst [vmem:[#allocation66_spill] sm:$0xff] %v11689_v43 }
 0x439   : > { %v11691_v15 = vpop.f32.mrf.mxu1 }
 0x43a   : > { %13061 = vst [vmem:[#allocation37_spill] sm:$0xff] %v11691_v15 }
 0x43b   : > { %v11693_v6 = vpop.f32.mrf.mxu1 }
 0x43c   : > { %13062 = vst [vmem:[#allocation38_spill] sm:$0xff] %v11693_v6 }
 0x43d   : > { %v11695_v14 = vpop.f32.mrf.mxu1 }
 0x43e   : > { %13063 = vst [vmem:[#allocation23_spill] sm:$0xff] %v11695_v14 }
 0x43f   : > { %v11697_v48 = vpop.f32.mrf.mxu1 }
 0x440   : > { %13065 = vst [vmem:[#allocation65_spill] sm:$0xff] %v11697_v48 }
 0x441   : > { %v11699_v44 = vpop.f32.mrf.mxu1 }
 0x442   : > { %13066 = vst [vmem:[#allocation68_spill] sm:$0xff] %v11699_v44 }
 0x443   : > { %v11701_v19 = vpop.f32.mrf.mxu1 }
 0x444   : > { %13067 = vst [vmem:[#allocation36_spill] sm:$0xff] %v11701_v19 }
 0x445   : > { %v11703_v27 = vpop.f32.mrf.mxu1 }
 0x446   : > { %13068 = vst [vmem:[#allocation67_spill] sm:$0xff] %v11703_v27 }
 0x447   : > { %v11705_v10 = vpop.f32.mrf.mxu1 }
 0x448   : > { %13069 = vst [vmem:[#allocation70_spill] sm:$0xff] %v11705_v10 }
 0x449   : > { %v11707_v54 = vpop.f32.mrf.mxu1 }
 0x44a   : > { %13070 = vst [vmem:[#allocation40_spill] sm:$0xff] %v11707_v54  ;;  %v5970_v54 = vld [vmem:[%s13109_s1 + $0x8] sm:$0xff] }
 0x44b   : > { %v11709_v52 = vpop.f32.mrf.mxu1 }
 0x44c   : > { %13071 = vst [vmem:[#allocation41_spill] sm:$0xff] %v11709_v52  ;;  %v5971_v52 = vld [vmem:[%s13109_s1 + $0x10] sm:$0xff] }
 0x44d   : > { %v11711_v45 = vpop.f32.mrf.mxu1 }
 0x44e   : > { %13072 = vst [vmem:[#allocation24_spill] sm:$0xff] %v11711_v45  ;;  %v5972_v45 = vld [vmem:[%s13109_s1 + $0x18] sm:$0xff] }
 0x44f   : > { %v11713_v40 = vpop.f32.mrf.mxu1 }
 0x450   : > { %13073 = vst [vmem:[#allocation69_spill] sm:$0xff] %v11713_v40 }
 0x451   : > { %v11715_v2 = vpop.f32.mrf.mxu1 }
 0x452   : > { %13074 = vst [vmem:[#allocation72_spill] sm:$0xff] %v11715_v2 }
 0x453   : > { %v11717_v0 = vpop.f32.mrf.mxu1 }
 0x454   : > { %13075 = vst [vmem:[#allocation39_spill] sm:$0xff] %v11717_v0 }
 0x455   : > { %v11719_v60 = vpop.f32.mrf.mxu1 }
 0x456   : > { %13076 = vst [vmem:[#allocation71_spill] sm:$0xff] %v11719_v60 }
 0x457   : > { %v11721_v56 = vpop.f32.mrf.mxu1 }
 0x458   : > { %13077 = vst [vmem:[#allocation74_spill] sm:$0xff] %v11721_v56 }
 0x459   : > { %v11723_v51 = vpop.f32.mrf.mxu1 }
 0x45a   : > { %13078 = vst [vmem:[#allocation43_spill] sm:$0xff] %v11723_v51 }
 0x45b   : > { %v11725_v26 = vpop.f32.mrf.mxu1 }
 0x45c   : > { %13079 = vst [vmem:[#allocation44_spill] sm:$0xff] %v11725_v26 }
 0x45d   : > { %v9040_v11 = vpop.f32.mrf.mxu1 }
 0x45e   : > { %v4280_v8 = vadd.f32 %v9040_v11, %v11728_v18  ;;  %v5077_v11 = vld [vmem:[%s13045_s10 + $0x50] sm:$0xff] }
 0x45f   : > { %v4274_v20 = vpop.f32.mrf.mxu1 }
 0x460   : > { %v4275_v35 = vadd.f32 %v11728_v18, %v4274_v20  ;;  %v11736_v56 = vsub.f32 %v11158_v46, %v4280_v8  ;;  %v5346_v20 = vld [vmem:[%s13046_s3 + $0x50] sm:$0xff] }
 0x461   : > { %v9043_v2 = vpop.f32.mrf.mxu1 }
 0x462   : > { %v11733_v0 = vsub.f32 %v11143_v28, %v4275_v35  ;;  %v4290_v51 = vadd.f32 %v9043_v2, %v11728_v18 }
 0x463   : > { %v4284_v60 = vpop.f32.mrf.mxu1 }
 0x464   : > { %v4285_v26 = vadd.f32 %v11728_v18, %v4284_v60  ;;  %9110 = vmatprep.mubr.msk.f32.mxu0 %vm960_vm0, %v11733_v0  ;;  %9182 = vmatprep.mubr.msk.f32.mxu1 %vm960_vm0, %v11733_v0  ;;  %v11754_v2 = vsub.f32 %v11168_v32, %v4290_v51 }
 0x465   : > { %v9046_v28 = vpop.f32.mrf.mxu1  ;;  %9111 = vmatmul.mubr.msk.f32.vlgmr.msra.gmra.mxu0 %vm960_vm0, %v11736_v56  ;;  %9183 = vmatmul.mubr.msk.f32.vlgmr.msra.gmra.mxu1 %vm960_vm0, %v11736_v56 }
 0x466   : > { %v11751_v46 = vsub.f32 %v11163_v49, %v4285_v26  ;;  %9231 = vmatpush3.msra.mxu0 %v5078_v16  ;;  %9303 = vmatpush3.msra.mxu1 %v5347_v4  ;;  %v4300_v60 = vadd.f32 %v9046_v28, %v11728_v18  ;;  %v5076_v49 = vld [vmem:[%s13045_s10 + $0x48] sm:$0xff] }
 0x467   : > { %v4294_v8 = vpop.f32.mrf.mxu1  ;;  %9232 = vmatprep.subr.mxu0 %v5077_v11  ;;  %9304 = vmatprep.subr.mxu1 %v5346_v20  ;;  %v5345_v16 = vld [vmem:[%s13046_s3 + $0x48] sm:$0xff] }
 0x468   : > { %v4295_v35 = vadd.f32 %v11728_v18, %v4294_v8  ;;  %9113 = vmatprep.mubr.msk.f32.mxu0 %vm960_vm0, %v11751_v46  ;;  %9185 = vmatprep.mubr.msk.f32.mxu1 %vm960_vm0, %v11751_v46  ;;  %v11772_v51 = vsub.f32 %v11178_v25, %v4300_v60 }
 0x469   : > { %v9049_v4 = vpop.f32.mrf.mxu1  ;;  %9114 = vmatmul.mubr.msk.f32.gmra.mxu0 %vm960_vm0, %v11754_v2  ;;  %9186 = vmatmul.mubr.msk.f32.gmra.mxu1 %vm960_vm0, %v11754_v2 }
 0x46a   : > { %v11769_v32 = vsub.f32 %v11173_v24, %v4295_v35  ;;  %9233 = vmatpush3.msra.mxu0 %v5077_v11  ;;  %9305 = vmatpush3.msra.mxu1 %v5346_v20  ;;  %v4310_v26 = vadd.f32 %v9049_v4, %v11728_v18  ;;  %v5075_v24 = vld [vmem:[%s13045_s10 + $0x40] sm:$0xff] }
 0x46b   : > { %v4304_v28 = vpop.f32.mrf.mxu1  ;;  %9234 = vmatprep.subr.mxu0 %v5076_v49  ;;  %9306 = vmatprep.subr.mxu1 %v5345_v16  ;;  %v5344_v11 = vld [vmem:[%s13046_s3 + $0x40] sm:$0xff] }
 0x46c   : > { %v4305_v8 = vadd.f32 %v11728_v18, %v4304_v28  ;;  %9116 = vmatprep.mubr.msk.f32.mxu0 %vm960_vm0, %v11769_v32  ;;  %9188 = vmatprep.mubr.msk.f32.mxu1 %vm960_vm0, %v11769_v32  ;;  %v11790_v60 = vsub.f32 %v11188_v63, %v4310_v26 }
 0x46d   : > { %v9052_v20 = vpop.f32.mrf.mxu1  ;;  %9117 = vmatmul.mubr.msk.f32.gmra.mxu0 %vm960_vm0, %v11772_v51  ;;  %9189 = vmatmul.mubr.msk.f32.gmra.mxu1 %vm960_vm0, %v11772_v51 }
 0x46e   : > { %v11787_v25 = vsub.f32 %v11183_v31, %v4305_v8  ;;  %9235 = vmatpush3.msra.mxu0 %v5076_v49  ;;  %9307 = vmatpush3.msra.mxu1 %v5345_v16  ;;  %v4320_v35 = vadd.f32 %v9052_v20, %v11728_v18  ;;  %v5074_v31 = vld [vmem:[%s13045_s10 + $0x38] sm:$0xff] }
 0x46f   : > { %v4314_v4 = vpop.f32.mrf.mxu1  ;;  %9236 = vmatprep.subr.mxu0 %v5075_v24  ;;  %9308 = vmatprep.subr.mxu1 %v5344_v11  ;;  %v5343_v49 = vld [vmem:[%s13046_s3 + $0x38] sm:$0xff] }
 0x470   : > { %v4315_v28 = vadd.f32 %v11728_v18, %v4314_v4  ;;  %9119 = vmatprep.mubr.msk.f32.mxu0 %vm960_vm0, %v11787_v25  ;;  %9191 = vmatprep.mubr.msk.f32.mxu1 %vm960_vm0, %v11787_v25  ;;  %v11808_v26 = vsub.f32 %v11198_v61, %v4320_v35 }
 0x471   : > { %v9055_v16 = vpop.f32.mrf.mxu1  ;;  %9120 = vmatmul.mubr.msk.f32.gmra.mxu0 %vm960_vm0, %v11790_v60  ;;  %9192 = vmatmul.mubr.msk.f32.gmra.mxu1 %vm960_vm0, %v11790_v60 }
 0x472   : > { %v11805_v63 = vsub.f32 %v11193_v50, %v4315_v28  ;;  %9237 = vmatpush3.msra.mxu0 %v5075_v24  ;;  %9309 = vmatpush3.msra.mxu1 %v5344_v11  ;;  %v4330_v8 = vadd.f32 %v9055_v16, %v11728_v18  ;;  %v5073_v50 = vld [vmem:[%s13045_s10 + $0x30] sm:$0xff] }
 0x473   : > { %v4324_v20 = vpop.f32.mrf.mxu1  ;;  %9238 = vmatprep.subr.mxu0 %v5074_v31  ;;  %9310 = vmatprep.subr.mxu1 %v5343_v49  ;;  %v5342_v24 = vld [vmem:[%s13046_s3 + $0x30] sm:$0xff] }
 0x474   : > { %v4325_v4 = vadd.f32 %v11728_v18, %v4324_v20  ;;  %9122 = vmatprep.mubr.msk.f32.mxu0 %vm960_vm0, %v11805_v63  ;;  %9194 = vmatprep.mubr.msk.f32.mxu1 %vm960_vm0, %v11805_v63  ;;  %v11826_v35 = vsub.f32 %v11208_v12, %v4330_v8 }
 0x475   : > { %v9058_v11 = vpop.f32.mrf.mxu1  ;;  %9123 = vmatmul.mubr.msk.f32.gmra.mxu0 %vm960_vm0, %v11808_v26  ;;  %9195 = vmatmul.mubr.msk.f32.gmra.mxu1 %vm960_vm0, %v11808_v26 }
 0x476   : > { %v11823_v61 = vsub.f32 %v11203_v39, %v4325_v4  ;;  %9239 = vmatpush3.msra.mxu0 %v5074_v31  ;;  %9311 = vmatpush3.msra.mxu1 %v5343_v49  ;;  %v4340_v28 = vadd.f32 %v9058_v11, %v11728_v18  ;;  %v5072_v39 = vld [vmem:[%s13045_s10 + $0x28] sm:$0xff] }
 0x477   : > { %v4334_v16 = vpop.f32.mrf.mxu1  ;;  %9240 = vmatprep.subr.mxu0 %v5073_v50  ;;  %9312 = vmatprep.subr.mxu1 %v5342_v24  ;;  %v5341_v31 = vld [vmem:[%s13046_s3 + $0x28] sm:$0xff] }
 0x478   : > { %v4335_v20 = vadd.f32 %v11728_v18, %v4334_v16  ;;  %9125 = vmatprep.mubr.msk.f32.mxu0 %vm960_vm0, %v11823_v61  ;;  %9197 = vmatprep.mubr.msk.f32.mxu1 %vm960_vm0, %v11823_v61  ;;  %v11844_v8 = vsub.f32 %v11218_v3, %v4340_v28 }
 0x479   : > { %v9061_v49 = vpop.f32.mrf.mxu1  ;;  %9126 = vmatmul.mubr.msk.f32.gmra.mxu0 %vm960_vm0, %v11826_v35  ;;  %9198 = vmatmul.mubr.msk.f32.gmra.mxu1 %vm960_vm0, %v11826_v35 }
 0x47a   : > { %v11841_v12 = vsub.f32 %v11213_v5, %v4335_v20  ;;  %9241 = vmatpush3.msra.mxu0 %v5073_v50  ;;  %9313 = vmatpush3.msra.mxu1 %v5342_v24  ;;  %v4350_v4 = vadd.f32 %v9061_v49, %v11728_v18  ;;  %v5071_v5 = vld [vmem:[%s13045_s10 + $0x20] sm:$0xff] }
 0x47b   : > { %v4344_v11 = vpop.f32.mrf.mxu1  ;;  %9242 = vmatprep.subr.mxu0 %v5072_v39  ;;  %9314 = vmatprep.subr.mxu1 %v5341_v31  ;;  %v5340_v50 = vld [vmem:[%s13046_s3 + $0x20] sm:$0xff] }
 0x47c   : > { %v4345_v16 = vadd.f32 %v11728_v18, %v4344_v11  ;;  %9128 = vmatprep.mubr.msk.f32.mxu0 %vm960_vm0, %v11841_v12  ;;  %9200 = vmatprep.mubr.msk.f32.mxu1 %vm960_vm0, %v11841_v12  ;;  %v11862_v28 = vsub.f32 %v11228_v29, %v4350_v4 }
 0x47d   : > { %v9064_v24 = vpop.f32.mrf.mxu1  ;;  %9129 = vmatmul.mubr.msk.f32.gmra.mxu0 %vm960_vm0, %v11844_v8  ;;  %9201 = vmatmul.mubr.msk.f32.gmra.mxu1 %vm960_vm0, %v11844_v8 }
 0x47e   : > { %v11859_v3 = vsub.f32 %v11223_v22, %v4345_v16  ;;  %9243 = vmatpush3.msra.mxu0 %v5072_v39  ;;  %9315 = vmatpush3.msra.mxu1 %v5341_v31  ;;  %v4360_v20 = vadd.f32 %v9064_v24, %v11728_v18  ;;  %v5070_v22 = vld [vmem:[%s13045_s10 + $0x18] sm:$0xff] }
 0x47f   : > { %v4354_v49 = vpop.f32.mrf.mxu1  ;;  %9244 = vmatprep.subr.mxu0 %v5071_v5  ;;  %9316 = vmatprep.subr.mxu1 %v5340_v50  ;;  %v5339_v39 = vld [vmem:[%s13046_s3 + $0x18] sm:$0xff] }
 0x480   : > { %v4355_v11 = vadd.f32 %v11728_v18, %v4354_v49  ;;  %9131 = vmatprep.mubr.msk.f32.mxu0 %vm960_vm0, %v11859_v3  ;;  %9203 = vmatprep.mubr.msk.f32.mxu1 %vm960_vm0, %v11859_v3  ;;  %v11880_v4 = vsub.f32 %v11238_v13, %v4360_v20 }
 0x481   : > { %v9067_v31 = vpop.f32.mrf.mxu1  ;;  %9132 = vmatmul.mubr.msk.f32.gmra.mxu0 %vm960_vm0, %v11862_v28  ;;  %9204 = vmatmul.mubr.msk.f32.gmra.mxu1 %vm960_vm0, %v11862_v28 }
 0x482   : > { %v11877_v29 = vsub.f32 %v11233_v9, %v4355_v11  ;;  %9245 = vmatpush3.msra.mxu0 %v5071_v5  ;;  %9317 = vmatpush3.msra.mxu1 %v5340_v50  ;;  %v4370_v16 = vadd.f32 %v9067_v31, %v11728_v18  ;;  %v5069_v9 = vld [vmem:[%s13045_s10 + $0x10] sm:$0xff] }
 0x483   : > { %v4364_v24 = vpop.f32.mrf.mxu1  ;;  %9246 = vmatprep.subr.mxu0 %v5070_v22  ;;  %9318 = vmatprep.subr.mxu1 %v5339_v39  ;;  %v5338_v5 = vld [vmem:[%s13046_s3 + $0x10] sm:$0xff] }
 0x484   : > { %v4365_v49 = vadd.f32 %v11728_v18, %v4364_v24  ;;  %9134 = vmatprep.mubr.msk.f32.mxu0 %vm960_vm0, %v11877_v29  ;;  %9206 = vmatprep.mubr.msk.f32.mxu1 %vm960_vm0, %v11877_v29  ;;  %v11898_v20 = vsub.f32 %v11248_v55, %v4370_v16 }
 0x485   : > { %v9070_v50 = vpop.f32.mrf.mxu1  ;;  %9135 = vmatmul.mubr.msk.f32.gmra.mxu0 %vm960_vm0, %v11880_v4  ;;  %9207 = vmatmul.mubr.msk.f32.gmra.mxu1 %vm960_vm0, %v11880_v4 }
 0x486   : > { %v11895_v13 = vsub.f32 %v11243_v1, %v4365_v49  ;;  %9247 = vmatpush3.msra.mxu0 %v5070_v22  ;;  %9319 = vmatpush3.msra.mxu1 %v5339_v39  ;;  %v4380_v11 = vadd.f32 %v9070_v50, %v11728_v18  ;;  %v5068_v1 = vld [vmem:[%s13045_s10 + $0x8] sm:$0xff] }
 0x487   : > { %v4374_v31 = vpop.f32.mrf.mxu1  ;;  %9248 = vmatprep.subr.mxu0 %v5069_v9  ;;  %9320 = vmatprep.subr.mxu1 %v5338_v5  ;;  %v5337_v22 = vld [vmem:[%s13046_s3 + $0x8] sm:$0xff] }
 0x488   : > { %v4375_v24 = vadd.f32 %v11728_v18, %v4374_v31  ;;  %9137 = vmatprep.mubr.msk.f32.mxu0 %vm960_vm0, %v11895_v13  ;;  %9209 = vmatprep.mubr.msk.f32.mxu1 %vm960_vm0, %v11895_v13  ;;  %v11916_v16 = vsub.f32 %v11258_v53, %v4380_v11 }
 0x489   : > { %v9073_v39 = vpop.f32.mrf.mxu1  ;;  %9138 = vmatmul.mubr.msk.f32.gmra.mxu0 %vm960_vm0, %v11898_v20  ;;  %9210 = vmatmul.mubr.msk.f32.gmra.mxu1 %vm960_vm0, %v11898_v20 }
 0x48a   : > { %v11913_v55 = vsub.f32 %v11253_v58, %v4375_v24  ;;  %9249 = vmatpush3.msra.mxu0 %v5069_v9  ;;  %9321 = vmatpush3.msra.mxu1 %v5338_v5  ;;  %v4390_v49 = vadd.f32 %v9073_v39, %v11728_v18  ;;  %v5067_v58 = vld [vmem:[%s13045_s10] sm:$0xff] }
 0x48b   : > { %v4384_v50 = vpop.f32.mrf.mxu1  ;;  %9250 = vmatprep.subr.mxu0 %v5068_v1  ;;  %9322 = vmatprep.subr.mxu1 %v5337_v22  ;;  %v5336_v24 = vld [vmem:[%s13046_s3] sm:$0xff]  ;;  %s13151_s3 = sld [smem:[#allocation18_spill]] }
 0x48c   : > { %v4385_v31 = vadd.f32 %v11728_v18, %v4384_v50  ;;  %9140 = vmatprep.mubr.msk.f32.mxu0 %vm960_vm0, %v11913_v55  ;;  %9212 = vmatprep.mubr.msk.f32.mxu1 %vm960_vm0, %v11913_v55  ;;  %v11934_v5 = vsub.f32 %v11268_v38, %v4390_v49 }
 0x48d   : > { %v9076_v9 = vpop.f32.mrf.mxu1  ;;  %9141 = vmatmul.mubr.msk.f32.gmra.mxu0 %vm960_vm0, %v11916_v16  ;;  %9213 = vmatmul.mubr.msk.f32.gmra.mxu1 %vm960_vm0, %v11916_v16 }
 0x48e   : > { %v11931_v53 = vsub.f32 %v11263_v42, %v4385_v31  ;;  %9251 = vmatpush3.msra.mxu0 %v5068_v1  ;;  %9323 = vmatpush3.msra.mxu1 %v5337_v22  ;;  %v4400_v11 = vadd.f32 %v9076_v9, %v11728_v18  ;;  %v13080_v1 = vld [vmem:[#allocation29_spill] sm:$0xff] }
 0x48f   : > { %v4394_v39 = vpop.f32.mrf.mxu1  ;;  %9252 = vmatprep.subr.mxu0 %v5067_v58  ;;  %9324 = vmatprep.subr.mxu1 %v5336_v24 }
 0x490   : > { %v4395_v50 = vadd.f32 %v11728_v18, %v4394_v39  ;;  %9143 = vmatprep.mubr.msk.f32.mxu0 %vm960_vm0, %v11931_v53  ;;  %9215 = vmatprep.mubr.msk.f32.mxu1 %vm960_vm0, %v11931_v53  ;;  %v11950_v22 = vsub.f32 %v13080_v1, %v4400_v11 }
 0x491   : > { %v9079_v42 = vpop.f32.mrf.mxu1  ;;  %9144 = vmatmul.mubr.msk.f32.gmra.mxu0 %vm960_vm0, %v11934_v5  ;;  %9216 = vmatmul.mubr.msk.f32.gmra.mxu1 %vm960_vm0, %v11934_v5 }
 0x492   : > { %v11947_v38 = vsub.f32 %v11273_v62, %v4395_v50  ;;  %9253 = vmatpush3.msra.mxu0 %v5067_v58  ;;  %9325 = vmatpush3.msra.mxu1 %v5336_v24  ;;  %v4410_v49 = vadd.f32 %v9079_v42, %v11728_v18  ;;  %v13081_v62 = vld [vmem:[#allocation56_spill] sm:$0xff]  ;;  %v13082_v24 = vld [vmem:[#allocation58_spill] sm:$0xff] }
 0x493   : > { %v4404_v31 = vpop.f32.mrf.mxu1 }
 0x494   : > { %v4405_v9 = vadd.f32 %v11728_v18, %v4404_v31  ;;  %9146 = vmatprep.mubr.msk.f32.mxu0 %vm960_vm0, %v11947_v38  ;;  %9218 = vmatprep.mubr.msk.f32.mxu1 %vm960_vm0, %v11947_v38  ;;  %v11966_v11 = vsub.f32 %v13082_v24, %v4410_v49  ;;  %v13083_v49 = vld [vmem:[#allocation31_spill] sm:$0xff] }
 0x495   : > { %v9082_v39 = vpop.f32.mrf.mxu1  ;;  %9147 = vmatmul.mubr.msk.f32.gmra.mxu0 %vm960_vm0, %v11950_v22  ;;  %9219 = vmatmul.mubr.msk.f32.gmra.mxu1 %vm960_vm0, %v11950_v22 }
 0x496   : > { %v11963_v58 = vsub.f32 %v13081_v62, %v4405_v9  ;;  %v4420_v50 = vadd.f32 %v9082_v39, %v11728_v18  ;;  %v13084_v39 = vld [vmem:[#allocation32_spill] sm:$0xff] }
 0x497   : > { %v4414_v42 = vpop.f32.mrf.mxu1 }
 0x498   : > { %v4415_v1 = vadd.f32 %v11728_v18, %v4414_v42  ;;  %9149 = vmatprep.mubr.msk.f32.mxu0 %vm960_vm0, %v11963_v58  ;;  %9221 = vmatprep.mubr.msk.f32.mxu1 %vm960_vm0, %v11963_v58  ;;  %v11982_v62 = vsub.f32 %v13084_v39, %v4420_v50 }
 0x499   : > { %v9085_v31 = vpop.f32.mrf.mxu1  ;;  %9150 = vmatmul.mubr.msk.f32.gmra.mxu0 %vm960_vm0, %v11966_v11  ;;  %9222 = vmatmul.mubr.msk.f32.gmra.mxu1 %vm960_vm0, %v11966_v11 }
 0x49a   : > { %v11979_v9 = vsub.f32 %v13083_v49, %v4415_v1  ;;  %v4430_v24 = vadd.f32 %v9085_v31, %v11728_v18  ;;  %v9680_v1 = vld [vmem:[%s9980_s7 + $0xf0] sm:$0xff]  ;;  %v9681_v49 = vld [vmem:[%s9980_s7 + $0xf8] sm:$0xff]  ;;  %s13085_s7 = sld [smem:[#allocation17_spill]] }
 0x49b   : > { %v4424_v42 = vpop.f32.mrf.mxu1 }
 0x49c   : > { %v4425_v40 = vadd.f32 %v11728_v18, %v4424_v42  ;;  %9152 = vmatprep.mubr.msk.f32.mxu0 %vm960_vm0, %v11979_v9  ;;  %9224 = vmatprep.mubr.msk.f32.mxu1 %vm960_vm0, %v11979_v9  ;;  %v11998_v31 = vsub.f32 %v9681_v49, %v4430_v24 }
 0x49d   : > { %9153 = vmatmul.mubr.msk.f32.gmra.mxu0 %vm960_vm0, %v11982_v62  ;;  %9225 = vmatmul.mubr.msk.f32.gmra.mxu1 %vm960_vm0, %v11982_v62 }
 0x49e   : > { %v11995_v50 = vsub.f32 %v9680_v1, %v4425_v40  ;;  %v12020_v40 = vpop.f32.mrf.mxu0 }
 0x49f   : > { %13086 = vst [vmem:[#allocation25_spill] sm:$0xff] %v12020_v40 }
 0x4a0   : > { %9155 = vmatprep.mubr.msk.f32.mxu0 %vm960_vm0, %v11995_v50  ;;  %9227 = vmatprep.mubr.msk.f32.mxu1 %vm960_vm0, %v11995_v50 }
 0x4a1   : > { %9156 = vmatmul.mubr.msk.f32.gmra.mxu0 %vm960_vm0, %v11998_v31  ;;  %9228 = vmatmul.mubr.msk.f32.gmra.mxu1 %vm960_vm0, %v11998_v31 }
 0x4a2   : > { %9254 = vmatprep.mubr.msk.f32.mxu0 %vm960_vm0, %v11733_v0  ;;  %9326 = vmatprep.mubr.msk.f32.mxu1 %vm960_vm0, %v11733_v0  ;;  %v12030_v0 = vpop.f32.mrf.mxu0 }
 0x4a3   : > { %13087 = vst [vmem:[#allocation73_spill] sm:$0xff] %v12030_v0 }
 0x4a4   : > { %v12041_v18 = vpop.f32.mrf.mxu0 }
 0x4a5   : > { %9255 = vmatmul.mubr.msk.f32.vlgmr.msra.gmra.mxu0 %vm960_vm0, %v11736_v56  ;;  %9327 = vmatmul.mubr.msk.f32.vlgmr.msra.gmra.mxu1 %vm960_vm0, %v11736_v56  ;;  %v5607_v56 = vld [vmem:[%s13085_s7 + $0x10] sm:$0xff]  ;;  %13088 = vst [vmem:[#allocation42_spill] sm:$0xff] %v12041_v18 }
 0x4a6   : > { %9257 = vmatprep.mubr.msk.f32.mxu0 %vm960_vm0, %v11751_v46  ;;  %9329 = vmatprep.mubr.msk.f32.mxu1 %vm960_vm0, %v11751_v46  ;;  %v12051_v46 = vpop.f32.mrf.mxu0 }
 0x4a7   : > { %9374 = vmatprep.subr.mxu0 %v5607_v56  ;;  %13089 = vst [vmem:[#allocation75_spill] sm:$0xff] %v12051_v46 }
 0x4a8   : > { %9375 = vmatpush3.msra.mxu0 %v5607_v56 }
 0x4a9   : > { %9258 = vmatmul.mubr.msk.f32.gmra.mxu0 %vm960_vm0, %v11754_v2  ;;  %9330 = vmatmul.mubr.msk.f32.gmra.mxu1 %vm960_vm0, %v11754_v2  ;;  %v12061_v2 = vpop.f32.mrf.mxu0 }
 0x4aa   : > { %9260 = vmatprep.mubr.msk.f32.mxu0 %vm960_vm0, %v11769_v32  ;;  %9332 = vmatprep.mubr.msk.f32.mxu1 %vm960_vm0, %v11769_v32  ;;  %13090 = vst [vmem:[#allocation77_spill] sm:$0xff] %v12061_v2 }
 0x4ab   : > { %v12071_v32 = vpop.f32.mrf.mxu0 }
 0x4ac   : > { %13091 = vst [vmem:[#allocation46_spill] sm:$0xff] %v12071_v32 }
 0x4ad   : > { %9261 = vmatmul.mubr.msk.f32.gmra.mxu0 %vm960_vm0, %v11772_v51  ;;  %9333 = vmatmul.mubr.msk.f32.gmra.mxu1 %vm960_vm0, %v11772_v51  ;;  %v12081_v51 = vpop.f32.mrf.mxu0 }
 0x4ae   : > { %9263 = vmatprep.mubr.msk.f32.mxu0 %vm960_vm0, %v11787_v25  ;;  %9335 = vmatprep.mubr.msk.f32.mxu1 %vm960_vm0, %v11787_v25  ;;  %13092 = vst [vmem:[#allocation47_spill] sm:$0xff] %v12081_v51 }
 0x4af   : > { %v12091_v25 = vpop.f32.mrf.mxu0 }
 0x4b0   : > { %13093 = vst [vmem:[#allocation26_spill] sm:$0xff] %v12091_v25 }
 0x4b1   : > { %9264 = vmatmul.mubr.msk.f32.gmra.mxu0 %vm960_vm0, %v11790_v60  ;;  %9336 = vmatmul.mubr.msk.f32.gmra.mxu1 %vm960_vm0, %v11790_v60  ;;  %v5606_v60 = vld [vmem:[%s13085_s7 + $0x8] sm:$0xff] }
 0x4b2   : > { %9266 = vmatprep.mubr.msk.f32.mxu0 %vm960_vm0, %v11805_v63  ;;  %9338 = vmatprep.mubr.msk.f32.mxu1 %vm960_vm0, %v11805_v63  ;;  %v12102_v63 = vpop.f32.mrf.mxu0 }
 0x4b3   : > { %13094 = vst [vmem:[#allocation76_spill] sm:$0xff] %v12102_v63  ;;  %9376 = vmatprep.subr.mxu0 %v5606_v60 }
 0x4b4   : > { %9377 = vmatpush3.msra.mxu0 %v5606_v60 }
 0x4b5   : > { %9267 = vmatmul.mubr.msk.f32.gmra.mxu0 %vm960_vm0, %v11808_v26  ;;  %9339 = vmatmul.mubr.msk.f32.gmra.mxu1 %vm960_vm0, %v11808_v26  ;;  %v12112_v26 = vpop.f32.mrf.mxu0 }
 0x4b6   : > { %9269 = vmatprep.mubr.msk.f32.mxu0 %vm960_vm0, %v11823_v61  ;;  %9341 = vmatprep.mubr.msk.f32.mxu1 %vm960_vm0, %v11823_v61  ;;  %13095 = vst [vmem:[#allocation79_spill] sm:$0xff] %v12112_v26 }
 0x4b7   : > { %v12122_v61 = vpop.f32.mrf.mxu0 }
 0x4b8   : > { %13096 = vst [vmem:[#allocation45_spill] sm:$0xff] %v12122_v61 }
 0x4b9   : > { %9270 = vmatmul.mubr.msk.f32.gmra.mxu0 %vm960_vm0, %v11826_v35  ;;  %9342 = vmatmul.mubr.msk.f32.gmra.mxu1 %vm960_vm0, %v11826_v35  ;;  %v12132_v35 = vpop.f32.mrf.mxu0 }
 0x4ba   : > { %9272 = vmatprep.mubr.msk.f32.mxu0 %vm960_vm0, %v11841_v12  ;;  %9344 = vmatprep.mubr.msk.f32.mxu1 %vm960_vm0, %v11841_v12  ;;  %13097 = vst [vmem:[#allocation78_spill] sm:$0xff] %v12132_v35 }
 0x4bb   : > { %v12142_v12 = vpop.f32.mrf.mxu0 }
 0x4bc   : > { %13098 = vst [vmem:[#allocation81_spill] sm:$0xff] %v12142_v12 }
 0x4bd   : > { %9273 = vmatmul.mubr.msk.f32.gmra.mxu0 %vm960_vm0, %v11844_v8  ;;  %9345 = vmatmul.mubr.msk.f32.gmra.mxu1 %vm960_vm0, %v11844_v8  ;;  %v5605_v8 = vld [vmem:[%s13085_s7] sm:$0xff] }
 0x4be   : > { %9275 = vmatprep.mubr.msk.f32.mxu0 %vm960_vm0, %v11859_v3  ;;  %9347 = vmatprep.mubr.msk.f32.mxu1 %vm960_vm0, %v11859_v3  ;;  %v12153_v3 = vpop.f32.mrf.mxu0 }
 0x4bf   : > { %13099 = vst [vmem:[#allocation49_spill] sm:$0xff] %v12153_v3  ;;  %9378 = vmatprep.subr.mxu0 %v5605_v8 }
 0x4c0   : > { %9379 = vmatpush3.msra.mxu0 %v5605_v8  ;;  %v5976_v8 = vld [vmem:[%s13109_s1 + $0x38] sm:$0xff] }
 0x4c1   : > { %9276 = vmatmul.mubr.msk.f32.gmra.mxu0 %vm960_vm0, %v11862_v28  ;;  %9348 = vmatmul.mubr.msk.f32.gmra.mxu1 %vm960_vm0, %v11862_v28  ;;  %v12163_v28 = vpop.f32.mrf.mxu0 }
 0x4c2   : > { %9278 = vmatprep.mubr.msk.f32.mxu0 %vm960_vm0, %v11877_v29  ;;  %9350 = vmatprep.mubr.msk.f32.mxu1 %vm960_vm0, %v11877_v29  ;;  %13100 = vst [vmem:[#allocation50_spill] sm:$0xff] %v12163_v28 }
 0x4c3   : > { %v12169_v29 = vpop.f32.mrf.mxu0  ;;  %9428 = vmatprep.subr.mxu1 %v5976_v8 }
 0x4c4   : > { %13101 = vst [vmem:[#allocation27_spill] sm:$0xff] %v12169_v29  ;;  %9429 = vmatpush3.msra.mxu1 %v5976_v8 }
 0x4c5   : > { %9279 = vmatmul.mubr.msk.f32.gmra.mxu0 %vm960_vm0, %v11880_v4  ;;  %9351 = vmatmul.mubr.msk.f32.gmra.mxu1 %vm960_vm0, %v11880_v4  ;;  %v12171_v4 = vpop.f32.mrf.mxu0 }
 0x4c6   : > { %9281 = vmatprep.mubr.msk.f32.mxu0 %vm960_vm0, %v11895_v13  ;;  %9353 = vmatprep.mubr.msk.f32.mxu1 %vm960_vm0, %v11895_v13  ;;  %13102 = vst [vmem:[#allocation80_spill] sm:$0xff] %v12171_v4 }
 0x4c7   : > { %v12173_v13 = vpop.f32.mrf.mxu0 }
 0x4c8   : > { %13103 = vst [vmem:[#allocation83_spill] sm:$0xff] %v12173_v13 }
 0x4c9   : > { %9282 = vmatmul.mubr.msk.f32.gmra.mxu0 %vm960_vm0, %v11898_v20  ;;  %9354 = vmatmul.mubr.msk.f32.gmra.mxu1 %vm960_vm0, %v11898_v20  ;;  %v12175_v20 = vpop.f32.mrf.mxu0 }
 0x4ca   : > { %9284 = vmatprep.mubr.msk.f32.mxu0 %vm960_vm0, %v11913_v55  ;;  %9356 = vmatprep.mubr.msk.f32.mxu1 %vm960_vm0, %v11913_v55  ;;  %13104 = vst [vmem:[#allocation48_spill] sm:$0xff] %v12175_v20 }
 0x4cb   : > { %v12177_v55 = vpop.f32.mrf.mxu0 }
 0x4cc   : > { %13105 = vst [vmem:[#allocation82_spill] sm:$0xff] %v12177_v55 }
 0x4cd   : > { %9285 = vmatmul.mubr.msk.f32.gmra.mxu0 %vm960_vm0, %v11916_v16  ;;  %9357 = vmatmul.mubr.msk.f32.gmra.mxu1 %vm960_vm0, %v11916_v16  ;;  %v12179_v16 = vpop.f32.mrf.mxu0 }
 0x4ce   : > { %9287 = vmatprep.mubr.msk.f32.mxu0 %vm960_vm0, %v11931_v53  ;;  %9359 = vmatprep.mubr.msk.f32.mxu1 %vm960_vm0, %v11931_v53  ;;  %13106 = vst [vmem:[#allocation85_spill] sm:$0xff] %v12179_v16 }
 0x4cf   : > { %v12181_v53 = vpop.f32.mrf.mxu0 }
 0x4d0   : > { %13107 = vst [vmem:[#allocation52_spill] sm:$0xff] %v12181_v53 }
 0x4d1   : > { %9288 = vmatmul.mubr.msk.f32.gmra.mxu0 %vm960_vm0, %v11934_v5  ;;  %9360 = vmatmul.mubr.msk.f32.gmra.mxu1 %vm960_vm0, %v11934_v5  ;;  %v12183_v5 = vpop.f32.mrf.mxu0 }
 0x4d2   : > { %9290 = vmatprep.mubr.msk.f32.mxu0 %vm960_vm0, %v11947_v38  ;;  %9362 = vmatprep.mubr.msk.f32.mxu1 %vm960_vm0, %v11947_v38  ;;  %13108 = vst [vmem:[#allocation53_spill] sm:$0xff] %v12183_v5 }
 0x4d3   : > { %v12185_v38 = vpop.f32.mrf.mxu0 }
 0x4d4   : > { %13110 = vst [vmem:[#allocation28_spill] sm:$0xff] %v12185_v38 }
 0x4d5   : > { %9291 = vmatmul.mubr.msk.f32.gmra.mxu0 %vm960_vm0, %v11950_v22  ;;  %9363 = vmatmul.mubr.msk.f32.gmra.mxu1 %vm960_vm0, %v11950_v22  ;;  %v12187_v22 = vpop.f32.mrf.mxu0 }
 0x4d6   : > { %9293 = vmatprep.mubr.msk.f32.mxu0 %vm960_vm0, %v11963_v58  ;;  %9365 = vmatprep.mubr.msk.f32.mxu1 %vm960_vm0, %v11963_v58  ;;  %13111 = vst [vmem:[#allocation84_spill] sm:$0xff] %v12187_v22 }
 0x4d7   : > { %v12189_v58 = vpop.f32.mrf.mxu0 }
 0x4d8   : > { %13112 = vst [vmem:[#allocation51_spill] sm:$0xff] %v12189_v58  ;;  %v5973_v58 = vld [vmem:[%s13109_s1 + $0x20] sm:$0xff] }
 0x4d9   : > { %9294 = vmatmul.mubr.msk.f32.gmra.mxu0 %vm960_vm0, %v11966_v11  ;;  %9366 = vmatmul.mubr.msk.f32.gmra.mxu1 %vm960_vm0, %v11966_v11  ;;  %v12191_v11 = vpop.f32.mrf.mxu0 }
 0x4da   : > { %9296 = vmatprep.mubr.msk.f32.mxu0 %vm960_vm0, %v11979_v9  ;;  %9368 = vmatprep.mubr.msk.f32.mxu1 %vm960_vm0, %v11979_v9  ;;  %13113 = vst [vmem:[#allocation86_spill] sm:$0xff] %v12191_v11 }
 0x4db   : > { %v12193_v9 = vpop.f32.mrf.mxu0 }
 0x4dc   : > { %13114 = vst [vmem:[#allocation55_spill] sm:$0xff] %v12193_v9 }
 0x4dd   : > { %9297 = vmatmul.mubr.msk.f32.gmra.mxu0 %vm960_vm0, %v11982_v62  ;;  %9369 = vmatmul.mubr.msk.f32.gmra.mxu1 %vm960_vm0, %v11982_v62  ;;  %v12195_v39 = vpop.f32.mrf.mxu0 }
 0x4de   : > { %9299 = vmatprep.mubr.msk.f32.mxu0 %vm960_vm0, %v11995_v50  ;;  %9371 = vmatprep.mubr.msk.f32.mxu1 %vm960_vm0, %v11995_v50  ;;  %13115 = vst [vmem:[#allocation87_spill] sm:$0xff] %v12195_v39  ;;  %v5974_v39 = vld [vmem:[%s13109_s1 + $0x28] sm:$0xff] }
 0x4df   : > { %v12197_v62 = vpop.f32.mrf.mxu0 }
 0x4e0   : > { %13116 = vst [vmem:[#allocation54_spill] sm:$0xff] %v12197_v62  ;;  %v5975_v62 = vld [vmem:[%s13109_s1 + $0x30] sm:$0xff] }
 0x4e1   : > { %9300 = vmatmul.mubr.msk.f32.gmra.mxu0 %vm960_vm0, %v11998_v31  ;;  %9372 = vmatmul.mubr.msk.f32.gmra.mxu1 %vm960_vm0, %v11998_v31  ;;  %v12199_v24 = vpop.f32.mrf.mxu0 }
 0x4e2   : > { %13117 = vst [vmem:[#allocation89_spill] sm:$0xff] %v12199_v24  ;;  %9430 = vmatprep.subr.mxu1 %v5975_v62 }
 0x4e3   : > { %v12201_v42 = vpop.f32.mrf.mxu0  ;;  %9431 = vmatpush3.msra.mxu1 %v5975_v62 }
 0x4e4   : > { %13118 = vst [vmem:[#allocation88_spill] sm:$0xff] %v12201_v42  ;;  %9432 = vmatprep.subr.mxu1 %v5974_v39 }
 0x4e5   : > { %9433 = vmatpush3.msra.mxu1 %v5974_v39 }
 0x4e6   : > { %9434 = vmatprep.subr.mxu1 %v5973_v58 }
 0x4e7   : > { %9435 = vmatpush3.msra.mxu1 %v5973_v58 }
 0x4e8   : > { %9436 = vmatprep.subr.mxu1 %v5972_v45 }
 0x4e9   : > { %9437 = vmatpush3.msra.mxu1 %v5972_v45 }
 0x4ea   : > { %9438 = vmatprep.subr.mxu1 %v5971_v52 }
 0x4eb   : > { %9439 = vmatpush3.msra.mxu1 %v5971_v52 }
 0x4ec   : > { %9440 = vmatprep.subr.mxu1 %v5970_v54 }
 0x4ed   : > { %9441 = vmatpush3.msra.mxu1 %v5970_v54 }
 0x525   : > { %v12203_v1 = vpop.f32.mrf.mxu0  ;;  %v12205_v50 = vpop.f32.mrf.mxu1 }
 0x527   : > { %v12207_v49 = vpop.f32.mrf.mxu0  ;;  %v12209_v31 = vpop.f32.mrf.mxu1 }
 0x529   : > { %v12211_v56 = vpop.f32.mrf.mxu0  ;;  %v12213_v60 = vpop.f32.mrf.mxu1 }
 0x52b   : > { %v12217_v24 = vpop.f32.mrf.mxu0  ;;  %v12219_v42 = vpop.f32.mrf.mxu1 }
 0x52d   : > { %v12222_v9 = vpop.f32.mrf.mxu0  ;;  %v12224_v11 = vpop.f32.mrf.mxu1 }
 0x52f   : > { %v12227_v22 = vpop.f32.mrf.mxu0  ;;  %v12229_v38 = vpop.f32.mrf.mxu1 }
 0x531   : > { %v12232_v5 = vpop.f32.mrf.mxu0  ;;  %v12234_v8 = vpop.f32.mrf.mxu1 }
 0x533   : > { %v12237_v53 = vpop.f32.mrf.mxu0  ;;  %v12239_v62 = vpop.f32.mrf.mxu1 }
 0x535   : > { %v12242_v16 = vpop.f32.mrf.mxu0  ;;  %v12244_v10 = vpop.f32.mrf.mxu1 }
 0x537   : > { %v12246_v39 = vpop.f32.mrf.mxu0  ;;  %v12248_v55 = vpop.f32.mrf.mxu1 }
 0x539   : > { %v12250_v58 = vpop.f32.mrf.mxu0  ;;  %v12252_v27 = vpop.f32.mrf.mxu1 }
 0x53b   : > { %v12254_v20 = vpop.f32.mrf.mxu0  ;;  %v12256_v45 = vpop.f32.mrf.mxu1 }
 0x53d   : > { %v12258_v19 = vpop.f32.mrf.mxu0  ;;  %v12260_v13 = vpop.f32.mrf.mxu1 }
 0x53f   : > { %v12262_v44 = vpop.f32.mrf.mxu0  ;;  %v12264_v52 = vpop.f32.mrf.mxu1 }
 0x541   : > { %v12266_v4 = vpop.f32.mrf.mxu0  ;;  %v12268_v48 = vpop.f32.mrf.mxu1 }
 0x543   : > { %v12270_v54 = vpop.f32.mrf.mxu0  ;;  %v12272_v29 = vpop.f32.mrf.mxu1 }
 0x545   : > { %v12274_v14 = vpop.f32.mrf.mxu0  ;;  %v12276_v28 = vpop.f32.mrf.mxu1 }
 0x547   : > { %v12278_v6 = vpop.f32.mrf.mxu0  ;;  %v12280_v3 = vpop.f32.mrf.mxu1 }
 0x549   : > { %v12282_v15 = vpop.f32.mrf.mxu0  ;;  %v12284_v12 = vpop.f32.mrf.mxu1 }
 0x54b   : > { %v12286_v43 = vpop.f32.mrf.mxu0  ;;  %v12288_v35 = vpop.f32.mrf.mxu1 }
 0x54d   : > { %v12290_v41 = vpop.f32.mrf.mxu0  ;;  %v12292_v61 = vpop.f32.mrf.mxu1 }
 0x54f   : > { %v12294_v57 = vpop.f32.mrf.mxu0  ;;  %v12296_v26 = vpop.f32.mrf.mxu1 }
 0x551   : > { %v12298_v33 = vpop.f32.mrf.mxu0  ;;  %v12300_v63 = vpop.f32.mrf.mxu1 }
 0x553   : > { %v12302_v23 = vpop.f32.mrf.mxu0  ;;  %v12304_v25 = vpop.f32.mrf.mxu1 }
 0x555   : > { %v12306_v47 = vpop.f32.mrf.mxu0  ;;  %v12308_v51 = vpop.f32.mrf.mxu1 }
 0x556   : > { %13119 = vst [vmem:[#allocation29_spill] sm:$0xff] %v12306_v47  ;;  %13120 = vst [vmem:[#allocation56_spill] sm:$0xff] %v12308_v51 }
 0x557   : > { %v12310_v7 = vpop.f32.mrf.mxu0  ;;  %v12312_v32 = vpop.f32.mrf.mxu1 }
 0x558   : > { %13121 = vst [vmem:[#allocation58_spill] sm:$0xff] %v12310_v7  ;;  %13122 = vst [vmem:[#allocation31_spill] sm:$0xff] %v12312_v32 }
 0x559   : > { %v12314_v21 = vpop.f32.mrf.mxu0  ;;  %v12316_v2 = vpop.f32.mrf.mxu1 }
 0x55a   : > { %13123 = vst [vmem:[#allocation32_spill] sm:$0xff] %v12314_v21  ;;  %13124 = vst [vmem:[#allocation90_spill] sm:$0xff] %v12316_v2 }
 0x55b   : > { %v12318_v37 = vpop.f32.mrf.mxu0  ;;  %v12320_v46 = vpop.f32.mrf.mxu1 }
 0x55c   : > { %13125 = vst [vmem:[#allocation91_spill] sm:$0xff] %v12318_v37  ;;  %13126 = vst [vmem:[#allocation92_spill] sm:$0xff] %v12320_v46  ;;  %v5036_v37 = vmax.f32 %v12203_v1, %v12205_v50 }
 0x55d   : > { %v12322_v36 = vpop.f32.mrf.mxu0  ;;  %v12324_v18 = vpop.f32.mrf.mxu1 }
 0x55e   : > { %13127 = vst [vmem:[#allocation93_spill] sm:$0xff] %v12322_v36  ;;  %13128 = vst [vmem:[#allocation94_spill] sm:$0xff] %v12324_v18  ;;  %v5035_v36 = vmax.f32 %v12207_v49, %v12209_v31 }
 0x55f   : > { %v12326_v17 = vpop.f32.mrf.mxu0  ;;  %v12328_v0 = vpop.f32.mrf.mxu1 }
 0x560   : > { %13129 = vst [vmem:[#allocation95_spill] sm:$0xff] %v12326_v17  ;;  %13130 = vst [vmem:[#allocation96_spill] sm:$0xff] %v12328_v0 }
 0x561   : > { %v12330_v59 = vpop.f32.mrf.mxu0  ;;  %v12332_v40 = vpop.f32.mrf.mxu1 }
 0x562   : > { %13131 = vst [vmem:[#allocation97_spill] sm:$0xff] %v12330_v59  ;;  %13132 = vst [vmem:[#allocation98_spill] sm:$0xff] %v12332_v40  ;;  %v5038_v59 = vmax.f32 %v12211_v56, %v12213_v60 }
 0x563   : > { %v12334_v34 = vpop.f32.mrf.mxu0  ;;  %v12336_v30 = vpop.f32.mrf.mxu1 }
 0x564   : > { %13133 = vst [vmem:[#allocation99_spill] sm:$0xff] %v12334_v34  ;;  %13134 = vst [vmem:[#allocation100_spill] sm:$0xff] %v12336_v30  ;;  %v5037_v34 = vmax.f32 %v12217_v24, %v12219_v42  ;;  %v5043_v42 = vmax.f32 %v12246_v39, %v12248_v55 }
 0x565   : > { %v9256_v46 = vpop.f32.mrf.mxu0  ;;  %v9328_v21 = vpop.f32.mrf.mxu1 }
 0x566   : > { %v5305_v18 = vmax.f32 %v5036_v37, %v9256_v46  ;;  %v5039_v46 = vmax.f32 %v12227_v22, %v12229_v38 }
 0x567   : > { %v5145_v17 = vpop.f32.mrf.mxu0  ;;  %v5414_v2 = vpop.f32.mrf.mxu1 }
 0x568   : > { %v5304_v0 = vmax.f32 %v5035_v36, %v5145_v17  ;;  %v5574_v1 = vmax.f32 %v5305_v18, %v9328_v21  ;;  %v5040_v17 = vmax.f32 %v12222_v9, %v12224_v11  ;;  %v5044_v11 = vmax.f32 %v12242_v16, %v12244_v10 }
 0x569   : > { %v9259_v40 = vpop.f32.mrf.mxu0  ;;  %v9331_v7 = vpop.f32.mrf.mxu1  ;;  %v5045_v16 = vmax.f32 %v12254_v20, %v12256_v45 }
 0x56a   : > { %v5573_v30 = vmax.f32 %v5304_v0, %v5414_v2  ;;  %v5307_v50 = vmax.f32 %v5038_v59, %v9259_v40  ;;  %v5041_v2 = vmax.f32 %v12237_v53, %v12239_v62 }
 0x56b   : > { %v5155_v32 = vpop.f32.mrf.mxu0  ;;  %v5424_v47 = vpop.f32.mrf.mxu1 }
 0x56c   : > { %v5306_v51 = vmax.f32 %v5037_v34, %v5155_v32  ;;  %9380 = vmatprep.mubr.msk.f32.mxu0 %vm5615_vm4, %v5573_v30  ;;  %v5576_v24 = vmax.f32 %v5307_v50, %v9331_v7  ;;  %v5042_v30 = vmax.f32 %v12232_v5, %v12234_v8 }
 0x56d   : > { %v9262_v36 = vpop.f32.mrf.mxu0  ;;  %v9334_v37 = vpop.f32.mrf.mxu1  ;;  %9381 = vmatmul.mubr.msk.f32.vlgmr.msra.gmra.mxu0 %vm5615_vm4, %v5574_v1  ;;  %v5046_v1 = vmax.f32 %v12250_v58, %v12252_v27  ;;  %v5047_v58 = vmax.f32 %v12262_v44, %v12264_v52 }
 0x56e   : > { %v5575_v49 = vmax.f32 %v5306_v51, %v5424_v47  ;;  %v5309_v0 = vmax.f32 %v5040_v17, %v9262_v36 }
 0x56f   : > { %v5165_v21 = vpop.f32.mrf.mxu0  ;;  %v5434_v59 = vpop.f32.mrf.mxu1 }
 0x570   : > { %v5308_v40 = vmax.f32 %v5039_v46, %v5165_v21  ;;  %9383 = vmatprep.mubr.msk.f32.mxu0 %vm5615_vm4, %v5575_v49  ;;  %v5578_v38 = vmax.f32 %v5309_v0, %v9334_v37  ;;  %v5048_v49 = vmax.f32 %v12258_v19, %v12260_v13  ;;  %v5049_v13 = vmax.f32 %v12270_v54, %v12272_v29 }
 0x571   : > { %v9265_v34 = vpop.f32.mrf.mxu0  ;;  %v9337_v18 = vpop.f32.mrf.mxu1  ;;  %9384 = vmatmul.mubr.msk.f32.gmra.mxu0 %vm5615_vm4, %v5576_v24 }
 0x572   : > { %v5577_v32 = vmax.f32 %v5308_v40, %v5434_v59  ;;  %v5311_v47 = vmax.f32 %v5042_v30, %v9265_v34  ;;  %v5050_v30 = vmax.f32 %v12266_v4, %v12268_v48  ;;  %v5051_v4 = vmax.f32 %v12278_v6, %v12280_v3 }
 0x573   : > { %v5175_v7 = vpop.f32.mrf.mxu0  ;;  %v5444_v51 = vpop.f32.mrf.mxu1 }
 0x574   : > { %v5310_v22 = vmax.f32 %v5041_v2, %v5175_v7  ;;  %9386 = vmatprep.mubr.msk.f32.mxu0 %vm5615_vm4, %v5577_v32  ;;  %v5580_v53 = vmax.f32 %v5311_v47, %v9337_v18  ;;  %v5052_v47 = vmax.f32 %v12274_v14, %v12276_v28  ;;  %v5053_v28 = vmax.f32 %v12286_v43, %v12288_v35 }
 0x575   : > { %v9268_v9 = vpop.f32.mrf.mxu0  ;;  %v9340_v5 = vpop.f32.mrf.mxu1  ;;  %9387 = vmatmul.mubr.msk.f32.gmra.mxu0 %vm5615_vm4, %v5578_v38 }
 0x576   : > { %v5579_v31 = vmax.f32 %v5310_v22, %v5444_v51  ;;  %v5313_v56 = vmax.f32 %v5044_v11, %v9268_v9 }
 0x577   : > { %v5185_v60 = vpop.f32.mrf.mxu0  ;;  %v5454_v8 = vpop.f32.mrf.mxu1 }
 0x578   : > { %v5312_v62 = vmax.f32 %v5043_v42, %v5185_v60  ;;  %9389 = vmatprep.mubr.msk.f32.mxu0 %vm5615_vm4, %v5579_v31  ;;  %v5582_v55 = vmax.f32 %v5313_v56, %v9340_v5  ;;  %v5054_v5 = vmax.f32 %v12282_v15, %v12284_v12  ;;  %v5055_v12 = vmax.f32 %v12294_v57, %v12296_v26 }
 0x579   : > { %v9271_v50 = vpop.f32.mrf.mxu0  ;;  %v9343_v10 = vpop.f32.mrf.mxu1  ;;  %9390 = vmatmul.mubr.msk.f32.gmra.mxu0 %vm5615_vm4, %v5580_v53 }
 0x57a   : > { %v5581_v17 = vmax.f32 %v5312_v62, %v5454_v8  ;;  %v5315_v39 = vmax.f32 %v5046_v1, %v9271_v50  ;;  %v5056_v8 = vmax.f32 %v12290_v41, %v12292_v61  ;;  %v5057_v61 = vmax.f32 %v12302_v23, %v12304_v25 }
 0x57b   : > { %v5195_v36 = vpop.f32.mrf.mxu0  ;;  %v5464_v37 = vpop.f32.mrf.mxu1 }
 0x57c   : > { %v5314_v46 = vmax.f32 %v5045_v16, %v5195_v36  ;;  %9392 = vmatprep.mubr.msk.f32.mxu0 %vm5615_vm4, %v5581_v17  ;;  %v5584_v20 = vmax.f32 %v5315_v39, %v9343_v10  ;;  %v5058_v17 = vmax.f32 %v12298_v33, %v12300_v63  ;;  %v13137_v63 = vld [vmem:[#allocation31_spill] sm:$0xff] }
 0x57d   : > { %v9274_v24 = vpop.f32.mrf.mxu0  ;;  %v9346_v27 = vpop.f32.mrf.mxu1  ;;  %9393 = vmatmul.mubr.msk.f32.gmra.mxu0 %vm5615_vm4, %v5582_v55 }
 0x57e   : > { %v5583_v0 = vmax.f32 %v5314_v46, %v5464_v37  ;;  %v5317_v45 = vmax.f32 %v5048_v49, %v9274_v24  ;;  %v13135_v49 = vld [vmem:[#allocation56_spill] sm:$0xff]  ;;  %v13136_v24 = vld [vmem:[#allocation29_spill] sm:$0xff] }
 0x57f   : > { %v5205_v21 = vpop.f32.mrf.mxu0  ;;  %v5474_v59 = vpop.f32.mrf.mxu1 }
 0x580   : > { %v5316_v40 = vmax.f32 %v5047_v58, %v5205_v21  ;;  %9395 = vmatprep.mubr.msk.f32.mxu0 %vm5615_vm4, %v5583_v0  ;;  %v5586_v44 = vmax.f32 %v5317_v45, %v9346_v27  ;;  %v5060_v27 = vmax.f32 %v13136_v24, %v13135_v49  ;;  %v13138_v0 = vld [vmem:[#allocation58_spill] sm:$0xff]  ;;  %v6339_v49 = vld [vmem:[%s12864_s4 + $0x10] sm:$0xff] }
 0x581   : > { %v9277_v34 = vpop.f32.mrf.mxu0  ;;  %v9349_v19 = vpop.f32.mrf.mxu1  ;;  %9396 = vmatmul.mubr.msk.f32.gmra.mxu0 %vm5615_vm4, %v5584_v20  ;;  %v5059_v20 = vmax.f32 %v13138_v0, %v13137_v63  ;;  %v6338_v24 = vld [vmem:[%s12864_s4 + $0x8] sm:$0xff] }
 0x582   : > { %v5585_v18 = vmax.f32 %v5316_v40, %v5474_v59  ;;  %v5319_v52 = vmax.f32 %v5050_v30, %v9277_v34  ;;  %v13139_v30 = vld [vmem:[#allocation90_spill] sm:$0xff]  ;;  %v13140_v34 = vld [vmem:[#allocation32_spill] sm:$0xff] }
 0x583   : > { %v5215_v2 = vpop.f32.mrf.mxu0  ;;  %v5484_v32 = vpop.f32.mrf.mxu1 }
 0x584   : > { %v5318_v38 = vmax.f32 %v5049_v13, %v5215_v2  ;;  %9398 = vmatprep.mubr.msk.f32.mxu0 %vm5615_vm4, %v5585_v18  ;;  %v5588_v29 = vmax.f32 %v5319_v52, %v9349_v19  ;;  %v5062_v19 = vmax.f32 %v13140_v34, %v13139_v30  ;;  %v13142_v52 = vld [vmem:[#allocation91_spill] sm:$0xff] }
 0x585   : > { %v9280_v7 = vpop.f32.mrf.mxu0  ;;  %v9352_v48 = vpop.f32.mrf.mxu1  ;;  %9399 = vmatmul.mubr.msk.f32.gmra.mxu0 %vm5615_vm4, %v5586_v44  ;;  %v13141_v44 = vld [vmem:[#allocation92_spill] sm:$0xff] }
 0x586   : > { %v5587_v51 = vmax.f32 %v5318_v38, %v5484_v32  ;;  %v5321_v54 = vmax.f32 %v5052_v47, %v9280_v7  ;;  %v5061_v2 = vmax.f32 %v13142_v52, %v13141_v44 }
 0x587   : > { %v5225_v22 = vpop.f32.mrf.mxu0  ;;  %v5494_v11 = vpop.f32.mrf.mxu1 }
 0x588   : > { %v5320_v9 = vmax.f32 %v5051_v4, %v5225_v22  ;;  %9401 = vmatprep.mubr.msk.f32.mxu0 %vm5615_vm4, %v5587_v51  ;;  %v5590_v6 = vmax.f32 %v5321_v54, %v9352_v48  ;;  %v13143_v51 = vld [vmem:[#allocation94_spill] sm:$0xff] }
 0x589   : > { %v9283_v42 = vpop.f32.mrf.mxu0  ;;  %v9355_v14 = vpop.f32.mrf.mxu1  ;;  %9402 = vmatmul.mubr.msk.f32.gmra.mxu0 %vm5615_vm4, %v5588_v29  ;;  %v13144_v29 = vld [vmem:[#allocation93_spill] sm:$0xff] }
 0x58a   : > { %v5589_v31 = vmax.f32 %v5320_v9, %v5494_v11  ;;  %v5323_v3 = vmax.f32 %v5054_v5, %v9283_v42  ;;  %v5064_v54 = vmax.f32 %v13144_v29, %v13143_v51  ;;  %v13145_v9 = vld [vmem:[#allocation96_spill] sm:$0xff]  ;;  %v13146_v5 = vld [vmem:[#allocation95_spill] sm:$0xff] }
 0x58b   : > { %v5235_v53 = vpop.f32.mrf.mxu0  ;;  %v5504_v56 = vpop.f32.mrf.mxu1  ;;  %v5063_v42 = vmax.f32 %v13146_v5, %v13145_v9 }
 0x58c   : > { %v5322_v60 = vmax.f32 %v5053_v28, %v5235_v53  ;;  %9404 = vmatprep.mubr.msk.f32.mxu0 %vm5615_vm4, %v5589_v31  ;;  %v5592_v43 = vmax.f32 %v5323_v3, %v9355_v14 }
 0x58d   : > { %v9286_v62 = vpop.f32.mrf.mxu0  ;;  %v9358_v15 = vpop.f32.mrf.mxu1  ;;  %9405 = vmatmul.mubr.msk.f32.gmra.mxu0 %vm5615_vm4, %v5590_v6 }
 0x58e   : > { %v5591_v1 = vmax.f32 %v5322_v60, %v5504_v56  ;;  %v5325_v35 = vmax.f32 %v5056_v8, %v9286_v62  ;;  %v13147_v56 = vld [vmem:[#allocation98_spill] sm:$0xff]  ;;  %v13148_v60 = vld [vmem:[#allocation97_spill] sm:$0xff] }
 0x58f   : > { %v5245_v50 = vpop.f32.mrf.mxu0  ;;  %v5514_v10 = vpop.f32.mrf.mxu1  ;;  %v5066_v8 = vmax.f32 %v13148_v60, %v13147_v56 }
 0x590   : > { %v5324_v16 = vmax.f32 %v5055_v12, %v5245_v50  ;;  %9407 = vmatprep.mubr.msk.f32.mxu0 %vm5615_vm4, %v5591_v1  ;;  %v5594_v57 = vmax.f32 %v5325_v35, %v9358_v15  ;;  %v13149_v12 = vld [vmem:[#allocation100_spill] sm:$0xff]  ;;  %v13150_v1 = vld [vmem:[#allocation99_spill] sm:$0xff] }
 0x591   : > { %v9289_v55 = vpop.f32.mrf.mxu0  ;;  %v9361_v41 = vpop.f32.mrf.mxu1  ;;  %9408 = vmatmul.mubr.msk.f32.gmra.mxu0 %vm5615_vm4, %v5592_v43  ;;  %v5065_v43 = vmax.f32 %v13150_v1, %v13149_v12 }
 0x592   : > { %v5593_v39 = vmax.f32 %v5324_v16, %v5514_v10  ;;  %v5327_v26 = vmax.f32 %v5058_v17, %v9289_v55 }
 0x593   : > { %v5255_v36 = vpop.f32.mrf.mxu0  ;;  %v5524_v37 = vpop.f32.mrf.mxu1 }
 0x594   : > { %v5326_v46 = vmax.f32 %v5057_v61, %v5255_v36  ;;  %9410 = vmatprep.mubr.msk.f32.mxu0 %vm5615_vm4, %v5593_v39  ;;  %v5596_v23 = vmax.f32 %v5327_v26, %v9361_v41  ;;  %v5969_v39 = vld [vmem:[%s13109_s1] sm:$0xff]  ;;  %v6343_v26 = vld [vmem:[%s12864_s4 + $0x30] sm:$0xff]  ;;  %v6342_v36 = vld [vmem:[%s12864_s4 + $0x28] sm:$0xff]  ;;  %s12840_s1 = sand.u32 1, %s9734_s23  }
 0x595   : > { %v9292_v58 = vpop.f32.mrf.mxu0  ;;  %v9364_v33 = vpop.f32.mrf.mxu1  ;;  %9411 = vmatmul.mubr.msk.f32.gmra.mxu0 %vm5615_vm4, %v5594_v57  ;;  %9442 = vmatprep.subr.mxu1 %v5969_v39  ;;  %v6344_v57 = vld [vmem:[%s12864_s4 + $0x38] sm:$0xff] }
 0x596   : > { %v5595_v45 = vmax.f32 %v5326_v46, %v5524_v37  ;;  %v5329_v25 = vmax.f32 %v5060_v27, %v9292_v58  ;;  %9443 = vmatpush3.msra.mxu1 %v5969_v39  ;;  %9492 = vmatprep.subr.mxu0 %v6344_v57  ;;  %v6341_v37 = vld [vmem:[%s12864_s4 + $0x20] sm:$0xff]  ;;  %v6340_v46 = vld [vmem:[%s12864_s4 + $0x18] sm:$0xff] }
 0x597   : > { %v5265_v21 = vpop.f32.mrf.mxu0  ;;  %v5534_v59 = vpop.f32.mrf.mxu1  ;;  %9493 = vmatpush3.msra.mxu0 %v6344_v57  ;;  %v12443_v27 = vld [vmem:[%s13151_s3] ss:$0 sm:$0xff]  ;;  %s13152_s3 = sld [smem:[#allocation12_spill]] }
 0x598   : > { %v5328_v40 = vmax.f32 %v5059_v20, %v5265_v21  ;;  %9413 = vmatprep.mubr.msk.f32.mxu0 %vm5615_vm4, %v5595_v45  ;;  %v5598_v38 = vmax.f32 %v5329_v25, %v9364_v33  ;;  %9494 = vmatprep.subr.mxu0 %v6343_v26 }
 0x599   : > { %v9295_v13 = vpop.f32.mrf.mxu0  ;;  %v9367_v18 = vpop.f32.mrf.mxu1  ;;  %9414 = vmatmul.mubr.msk.f32.gmra.mxu0 %vm5615_vm4, %v5596_v23 }
 0x59a   : > { %v5597_v32 = vmax.f32 %v5328_v40, %v5534_v59  ;;  %v5331_v47 = vmax.f32 %v5062_v19, %v9295_v13  ;;  %9495 = vmatpush3.msra.mxu0 %v6343_v26 }
 0x59b   : > { %v5275_v7 = vpop.f32.mrf.mxu0  ;;  %v5544_v48 = vpop.f32.mrf.mxu1  ;;  %9496 = vmatprep.subr.mxu0 %v6342_v36 }
 0x59c   : > { %v5330_v4 = vmax.f32 %v5061_v2, %v5275_v7  ;;  %9416 = vmatprep.mubr.msk.f32.mxu0 %vm5615_vm4, %v5597_v32  ;;  %v5600_v28 = vmax.f32 %v5331_v47, %v9367_v18  ;;  %9497 = vmatpush3.msra.mxu0 %v6342_v36 }
 0x59d   : > { %v9298_v22 = vpop.f32.mrf.mxu0  ;;  %v9370_v11 = vpop.f32.mrf.mxu1  ;;  %9417 = vmatmul.mubr.msk.f32.gmra.mxu0 %vm5615_vm4, %v5598_v38  ;;  %9498 = vmatprep.subr.mxu0 %v6341_v37 }
 0x59e   : > { %v5599_v14 = vmax.f32 %v5330_v4, %v5544_v48  ;;  %v5333_v31 = vmax.f32 %v5064_v54, %v9298_v22  ;;  %9499 = vmatpush3.msra.mxu0 %v6341_v37 }
 0x59f   : > { %v5285_v6 = vpop.f32.mrf.mxu0  ;;  %v5554_v3 = vpop.f32.mrf.mxu1  ;;  %9500 = vmatprep.subr.mxu0 %v6340_v46 }
 0x5a0   : > { %v5332_v53 = vmax.f32 %v5063_v42, %v5285_v6  ;;  %9419 = vmatprep.mubr.msk.f32.mxu0 %vm5615_vm4, %v5599_v14  ;;  %v5602_v50 = vmax.f32 %v5333_v31, %v9370_v11  ;;  %9501 = vmatpush3.msra.mxu0 %v6340_v46 }
 0x5a1   : > { %v9301_v62 = vpop.f32.mrf.mxu0  ;;  %v9373_v15 = vpop.f32.mrf.mxu1  ;;  %9420 = vmatmul.mubr.msk.f32.gmra.mxu0 %vm5615_vm4, %v5600_v28  ;;  %9502 = vmatprep.subr.mxu0 %v6339_v49 }
 0x5a2   : > { %v5601_v35 = vmax.f32 %v5332_v53, %v5554_v3  ;;  %v5335_v10 = vmax.f32 %v5066_v8, %v9301_v62  ;;  %9503 = vmatpush3.msra.mxu0 %v6339_v49 }
 0x5a3   : > { %v5295_v16 = vpop.f32.mrf.mxu0  ;;  %v5564_v55 = vpop.f32.mrf.mxu1  ;;  %9504 = vmatprep.subr.mxu0 %v6338_v24 }
 0x5a4   : > { %v5334_v17 = vmax.f32 %v5065_v43, %v5295_v16  ;;  %9422 = vmatprep.mubr.msk.f32.mxu0 %vm5615_vm4, %v5601_v35  ;;  %v5604_v61 = vmax.f32 %v5335_v10, %v9373_v15  ;;  %9505 = vmatpush3.msra.mxu0 %v6338_v24 }
 0x5a5   : > { %9423 = vmatmul.mubr.msk.f32.gmra.mxu0 %vm5615_vm4, %v5602_v50 }
 0x5a6   : > { %v5603_v41 = vmax.f32 %v5334_v17, %v5564_v55 }
 0x5a8   : > { %9425 = vmatprep.mubr.msk.f32.mxu0 %vm5615_vm4, %v5603_v41 }
 0x5a9   : > { %9426 = vmatmul.mubr.msk.f32.gmra.mxu0 %vm5615_vm4, %v5604_v61 }
 0x62d   : > { %v9382_v58 = vpop.f32.mrf.mxu0 }
 0x62e   : > { %v5784_v33 = vadd.f32 %v9382_v58, %v12443_v27 }
 0x62f   : > { %v5778_v63 = vpop.f32.mrf.mxu0 }
 0x630   : > { %v5779_v0 = vadd.f32 %v12443_v27, %v5778_v63  ;;  %v5938_v23 = vmax.f32 %v5784_v33, 0.0 }
 0x631   : > { %v9385_v20 = vpop.f32.mrf.mxu0 }
 0x632   : > { %v5937_v45 = vmax.f32 %v5779_v0, 0.0  ;;  %v5794_v25 = vadd.f32 %v9385_v20, %v12443_v27 }
 0x633   : > { %v5788_v21 = vpop.f32.mrf.mxu0 }
 0x634   : > { %v5789_v59 = vadd.f32 %v12443_v27, %v5788_v21  ;;  %9444 = vmatprep.mubr.msk.f32.mxu1 %vm3278_vm3, %v5937_v45  ;;  %v5940_v34 = vmax.f32 %v5794_v25, 0.0 }
 0x635   : > { %v9388_v40 = vpop.f32.mrf.mxu0  ;;  %9445 = vmatmul.mubr.msk.f32.vlgmr.msra.gmra.mxu1 %vm3278_vm3, %v5938_v23 }
 0x636   : > { %v5939_v30 = vmax.f32 %v5789_v59, 0.0  ;;  %v5804_v19 = vadd.f32 %v9388_v40, %v12443_v27 }
 0x637   : > { %v5798_v13 = vpop.f32.mrf.mxu0 }
 0x638   : > { %v5799_v18 = vadd.f32 %v12443_v27, %v5798_v13  ;;  %9447 = vmatprep.mubr.msk.f32.mxu1 %vm3278_vm3, %v5939_v30  ;;  %v5942_v2 = vmax.f32 %v5804_v19, 0.0 }
 0x639   : > { %v9391_v44 = vpop.f32.mrf.mxu0  ;;  %9448 = vmatmul.mubr.msk.f32.gmra.mxu1 %vm3278_vm3, %v5940_v34 }
 0x63a   : > { %v5941_v52 = vmax.f32 %v5799_v18, 0.0  ;;  %v5814_v32 = vadd.f32 %v9391_v44, %v12443_v27 }
 0x63b   : > { %v5808_v38 = vpop.f32.mrf.mxu0 }
 0x63c   : > { %v5809_v47 = vadd.f32 %v12443_v27, %v5808_v38  ;;  %9450 = vmatprep.mubr.msk.f32.mxu1 %vm3278_vm3, %v5941_v52  ;;  %v5944_v4 = vmax.f32 %v5814_v32, 0.0 }
 0x63d   : > { %v9394_v7 = vpop.f32.mrf.mxu0  ;;  %9451 = vmatmul.mubr.msk.f32.gmra.mxu1 %vm3278_vm3, %v5942_v2 }
 0x63e   : > { %v5943_v48 = vmax.f32 %v5809_v47, 0.0  ;;  %v5824_v51 = vadd.f32 %v9394_v7, %v12443_v27 }
 0x63f   : > { %v5818_v29 = vpop.f32.mrf.mxu0 }
 0x640   : > { %v5819_v54 = vadd.f32 %v12443_v27, %v5818_v29  ;;  %9453 = vmatprep.mubr.msk.f32.mxu1 %vm3278_vm3, %v5943_v48  ;;  %v5946_v9 = vmax.f32 %v5824_v51, 0.0 }
 0x641   : > { %v9397_v22 = vpop.f32.mrf.mxu0  ;;  %9454 = vmatmul.mubr.msk.f32.gmra.mxu1 %vm3278_vm3, %v5944_v4 }
 0x642   : > { %v5945_v11 = vmax.f32 %v5819_v54, 0.0  ;;  %v5834_v5 = vadd.f32 %v9397_v22, %v12443_v27 }
 0x643   : > { %v5828_v42 = vpop.f32.mrf.mxu0 }
 0x644   : > { %v5829_v14 = vadd.f32 %v12443_v27, %v5828_v42  ;;  %9456 = vmatprep.mubr.msk.f32.mxu1 %vm3278_vm3, %v5945_v11  ;;  %v5948_v6 = vmax.f32 %v5834_v5, 0.0 }
 0x645   : > { %v9400_v28 = vpop.f32.mrf.mxu0  ;;  %9457 = vmatmul.mubr.msk.f32.gmra.mxu1 %vm3278_vm3, %v5946_v9 }
 0x646   : > { %v5947_v31 = vmax.f32 %v5829_v14, 0.0  ;;  %v5844_v3 = vadd.f32 %v9400_v28, %v12443_v27  ;;  %v6337_v14 = vld [vmem:[%s12864_s4] sm:$0xff]  ;;  %s6844_s4 = sshll.u32 %s12840_s1, 8 }
 0x647   : > { %v5838_v53 = vpop.f32.mrf.mxu0  ;;  %9506 = vmatprep.subr.mxu0 %v6337_v14  ;;  %v12511_v28 = vld [vmem:[%s9902_s27] ss:$0 sm:$0xff] }
 0x648   : > { %v5839_v56 = vadd.f32 %v12443_v27, %v5838_v53  ;;  %9459 = vmatprep.mubr.msk.f32.mxu1 %vm3278_vm3, %v5947_v31  ;;  %v5950_v62 = vmax.f32 %v5844_v3, 0.0  ;;  %9507 = vmatpush3.msra.mxu0 %v6337_v14 }
 0x649   : > { %v9403_v60 = vpop.f32.mrf.mxu0  ;;  %9460 = vmatmul.mubr.msk.f32.gmra.mxu1 %vm3278_vm3, %v5948_v6 }
 0x64a   : > { %v5949_v8 = vmax.f32 %v5839_v56, 0.0  ;;  %v5854_v15 = vadd.f32 %v9403_v60, %v12443_v27 }
 0x64b   : > { %v5848_v12 = vpop.f32.mrf.mxu0 }
 0x64c   : > { %v5849_v1 = vadd.f32 %v12443_v27, %v5848_v12  ;;  %9462 = vmatprep.mubr.msk.f32.mxu1 %vm3278_vm3, %v5949_v8  ;;  %v5952_v50 = vmax.f32 %v5854_v15, 0.0 }
 0x64d   : > { %v9406_v43 = vpop.f32.mrf.mxu0  ;;  %9463 = vmatmul.mubr.msk.f32.gmra.mxu1 %vm3278_vm3, %v5950_v62 }
 0x64e   : > { %v5951_v35 = vmax.f32 %v5849_v1, 0.0  ;;  %v5864_v10 = vadd.f32 %v9406_v43, %v12443_v27 }
 0x64f   : > { %v5858_v16 = vpop.f32.mrf.mxu0 }
 0x650   : > { %v5859_v17 = vadd.f32 %v12443_v27, %v5858_v16  ;;  %9465 = vmatprep.mubr.msk.f32.mxu1 %vm3278_vm3, %v5951_v35  ;;  %v5954_v61 = vmax.f32 %v5864_v10, 0.0 }
 0x651   : > { %v9409_v55 = vpop.f32.mrf.mxu0  ;;  %9466 = vmatmul.mubr.msk.f32.gmra.mxu1 %vm3278_vm3, %v5952_v50 }
 0x652   : > { %v5953_v41 = vmax.f32 %v5859_v17, 0.0  ;;  %v5874_v39 = vadd.f32 %v9409_v55, %v12443_v27 }
 0x653   : > { %v5868_v57 = vpop.f32.mrf.mxu0 }
 0x654   : > { %v5869_v26 = vadd.f32 %v12443_v27, %v5868_v57  ;;  %9468 = vmatprep.mubr.msk.f32.mxu1 %vm3278_vm3, %v5953_v41  ;;  %v5956_v46 = vmax.f32 %v5874_v39, 0.0 }
 0x655   : > { %v9412_v36 = vpop.f32.mrf.mxu0  ;;  %9469 = vmatmul.mubr.msk.f32.gmra.mxu1 %vm3278_vm3, %v5954_v61 }
 0x656   : > { %v5955_v37 = vmax.f32 %v5869_v26, 0.0  ;;  %v5884_v49 = vadd.f32 %v9412_v36, %v12443_v27 }
 0x657   : > { %v5878_v24 = vpop.f32.mrf.mxu0 }
 0x658   : > { %v5879_v58 = vadd.f32 %v12443_v27, %v5878_v24  ;;  %9471 = vmatprep.mubr.msk.f32.mxu1 %vm3278_vm3, %v5955_v37  ;;  %v5958_v0 = vmax.f32 %v5884_v49, 0.0 }
 0x659   : > { %v9415_v33 = vpop.f32.mrf.mxu0  ;;  %9472 = vmatmul.mubr.msk.f32.gmra.mxu1 %vm3278_vm3, %v5956_v46 }
 0x65a   : > { %v5957_v63 = vmax.f32 %v5879_v58, 0.0  ;;  %v5894_v20 = vadd.f32 %v9415_v33, %v12443_v27 }
 0x65b   : > { %v5888_v45 = vpop.f32.mrf.mxu0 }
 0x65c   : > { %v5889_v23 = vadd.f32 %v12443_v27, %v5888_v45  ;;  %9474 = vmatprep.mubr.msk.f32.mxu1 %vm3278_vm3, %v5957_v63  ;;  %v5960_v59 = vmax.f32 %v5894_v20, 0.0 }
 0x65d   : > { %v9418_v25 = vpop.f32.mrf.mxu0  ;;  %9475 = vmatmul.mubr.msk.f32.gmra.mxu1 %vm3278_vm3, %v5958_v0 }
 0x65e   : > { %v5959_v21 = vmax.f32 %v5889_v23, 0.0  ;;  %v5904_v40 = vadd.f32 %v9418_v25, %v12443_v27 }
 0x65f   : > { %v5898_v30 = vpop.f32.mrf.mxu0 }
 0x660   : > { %v5899_v34 = vadd.f32 %v12443_v27, %v5898_v30  ;;  %9477 = vmatprep.mubr.msk.f32.mxu1 %vm3278_vm3, %v5959_v21  ;;  %v5962_v18 = vmax.f32 %v5904_v40, 0.0 }
 0x661   : > { %v9421_v19 = vpop.f32.mrf.mxu0  ;;  %9478 = vmatmul.mubr.msk.f32.gmra.mxu1 %vm3278_vm3, %v5960_v59 }
 0x662   : > { %v5961_v13 = vmax.f32 %v5899_v34, 0.0  ;;  %v5914_v44 = vadd.f32 %v9421_v19, %v12443_v27 }
 0x663   : > { %v5908_v52 = vpop.f32.mrf.mxu0 }
 0x664   : > { %v5909_v2 = vadd.f32 %v12443_v27, %v5908_v52  ;;  %9480 = vmatprep.mubr.msk.f32.mxu1 %vm3278_vm3, %v5961_v13  ;;  %v5964_v47 = vmax.f32 %v5914_v44, 0.0 }
 0x665   : > { %v9424_v32 = vpop.f32.mrf.mxu0  ;;  %9481 = vmatmul.mubr.msk.f32.gmra.mxu1 %vm3278_vm3, %v5962_v18 }
 0x666   : > { %v5963_v38 = vmax.f32 %v5909_v2, 0.0  ;;  %v5924_v7 = vadd.f32 %v9424_v32, %v12443_v27 }
 0x667   : > { %v5918_v48 = vpop.f32.mrf.mxu0 }
 0x668   : > { %v5919_v4 = vadd.f32 %v12443_v27, %v5918_v48  ;;  %9483 = vmatprep.mubr.msk.f32.mxu1 %vm3278_vm3, %v5963_v38  ;;  %v5966_v54 = vmax.f32 %v5924_v7, 0.0 }
 0x669   : > { %v9427_v51 = vpop.f32.mrf.mxu0  ;;  %9484 = vmatmul.mubr.msk.f32.gmra.mxu1 %vm3278_vm3, %v5964_v47 }
 0x66a   : > { %v5965_v29 = vmax.f32 %v5919_v4, 0.0  ;;  %v5934_v22 = vadd.f32 %v9427_v51, %v12443_v27 }
 0x66b   : > { %v5928_v11 = vpop.f32.mrf.mxu0 }
 0x66c   : > { %v5929_v9 = vadd.f32 %v12443_v27, %v5928_v11  ;;  %9486 = vmatprep.mubr.msk.f32.mxu1 %vm3278_vm3, %v5965_v29  ;;  %v5968_v42 = vmax.f32 %v5934_v22, 0.0 }
 0x66d   : > { %9487 = vmatmul.mubr.msk.f32.gmra.mxu1 %vm3278_vm3, %v5966_v54 }
 0x66e   : > { %v5967_v5 = vmax.f32 %v5929_v9, 0.0 }
 0x670   : > { %9489 = vmatprep.mubr.msk.f32.mxu1 %vm3278_vm3, %v5967_v5 }
 0x671   : > { %9490 = vmatmul.mubr.msk.f32.gmra.mxu1 %vm3278_vm3, %v5968_v42 }
 0x6f5   : > { %v9446_v31 = vpop.f32.mrf.mxu1 }
 0x6f6   : > { %v6152_v6 = vadd.f32 %v9446_v31, %v12511_v28 }
 0x6f7   : > { %v6146_v3 = vpop.f32.mrf.mxu1 }
 0x6f8   : > { %v6147_v27 = vadd.f32 %v12511_v28, %v6146_v3  ;;  %v6306_v60 = vmax.f32 %v6152_v6, 0.0 }
 0x6f9   : > { %v9449_v53 = vpop.f32.mrf.mxu1 }
 0x6fa   : > { %v6305_v56 = vmax.f32 %v6147_v27, 0.0  ;;  %v6162_v8 = vadd.f32 %v9449_v53, %v12511_v28 }
 0x6fb   : > { %v6156_v62 = vpop.f32.mrf.mxu1 }
 0x6fc   : > { %v6157_v15 = vadd.f32 %v12511_v28, %v6156_v62  ;;  %9508 = vmatprep.mubr.msk.f32.mxu0 %vm3278_vm3, %v6305_v56  ;;  %v6308_v43 = vmax.f32 %v6162_v8, 0.0 }
 0x6fd   : > { %v9452_v12 = vpop.f32.mrf.mxu1  ;;  %9509 = vmatmul.mubr.msk.f32.vlgmr.msra.gmra.mxu0 %vm3278_vm3, %v6306_v60 }
 0x6fe   : > { %v6307_v1 = vmax.f32 %v6157_v15, 0.0  ;;  %v6172_v35 = vadd.f32 %v9452_v12, %v12511_v28 }
 0x6ff   : > { %v6166_v50 = vpop.f32.mrf.mxu1 }
 0x700   : > { %v6167_v10 = vadd.f32 %v12511_v28, %v6166_v50  ;;  %9511 = vmatprep.mubr.msk.f32.mxu0 %vm3278_vm3, %v6307_v1  ;;  %v6310_v55 = vmax.f32 %v6172_v35, 0.0 }
 0x701   : > { %v9455_v16 = vpop.f32.mrf.mxu1  ;;  %9512 = vmatmul.mubr.msk.f32.gmra.mxu0 %vm3278_vm3, %v6308_v43 }
 0x702   : > { %v6309_v17 = vmax.f32 %v6167_v10, 0.0  ;;  %v6182_v41 = vadd.f32 %v9455_v16, %v12511_v28 }
 0x703   : > { %v6176_v61 = vpop.f32.mrf.mxu1 }
 0x704   : > { %v6177_v39 = vadd.f32 %v12511_v28, %v6176_v61  ;;  %9514 = vmatprep.mubr.msk.f32.mxu0 %vm3278_vm3, %v6309_v17  ;;  %v6312_v36 = vmax.f32 %v6182_v41, 0.0 }
 0x705   : > { %v9458_v57 = vpop.f32.mrf.mxu1  ;;  %9515 = vmatmul.mubr.msk.f32.gmra.mxu0 %vm3278_vm3, %v6310_v55 }
 0x706   : > { %v6311_v26 = vmax.f32 %v6177_v39, 0.0  ;;  %v6192_v37 = vadd.f32 %v9458_v57, %v12511_v28 }
 0x707   : > { %v6186_v46 = vpop.f32.mrf.mxu1 }
 0x708   : > { %v6187_v49 = vadd.f32 %v12511_v28, %v6186_v46  ;;  %9517 = vmatprep.mubr.msk.f32.mxu0 %vm3278_vm3, %v6311_v26  ;;  %v6314_v33 = vmax.f32 %v6192_v37, 0.0 }
 0x709   : > { %v9461_v24 = vpop.f32.mrf.mxu1  ;;  %9518 = vmatmul.mubr.msk.f32.gmra.mxu0 %vm3278_vm3, %v6312_v36 }
 0x70a   : > { %v6313_v58 = vmax.f32 %v6187_v49, 0.0  ;;  %v6202_v63 = vadd.f32 %v9461_v24, %v12511_v28 }
 0x70b   : > { %v6196_v0 = vpop.f32.mrf.mxu1 }
 0x70c   : > { %v6197_v20 = vadd.f32 %v12511_v28, %v6196_v0  ;;  %9520 = vmatprep.mubr.msk.f32.mxu0 %vm3278_vm3, %v6313_v58  ;;  %v6316_v25 = vmax.f32 %v6202_v63, 0.0 }
 0x70d   : > { %v9464_v45 = vpop.f32.mrf.mxu1  ;;  %9521 = vmatmul.mubr.msk.f32.gmra.mxu0 %vm3278_vm3, %v6314_v33 }
 0x70e   : > { %v6315_v23 = vmax.f32 %v6197_v20, 0.0  ;;  %v6212_v21 = vadd.f32 %v9464_v45, %v12511_v28  ;;  %v12578_v20 = vld [vmem:[%s13152_s3] ss:$0 sm:$0xff]  ;;  %s12601_s3 = scalar_lea.vmem [#allocation2], %s6844_s4  ;;  %s7468_s4 = sshll.u32 %s9940_s0, 12 }
 0x70f   : > { %v6206_v59 = vpop.f32.mrf.mxu1  ;;  %v13153_v45 = vld [vmem:[#allocation21_spill] sm:$0xff]  ;;  %s6751_s1 = sshll.u32 %s12601_s3, 4  ;;  %s12749_s5 = scalar_lea.hbm %s9917_s30, %s7468_s4  ;;  %s12751_s1 = int_to_ptr.vmem [resolvable:$true] %s6751_s1 }
 0x710   : > { %v6207_v40 = vadd.f32 %v12511_v28, %v6206_v59  ;;  %9523 = vmatprep.mubr.msk.f32.mxu0 %vm3278_vm3, %v6315_v23  ;;  %v6318_v19 = vmax.f32 %v6212_v21, 0.0  ;;  %v3815_v23 = vadd.f32 %v13153_v45, %v12578_v20  ;;  %v13154_v21 = vld [vmem:[#allocation57_spill] sm:$0xff]  ;;  %v13172_v45 = vld [vmem:[#allocation64_spill] sm:$0xff]  ;;  %s12757_s0 = scalar_lea.sflag [#allocation3], %s13217_s6  ;;  %s9682_s7 = scalar_lea.vmem %s12751_s1, 4096 }
 0x711   : > { %v9467_v30 = vpop.f32.mrf.mxu1  ;;  %9524 = vmatmul.mubr.msk.f32.gmra.mxu0 %vm3278_vm3, %v6316_v25  ;;  %v12584_v25 = vld [vmem:[%s9912_s12] ss:$0 sm:$0xff]  ;;  %p9683_p11 = scmp.ne.s32.totalorder %s12751_s1, %s9682_s7  ;;  %s9688_s4 = scalar_lea.vmem %s9687_s9, 8192 }
 0x712   : > { %v6317_v34 = vmax.f32 %v6207_v40, 0.0  ;;  %v6222_v13 = vadd.f32 %v9467_v30, %v12511_v28  ;;  %v13155_v40 = vld [vmem:[#allocation25_spill] sm:$0xff]  ;;  %p9689_p0 = scmp.lt.s32.totalorder %s12751_s1, %s9687_s9  ;;  %p9690_p1 = scmp.lt.s32.totalorder %s9688_s4, %s9682_s7 }
 0x713   : > { %v6216_v18 = vpop.f32.mrf.mxu1  ;;  %v4040_v30 = vadd.f32 %v13155_v40, %v3815_v23  ;;  %v3865_v23 = vadd.f32 %v13172_v45, %v12578_v20  ;;  %v13173_v40 = vld [vmem:[#allocation79_spill] sm:$0xff]  ;;  %p9684_p12 = pnand %p9683_p11, %p9957_p5 }
 0x714   : > { %v6217_v44 = vadd.f32 %v12511_v28, %v6216_v18  ;;  %9526 = vmatprep.mubr.msk.f32.mxu0 %vm3278_vm3, %v6317_v34  ;;  %v6320_v32 = vmax.f32 %v6222_v13, 0.0  ;;  %v13156_v34 = vld [vmem:[#allocation60_spill] sm:$0xff]  ;;  %p9691_p2 = por %p9690_p1, %p9689_p0 }
 0x715   : > { %v9470_v52 = vpop.f32.mrf.mxu1  ;;  %9527 = vmatmul.mubr.msk.f32.gmra.mxu0 %vm3278_vm3, %v6318_v19  ;;  %v3825_v19 = vadd.f32 %v13156_v34, %v12578_v20  ;;  %v13174_v34 = vld [vmem:[#allocation33_spill] sm:$0xff]  ;;  %p9685_p13 = pneg %p9684_p12 }
 0x716   : > { %v6319_v2 = vmax.f32 %v6217_v44, 0.0  ;;  %v6232_v38 = vadd.f32 %v9470_v52, %v12511_v28  ;;  %v13157_v44 = vld [vmem:[#allocation73_spill] sm:$0xff] }
 0x717   : > { %v6226_v47 = vpop.f32.mrf.mxu1  ;;  %p9692_p3 = pnand %p9691_p2, %p9685_p13 }
 0x718   : > { %v6227_v7 = vadd.f32 %v12511_v28, %v6226_v47  ;;  %9529 = vmatprep.mubr.msk.f32.mxu0 %vm3278_vm3, %v6319_v2  ;;  %v6322_v51 = vmax.f32 %v6232_v38, 0.0  ;;  %v13158_v2 = vld [vmem:[#allocation30_spill] sm:$0xff] }
 0x719   : > { %v9473_v48 = vpop.f32.mrf.mxu1  ;;  %9530 = vmatmul.mubr.msk.f32.gmra.mxu0 %vm3278_vm3, %v6320_v32  ;;  %v3820_v32 = vadd.f32 %v12578_v20, %v13158_v2 }
 0x71a   : > { %v6321_v4 = vmax.f32 %v6227_v7, 0.0  ;;  %v6242_v29 = vadd.f32 %v9473_v48, %v12511_v28  ;;  %v13159_v48 = vld [vmem:[#allocation42_spill] sm:$0xff] }
 0x71b   : > { %v6236_v54 = vpop.f32.mrf.mxu1 }
 0x71c   : > { %v6237_v22 = vadd.f32 %v12511_v28, %v6236_v54  ;;  %9532 = vmatprep.mubr.msk.f32.mxu0 %vm3278_vm3, %v6321_v4  ;;  %v6324_v5 = vmax.f32 %v6242_v29, 0.0  ;;  %v4050_v4 = vadd.f32 %v13159_v48, %v3825_v19  ;;  %v3860_v19 = vadd.f32 %v12578_v20, %v13174_v34 }
 0x71d   : > { %v9476_v11 = vpop.f32.mrf.mxu1  ;;  %9533 = vmatmul.mubr.msk.f32.gmra.mxu0 %vm3278_vm3, %v6322_v51  ;;  %v13160_v51 = vld [vmem:[#allocation59_spill] sm:$0xff] }
 0x71e   : > { %v6323_v9 = vmax.f32 %v6237_v22, 0.0  ;;  %v6252_v42 = vadd.f32 %v9476_v11, %v12511_v28  ;;  %v3835_v29 = vadd.f32 %v13160_v51, %v12578_v20 }
 0x71f   : > { %v6246_v14 = vpop.f32.mrf.mxu1 }
 0x720   : > { %v6247_v31 = vadd.f32 %v12511_v28, %v6246_v14  ;;  %9535 = vmatprep.mubr.msk.f32.mxu0 %vm3278_vm3, %v6323_v9  ;;  %v6326_v27 = vmax.f32 %v6252_v42, 0.0  ;;  %v13161_v9 = vld [vmem:[#allocation75_spill] sm:$0xff]  ;;  %v13162_v42 = vld [vmem:[#allocation62_spill] sm:$0xff] }
 0x721   : > { %v9479_v6 = vpop.f32.mrf.mxu1  ;;  %9536 = vmatmul.mubr.msk.f32.gmra.mxu0 %vm3278_vm3, %v6324_v5  ;;  %v4045_v5 = vadd.f32 %v13161_v9, %v3820_v32  ;;  %v3830_v14 = vadd.f32 %v12578_v20, %v13162_v42  ;;  %v13176_v32 = vld [vmem:[#allocation63_spill] sm:$0xff] }
 0x722   : > { %v6325_v3 = vmax.f32 %v6247_v31, 0.0  ;;  %v6262_v53 = vadd.f32 %v9479_v6, %v12511_v28 }
 0x723   : > { %v6256_v56 = vpop.f32.mrf.mxu1 }
 0x724   : > { %v6257_v60 = vadd.f32 %v12511_v28, %v6256_v56  ;;  %9538 = vmatprep.mubr.msk.f32.mxu0 %vm3278_vm3, %v6325_v3  ;;  %v6328_v15 = vmax.f32 %v6262_v53, 0.0  ;;  %v13164_v56 = vld [vmem:[#allocation34_spill] sm:$0xff] }
 0x725   : > { %v9482_v8 = vpop.f32.mrf.mxu1  ;;  %9539 = vmatmul.mubr.msk.f32.gmra.mxu0 %vm3278_vm3, %v6326_v27  ;;  %v13163_v27 = vld [vmem:[#allocation77_spill] sm:$0xff] }
 0x726   : > { %v6327_v62 = vmax.f32 %v6257_v60, 0.0  ;;  %v6272_v12 = vadd.f32 %v9482_v8, %v12511_v28  ;;  %v4060_v53 = vadd.f32 %v13163_v27, %v3835_v29  ;;  %v3845_v60 = vadd.f32 %v13164_v56, %v12578_v20  ;;  %v13178_v29 = vld [vmem:[#allocation66_spill] sm:$0xff] }
 0x727   : > { %v6266_v1 = vpop.f32.mrf.mxu1 }
 0x728   : > { %v6267_v43 = vadd.f32 %v12511_v28, %v6266_v1  ;;  %9541 = vmatprep.mubr.msk.f32.mxu0 %vm3278_vm3, %v6327_v62  ;;  %v6330_v10 = vmax.f32 %v6272_v12, 0.0  ;;  %v13165_v12 = vld [vmem:[#allocation46_spill] sm:$0xff] }
 0x729   : > { %v9485_v35 = vpop.f32.mrf.mxu1  ;;  %9542 = vmatmul.mubr.msk.f32.gmra.mxu0 %vm3278_vm3, %v6328_v15  ;;  %v4055_v1 = vadd.f32 %v13165_v12, %v3830_v14  ;;  %v13180_v14 = vld [vmem:[#allocation37_spill] sm:$0xff] }
 0x72a   : > { %v6329_v50 = vmax.f32 %v6267_v43, 0.0  ;;  %v6282_v16 = vadd.f32 %v9485_v35, %v12511_v28  ;;  %v13166_v43 = vld [vmem:[#allocation35_spill] sm:$0xff] }
 0x72b   : > { %v6276_v17 = vpop.f32.mrf.mxu1  ;;  %v3840_v35 = vadd.f32 %v12578_v20, %v13166_v43 }
 0x72c   : > { %v6277_v55 = vadd.f32 %v12511_v28, %v6276_v17  ;;  %9544 = vmatprep.mubr.msk.f32.mxu0 %vm3278_vm3, %v6329_v50  ;;  %v6332_v39 = vmax.f32 %v6282_v16, 0.0  ;;  %v13167_v17 = vld [vmem:[#allocation47_spill] sm:$0xff] }
 0x72d   : > { %v9488_v41 = vpop.f32.mrf.mxu1  ;;  %9545 = vmatmul.mubr.msk.f32.gmra.mxu0 %vm3278_vm3, %v6330_v10 }
 0x72e   : > { %v6331_v61 = vmax.f32 %v6277_v55, 0.0  ;;  %v6292_v57 = vadd.f32 %v9488_v41, %v12511_v28  ;;  %v4070_v55 = vadd.f32 %v13167_v17, %v3845_v60  ;;  %v13168_v41 = vld [vmem:[#allocation22_spill] sm:$0xff] }
 0x72f   : > { %v6286_v26 = vpop.f32.mrf.mxu1  ;;  %v13182_v60 = vld [vmem:[#allocation38_spill] sm:$0xff] }
 0x730   : > { %v6287_v36 = vadd.f32 %v12511_v28, %v6286_v26  ;;  %9547 = vmatprep.mubr.msk.f32.mxu0 %vm3278_vm3, %v6331_v61  ;;  %v6334_v49 = vmax.f32 %v6292_v57, 0.0  ;;  %v3855_v61 = vadd.f32 %v13168_v41, %v12578_v20 }
 0x731   : > { %v9491_v37 = vpop.f32.mrf.mxu1  ;;  %9548 = vmatmul.mubr.msk.f32.gmra.mxu0 %vm3278_vm3, %v6332_v39 }
 0x732   : > { %v6333_v46 = vmax.f32 %v6287_v36, 0.0  ;;  %v6302_v24 = vadd.f32 %v9491_v37, %v12511_v28  ;;  %v13169_v36 = vld [vmem:[#allocation26_spill] sm:$0xff] }
 0x733   : > { %v6296_v58 = vpop.f32.mrf.mxu1  ;;  %v4065_v37 = vadd.f32 %v13169_v36, %v3840_v35  ;;  %v13184_v35 = vld [vmem:[#allocation23_spill] sm:$0xff] }
 0x734   : > { %v6297_v33 = vadd.f32 %v12511_v28, %v6296_v58  ;;  %9550 = vmatprep.mubr.msk.f32.mxu0 %vm3278_vm3, %v6333_v46  ;;  %v6336_v0 = vmax.f32 %v6302_v24, 0.0  ;;  %v3810_v28 = vadd.f32 %v12578_v20, %v13154_v21  ;;  %v13170_v46 = vld [vmem:[#allocation61_spill] sm:$0xff] }
 0x735   : > { %9551 = vmatmul.mubr.msk.f32.gmra.mxu0 %vm3278_vm3, %v6334_v49  ;;  %v3850_v49 = vadd.f32 %v12578_v20, %v13170_v46 }
 0x736   : > { %v6335_v63 = vmax.f32 %v6297_v33, 0.0  ;;  %v4035_v52 = vadd.f32 %v13157_v44, %v3810_v28 }
 0x738   : > { %9553 = vmatprep.mubr.msk.f32.mxu0 %vm3278_vm3, %v6335_v63  ;;  %v13171_v63 = vld [vmem:[#allocation76_spill] sm:$0xff] }
 0x739   : > { %9554 = vmatmul.mubr.msk.f32.gmra.mxu0 %vm3278_vm3, %v6336_v0  ;;  %v4080_v0 = vadd.f32 %v13171_v63, %v3855_v61  ;;  %v13186_v61 = vld [vmem:[#allocation65_spill] sm:$0xff] }
 0x7bd   : > { %v9510_v59 = vpop.f32.mrf.mxu0 }
 0x7be   : > { %v6520_v13 = vadd.f32 %v9510_v59, %v12584_v25 }
 0x7bf   : > { %v6514_v18 = vpop.f32.mrf.mxu0 }
 0x7c0   : > { %v6674_v38 = vadd.f32 %v6520_v13, %v4040_v30  ;;  %v6515_v47 = vadd.f32 %v12584_v25, %v6514_v18  ;;  %v4075_v30 = vadd.f32 %v13173_v40, %v3850_v49  ;;  %v13188_v49 = vld [vmem:[#allocation68_spill] sm:$0xff] }
 0x7c1   : > { %v9513_v7 = vpop.f32.mrf.mxu0 }
 0x7c2   : > { %6706 = vst [vmem:[%s12601_s3 + $0x8] sm:$0xff] %v6674_v38  ;;  %v6673_v54 = vadd.f32 %v6515_v47, %v4035_v52  ;;  %v6530_v22 = vadd.f32 %v9513_v7, %v12584_v25  ;;  %v13175_v52 = vld [vmem:[#allocation45_spill] sm:$0xff]  ;;  %v3875_v38 = vadd.f32 %v13176_v32, %v12578_v20 }
 0x7c3   : > { %v6524_v11 = vpop.f32.mrf.mxu0  ;;  %v4090_v2 = vadd.f32 %v13175_v52, %v3865_v23  ;;  %v13190_v23 = vld [vmem:[#allocation36_spill] sm:$0xff] }
 0x7c4   : > { %6705 = vst [vmem:[%s12601_s3] sm:$0xff] %v6673_v54  ;;  %v6676_v31 = vadd.f32 %v6530_v22, %v4050_v4  ;;  %v6525_v6 = vadd.f32 %v12584_v25, %v6524_v11  ;;  %v13177_v4 = vld [vmem:[#allocation78_spill] sm:$0xff]  ;;  %v3870_v54 = vadd.f32 %v12578_v20, %v13178_v29 }
 0x7c5   : > { %v9516_v3 = vpop.f32.mrf.mxu0  ;;  %v4085_v51 = vadd.f32 %v13177_v4, %v3860_v19  ;;  %v13192_v19 = vld [vmem:[#allocation67_spill] sm:$0xff] }
 0x7c6   : > { %6708 = vst [vmem:[%s12601_s3 + $0x18] sm:$0xff] %v6676_v31  ;;  %v6675_v8 = vadd.f32 %v6525_v6, %v4045_v5  ;;  %v6540_v62 = vadd.f32 %v9516_v3, %v12584_v25  ;;  %v13179_v5 = vld [vmem:[#allocation81_spill] sm:$0xff]  ;;  %v3885_v31 = vadd.f32 %v13180_v14, %v12578_v20 }
 0x7c7   : > { %v6534_v15 = vpop.f32.mrf.mxu0  ;;  %v4100_v42 = vadd.f32 %v13179_v5, %v3875_v38  ;;  %v13194_v38 = vld [vmem:[#allocation70_spill] sm:$0xff] }
 0x7c8   : > { %6707 = vst [vmem:[%s12601_s3 + $0x10] sm:$0xff] %v6675_v8  ;;  %v6678_v50 = vadd.f32 %v6540_v62, %v4060_v53  ;;  %v6535_v10 = vadd.f32 %v12584_v25, %v6534_v15  ;;  %v13181_v53 = vld [vmem:[#allocation49_spill] sm:$0xff]  ;;  %v3880_v8 = vadd.f32 %v12578_v20, %v13182_v60 }
 0x7c9   : > { %v9519_v16 = vpop.f32.mrf.mxu0  ;;  %v4095_v56 = vadd.f32 %v13181_v53, %v3870_v54  ;;  %v13196_v54 = vld [vmem:[#allocation40_spill] sm:$0xff] }
 0x7ca   : > { %6710 = vst [vmem:[%s12601_s3 + $0x28] sm:$0xff] %v6678_v50  ;;  %v6677_v39 = vadd.f32 %v6535_v10, %v4055_v1  ;;  %v6550_v57 = vadd.f32 %v9519_v16, %v12584_v25  ;;  %v13183_v1 = vld [vmem:[#allocation50_spill] sm:$0xff]  ;;  %v3895_v50 = vadd.f32 %v13184_v35, %v12578_v20 }
 0x7cb   : > { %v6544_v26 = vpop.f32.mrf.mxu0  ;;  %v4110_v43 = vadd.f32 %v13183_v1, %v3885_v31  ;;  %v13198_v31 = vld [vmem:[#allocation41_spill] sm:$0xff] }
 0x7cc   : > { %6709 = vst [vmem:[%s12601_s3 + $0x20] sm:$0xff] %v6677_v39  ;;  %v6680_v24 = vadd.f32 %v6550_v57, %v4070_v55  ;;  %v6545_v58 = vadd.f32 %v12584_v25, %v6544_v26  ;;  %v13185_v55 = vld [vmem:[#allocation27_spill] sm:$0xff]  ;;  %v3890_v39 = vadd.f32 %v12578_v20, %v13186_v61 }
 0x7cd   : > { %v9522_v33 = vpop.f32.mrf.mxu0  ;;  %v4105_v41 = vadd.f32 %v13185_v55, %v3880_v8  ;;  %v13200_v8 = vld [vmem:[#allocation24_spill] sm:$0xff] }
 0x7ce   : > { %6712 = vst [vmem:[%s12601_s3 + $0x38] sm:$0xff] %v6680_v24  ;;  %v6679_v21 = vadd.f32 %v6545_v58, %v4065_v37  ;;  %v6560_v28 = vadd.f32 %v9522_v33, %v12584_v25  ;;  %v13187_v37 = vld [vmem:[#allocation80_spill] sm:$0xff]  ;;  %v3905_v24 = vadd.f32 %v13188_v49, %v12578_v20 }
 0x7cf   : > { %v6554_v59 = vpop.f32.mrf.mxu0  ;;  %v4120_v46 = vadd.f32 %v13187_v37, %v3895_v50  ;;  %v13202_v50 = vld [vmem:[#allocation69_spill] sm:$0xff] }
 0x7d0   : > { %6711 = vst [vmem:[%s12601_s3 + $0x30] sm:$0xff] %v6679_v21  ;;  %v6682_v13 = vadd.f32 %v6560_v28, %v4080_v0  ;;  %v6555_v18 = vadd.f32 %v12584_v25, %v6554_v59  ;;  %v13189_v0 = vld [vmem:[#allocation83_spill] sm:$0xff]  ;;  %v3900_v21 = vadd.f32 %v12578_v20, %v13190_v23 }
 0x7d1   : > { %v9525_v44 = vpop.f32.mrf.mxu0  ;;  %v4115_v45 = vadd.f32 %v13189_v0, %v3890_v39  ;;  %v13204_v39 = vld [vmem:[#allocation72_spill] sm:$0xff] }
 0x7d2   : > { %6714 = vst [vmem:[%s12601_s3 + $0x48] sm:$0xff] %v6682_v13  ;;  %v6681_v47 = vadd.f32 %v6555_v18, %v4075_v30  ;;  %v6570_v7 = vadd.f32 %v9525_v44, %v12584_v25  ;;  %v13191_v30 = vld [vmem:[#allocation48_spill] sm:$0xff]  ;;  %v3915_v13 = vadd.f32 %v13192_v19, %v12578_v20 }
 0x7d3   : > { %v6564_v48 = vpop.f32.mrf.mxu0  ;;  %v4130_v34 = vadd.f32 %v13191_v30, %v3905_v24  ;;  %v13206_v24 = vld [vmem:[#allocation39_spill] sm:$0xff] }
 0x7d4   : > { %6713 = vst [vmem:[%s12601_s3 + $0x40] sm:$0xff] %v6681_v47  ;;  %v6684_v22 = vadd.f32 %v6570_v7, %v4090_v2  ;;  %v6565_v11 = vadd.f32 %v12584_v25, %v6564_v48  ;;  %v13193_v2 = vld [vmem:[#allocation82_spill] sm:$0xff]  ;;  %v3910_v47 = vadd.f32 %v12578_v20, %v13194_v38 }
 0x7d5   : > { %v9528_v9 = vpop.f32.mrf.mxu0  ;;  %v4125_v32 = vadd.f32 %v13193_v2, %v3900_v21  ;;  %v13208_v21 = vld [vmem:[#allocation71_spill] sm:$0xff] }
 0x7d6   : > { %6716 = vst [vmem:[%s12601_s3 + $0x58] sm:$0xff] %v6684_v22  ;;  %v6683_v6 = vadd.f32 %v6565_v11, %v4085_v51  ;;  %v6580_v3 = vadd.f32 %v9528_v9, %v12584_v25  ;;  %v13195_v51 = vld [vmem:[#allocation85_spill] sm:$0xff]  ;;  %v3925_v22 = vadd.f32 %v13196_v54, %v12578_v20 }
 0x7d7   : > { %v6574_v27 = vpop.f32.mrf.mxu0  ;;  %v4140_v29 = vadd.f32 %v13195_v51, %v3915_v13  ;;  %v13210_v13 = vld [vmem:[#allocation74_spill] sm:$0xff] }
 0x7d8   : > { %6715 = vst [vmem:[%s12601_s3 + $0x50] sm:$0xff] %v6683_v6  ;;  %v6686_v62 = vadd.f32 %v6580_v3, %v4100_v42  ;;  %v6575_v15 = vadd.f32 %v12584_v25, %v6574_v27  ;;  %v13197_v42 = vld [vmem:[#allocation52_spill] sm:$0xff]  ;;  %v3920_v6 = vadd.f32 %v12578_v20, %v13198_v31 }
 0x7d9   : > { %v9531_v12 = vpop.f32.mrf.mxu0  ;;  %v4135_v14 = vadd.f32 %v13197_v42, %v3910_v47  ;;  %v13212_v47 = vld [vmem:[#allocation43_spill] sm:$0xff] }
 0x7da   : > { %6718 = vst [vmem:[%s12601_s3 + $0x68] sm:$0xff] %v6686_v62  ;;  %v6685_v10 = vadd.f32 %v6575_v15, %v4095_v56  ;;  %v6590_v16 = vadd.f32 %v9531_v12, %v12584_v25  ;;  %v13199_v56 = vld [vmem:[#allocation53_spill] sm:$0xff]  ;;  %v3935_v62 = vadd.f32 %v13200_v8, %v12578_v20 }
 0x7db   : > { %v6584_v17 = vpop.f32.mrf.mxu0  ;;  %v4150_v60 = vadd.f32 %v13199_v56, %v3925_v22  ;;  %v13214_v22 = vld [vmem:[#allocation44_spill] sm:$0xff] }
 0x7dc   : > { %6717 = vst [vmem:[%s12601_s3 + $0x60] sm:$0xff] %v6685_v10  ;;  %v6688_v57 = vadd.f32 %v6590_v16, %v4110_v43  ;;  %v6585_v26 = vadd.f32 %v12584_v25, %v6584_v17  ;;  %v13201_v43 = vld [vmem:[#allocation28_spill] sm:$0xff]  ;;  %v3930_v10 = vadd.f32 %v12578_v20, %v13202_v50 }
 0x7dd   : > { %v9534_v36 = vpop.f32.mrf.mxu0  ;;  %v4145_v35 = vadd.f32 %v13201_v43, %v3920_v6 }
 0x7de   : > { %6720 = vst [vmem:[%s12601_s3 + $0x78] sm:$0xff] %v6688_v57  ;;  %v6687_v58 = vadd.f32 %v6585_v26, %v4105_v41  ;;  %v6600_v33 = vadd.f32 %v9534_v36, %v12584_v25  ;;  %v13203_v41 = vld [vmem:[#allocation84_spill] sm:$0xff]  ;;  %v3945_v57 = vadd.f32 %v13204_v39, %v12578_v20 }
 0x7df   : > { %v6594_v63 = vpop.f32.mrf.mxu0  ;;  %v4160_v61 = vadd.f32 %v13203_v41, %v3935_v62 }
 0x7e0   : > { %6719 = vst [vmem:[%s12601_s3 + $0x70] sm:$0xff] %v6687_v58  ;;  %v6690_v28 = vadd.f32 %v6600_v33, %v4120_v46  ;;  %v6595_v59 = vadd.f32 %v12584_v25, %v6594_v63  ;;  %v13205_v46 = vld [vmem:[#allocation51_spill] sm:$0xff]  ;;  %v3940_v58 = vadd.f32 %v12578_v20, %v13206_v24 }
 0x7e1   : > { %v9537_v40 = vpop.f32.mrf.mxu0  ;;  %v4155_v49 = vadd.f32 %v13205_v46, %v3930_v10 }
 0x7e2   : > { %6722 = vst [vmem:[%s12601_s3 + $0x88] sm:$0xff] %v6690_v28  ;;  %v6689_v18 = vadd.f32 %v6595_v59, %v4115_v45  ;;  %v6610_v44 = vadd.f32 %v9537_v40, %v12584_v25  ;;  %v13207_v45 = vld [vmem:[#allocation86_spill] sm:$0xff]  ;;  %v3955_v28 = vadd.f32 %v13208_v21, %v12578_v20 }
 0x7e3   : > { %v6604_v52 = vpop.f32.mrf.mxu0  ;;  %v4170_v23 = vadd.f32 %v13207_v45, %v3945_v57 }
 0x7e4   : > { %6721 = vst [vmem:[%s12601_s3 + $0x80] sm:$0xff] %v6689_v18  ;;  %v6692_v7 = vadd.f32 %v6610_v44, %v4130_v34  ;;  %v6605_v48 = vadd.f32 %v12584_v25, %v6604_v52  ;;  %v13209_v34 = vld [vmem:[#allocation55_spill] sm:$0xff]  ;;  %v3950_v18 = vadd.f32 %v12578_v20, %v13210_v13 }
 0x7e5   : > { %v9540_v4 = vpop.f32.mrf.mxu0  ;;  %v4165_v19 = vadd.f32 %v13209_v34, %v3940_v58 }
 0x7e6   : > { %6724 = vst [vmem:[%s12601_s3 + $0x98] sm:$0xff] %v6692_v7  ;;  %v6691_v11 = vadd.f32 %v6605_v48, %v4125_v32  ;;  %v6620_v9 = vadd.f32 %v9540_v4, %v12584_v25  ;;  %v13211_v32 = vld [vmem:[#allocation87_spill] sm:$0xff]  ;;  %v3965_v7 = vadd.f32 %v13212_v47, %v12578_v20 }
 0x7e7   : > { %v6614_v5 = vpop.f32.mrf.mxu0  ;;  %v4180_v38 = vadd.f32 %v13211_v32, %v3955_v28 }
 0x7e8   : > { %6723 = vst [vmem:[%s12601_s3 + $0x90] sm:$0xff] %v6691_v11  ;;  %v6694_v3 = vadd.f32 %v6620_v9, %v4140_v29  ;;  %v6615_v27 = vadd.f32 %v12584_v25, %v6614_v5  ;;  %v13213_v29 = vld [vmem:[#allocation54_spill] sm:$0xff]  ;;  %v3960_v11 = vadd.f32 %v12578_v20, %v13214_v22  ;;  %v13216_v20 = vld [vmem:[#allocation88_spill] sm:$0xff] }
 0x7e9   : > { %v9543_v53 = vpop.f32.mrf.mxu0  ;;  %v4175_v54 = vadd.f32 %v13213_v29, %v3950_v18 }
 0x7ea   : > { %6726 = vst [vmem:[%s12601_s3 + $0xa8] sm:$0xff] %v6694_v3  ;;  %v6693_v15 = vadd.f32 %v6615_v27, %v4135_v14  ;;  %v6630_v12 = vadd.f32 %v9543_v53, %v12584_v25  ;;  %v13215_v14 = vld [vmem:[#allocation89_spill] sm:$0xff]  ;;  %v4185_v53 = vadd.f32 %v13216_v20, %v3960_v11 }
 0x7eb   : > { %v6624_v1 = vpop.f32.mrf.mxu0  ;;  %v4190_v31 = vadd.f32 %v13215_v14, %v3965_v7 }
 0x7ec   : > { %6725 = vst [vmem:[%s12601_s3 + $0xa0] sm:$0xff] %v6693_v15  ;;  %v6696_v16 = vadd.f32 %v6630_v12, %v4150_v60  ;;  %v6625_v17 = vadd.f32 %v12584_v25, %v6624_v1 }
 0x7ed   : > { %v9546_v55 = vpop.f32.mrf.mxu0 }
 0x7ee   : > { %6728 = vst [vmem:[%s12601_s3 + $0xb8] sm:$0xff] %v6696_v16  ;;  %v6695_v26 = vadd.f32 %v6625_v17, %v4145_v35  ;;  %v6640_v36 = vadd.f32 %v9546_v55, %v12584_v25 }
 0x7ef   : > { %v6634_v37 = vpop.f32.mrf.mxu0 }
 0x7f0   : > { %6727 = vst [vmem:[%s12601_s3 + $0xb0] sm:$0xff] %v6695_v26  ;;  %v6698_v33 = vadd.f32 %v6640_v36, %v4160_v61  ;;  %v6635_v63 = vadd.f32 %v12584_v25, %v6634_v37 }
 0x7f1   : > { %v9549_v0 = vpop.f32.mrf.mxu0 }
 0x7f2   : > { %6730 = vst [vmem:[%s12601_s3 + $0xc8] sm:$0xff] %v6698_v33  ;;  %v6697_v59 = vadd.f32 %v6635_v63, %v4155_v49  ;;  %v6650_v40 = vadd.f32 %v9549_v0, %v12584_v25 }
 0x7f3   : > { %v6644_v30 = vpop.f32.mrf.mxu0 }
 0x7f4   : > { %6729 = vst [vmem:[%s12601_s3 + $0xc0] sm:$0xff] %v6697_v59  ;;  %v6700_v44 = vadd.f32 %v6650_v40, %v4170_v23  ;;  %v6645_v52 = vadd.f32 %v12584_v25, %v6644_v30 }
 0x7f5   : > { %v9552_v2 = vpop.f32.mrf.mxu0 }
 0x7f6   : > { %6732 = vst [vmem:[%s12601_s3 + $0xd8] sm:$0xff] %v6700_v44  ;;  %v6699_v48 = vadd.f32 %v6645_v52, %v4165_v19  ;;  %v6660_v4 = vadd.f32 %v9552_v2, %v12584_v25 }
 0x7f7   : > { %v6654_v51 = vpop.f32.mrf.mxu0 }
 0x7f8   : > { %6731 = vst [vmem:[%s12601_s3 + $0xd0] sm:$0xff] %v6699_v48  ;;  %v6702_v9 = vadd.f32 %v6660_v4, %v4180_v38  ;;  %v6655_v5 = vadd.f32 %v12584_v25, %v6654_v51 }
 0x7f9   : > { %v9555_v42 = vpop.f32.mrf.mxu0 }
 0x7fa   : > { %6734 = vst [vmem:[%s12601_s3 + $0xe8] sm:$0xff] %v6702_v9  ;;  %v6701_v6 = vadd.f32 %v6655_v5, %v4175_v54  ;;  %v6670_v3 = vadd.f32 %v9555_v42, %v12584_v25 }
 0x7fb   : > { %v6664_v27 = vpop.f32.mrf.mxu0 }
 0x7fc   : > { %6733 = vst [vmem:[%s12601_s3 + $0xe0] sm:$0xff] %v6701_v6  ;;  %v6704_v56 = vadd.f32 %v6670_v3, %v4190_v31  ;;  %v6665_v60 = vadd.f32 %v12584_v25, %v6664_v27 }
 0x7fe   : > { %6736 = vst [vmem:[%s12601_s3 + $0xf8] sm:$0xff] %v6704_v56  ;;  %v6703_v8 = vadd.f32 %v6665_v60, %v4185_v53 }
 0x800   : > { %6735 = vst [vmem:[%s12601_s3 + $0xf0] sm:$0xff] %v6703_v8 }
 0x801   : > { %9695 = shalt.err (!%p9692_p3)
}
 0x802   : > { %s9696_s6 = scalar_lea.hbm %s12749_s5, 4096  ;;  %s9700_s3 = scalar_lea.hbm %s9917_s30, 8192 }
 0x803   : > { %p9697_p4 = scmp.ne.s32.totalorder %s12749_s5, %s9696_s6  ;;  %p9701_p9 = scmp.lt.s32.totalorder %s12749_s5, %s9917_s30 }
 0x804   : > { %p9702_p10 = scmp.lt.s32.totalorder %s9700_s3, %s9696_s6 }
 0x805   : > { %p9698_p7 = pnand %p9697_p4, %p9957_p5 }
 0x806   : > { %p9703_p11 = por %p9702_p10, %p9701_p9 }
 0x807   : > { %p9699_p8 = pneg %p9698_p7 }
 0x809   : > { %p9704_p12 = pnand %p9703_p11, %p9699_p8 }
 0x80b   : > { %9707 = shalt.err (!%p9704_p12)
}
 0x80c   : > { %s9772_s9 = smov 128   ;;  %s9773_s8 = smov 8  }
 0x80d   : > { %9580 = dma.vmem_to_hbm [thread:$0]  (%p9957_p5), %s12751_s1, 4096, %s12749_s5, %s12757_s0, %s9772_s9, %s9772_s9, %s9773_s8  }
 0x80e PF: > { %p9586_p13 = scmp.ge.s32.totalorder %s9742_s28, 2  ;;  %s6766_s7 = sand.u32 1, %s9730_s22  }
 0x80f   : > { %s6767_s4 = scalar_lea.sflag [#allocation3], %s6766_s7 }
 0x810   : > { %p9583_p0 = pnand %p9586_p13, %p9961_p6 }
 0x812   : > { %p9584_p1 = pneg %p9583_p0 }
 0x814   : > { %9725 = dma.done.wait (%p9584_p1), %s6767_s4, 4096  }
 0x815   : > { %9727 = vsyncadd (%p9584_p1), %s6767_s4, 4294963200  ;;  %p69_p2 = scmp.ge.s32.totalorder %s9944_s2, 4   ;;  %s13218_s22 = smov %s9734_s23 }
 0x816   : > { %s13219_s23 = smov %s9738_s26  ;;  %s13220_s26 = smov %s9955_s11 }
 0x817   : > { %s13221_s28 = smov %s9944_s2  ;;  %71 = sbr.rel (!%p69_p2) target bundleno = 49 (0x31), region = 200 }
 0x81c   :  { %6772 = vsyncpa [#allocation3], 1 }
 0x81d   :  { %6774 = vsyncpa [#allocation3 + $0x1], 1 }

</bundles_post_ra>
